<compile_context>
chip_gen: v7x
topology: tpu7x:2x2x1
jax: 0.10.0
libtpu: 0.0.40
codegen_flags: <defaults>
</compile_context>

<pallas_src>
import functools

import jax
import jax.numpy as jnp
from jax.experimental import pallas as pl
from jax.experimental.pallas import tpu as pltpu

EPS = 1e-5
NEG_SLOPE = 0.01  # torch.nn.LeakyReLU default


def _leaky_relu(h):
    return jnp.where(h > 0, h, NEG_SLOPE * h)


# --------------------------------------------------------------------------------------
# In-kernel math helpers
# --------------------------------------------------------------------------------------
def _segment_max(logits, seg, num_vals):
    """Per-pixel (segment of `num_vals` lanes) max, broadcast back to every lane.

    logits: (tb, N) f32 with N = td * num_vals; seg: (tb, N) f32 per-lane pixel id.
    Lane-aligned tiles use full-width pltpu.roll folds (review #4).  The fold uses BOTH
    roll directions and masks by the rolled segment id, so it is correct regardless of
    the rotate direction convention and for any num_vals.
    """
    V = num_vals
    _, N = logits.shape
    td = N // V
    if V == 1:
        return logits
    if N % 128 == 0:
        m = logits
        d = 1
        while d < V:                       # ceil(log2(V)) steps, window radius doubles
            for s in (d, N - d):
                rolled_m = pltpu.roll(m, shift=s, axis=1)
                rolled_s = pltpu.roll(seg, shift=s, axis=1)
                m = jnp.maximum(m, jnp.where(rolled_s == seg, rolled_m, -jnp.inf))
            d *= 2
        return m
    # Fallback for non-lane-aligned tiles (e.g. odd num_vals): only the max stays in a
    # per-pixel loop; exp / segmented sums below remain full width + MXU.
    # TODO(synk): convert to lax.fori_loop(unroll=True) if td ever grows large here.
    m = jnp.full_like(logits, -jnp.inf)
    for p in range(td):
        mp = jnp.max(logits[:, p * V:(p + 1) * V], axis=-1, keepdims=True)   # (tb, 1)
        m = jnp.where(seg == float(p), mp, m)
    return m


def _log_categorical_tile(logits, x_tile, num_vals):
    """sum_p log(clip(softmax(logits_p)[x_p], EPS, 1-EPS))  ->  (tb, 1) f32.

    logits: (tb, td*V) f32 ; x_tile: (tb, td) int32 target classes.
    """
    V = num_vals
    tb, N = logits.shape
    td = N // V

    lane = jax.lax.broadcasted_iota(jnp.int32, (tb, N), 1).astype(jnp.float32)
    seg = jnp.floor((lane + 0.5) * (1.0 / V))       # per-lane pixel id (exact for N < 2^22)
    cls = lane - seg * V                            # per-lane within-pixel class id

    # (1) per-pixel max at full lane width (XLU), (2) one subtract + one exp (EUP).
    m = _segment_max(logits, seg, V)
    e = jnp.exp(logits - m)

    # (3) segmented sums on the otherwise-idle MXU via static block-diagonal ones matrices.
    rn = jax.lax.broadcasted_iota(jnp.int32, (N, td), 0)
    cn = jax.lax.broadcasted_iota(jnp.int32, (N, td), 1)
    S = jnp.logical_and(rn >= cn * V, rn < (cn + 1) * V).astype(jnp.float32)   # (N, td)
    rt = jax.lax.broadcasted_iota(jnp.int32, (td, N), 0)
    ct = jax.lax.broadcasted_iota(jnp.int32, (td, N), 1)
    E = jnp.logical_and(ct >= rt * V, ct < (rt + 1) * V).astype(jnp.float32)   # (td, N)

    # Broadcast each pixel's target class across its V lanes with one small matmul.
    # Exact even under reduced matmul precision for V <= 256 (single nonzero term per lane).
    prec = jax.lax.Precision.HIGHEST if V > 256 else None
    x_exp = jnp.dot(x_tile.astype(jnp.float32), E,
                    preferred_element_type=jnp.float32, precision=prec)        # (tb, N)
    tmask = (jnp.abs(cls - x_exp) < 0.5).astype(jnp.float32)                   # target one-hot

    denom = jnp.dot(e, S, preferred_element_type=jnp.float32)                  # (tb, td)
    num = jnp.dot(e * tmask, S, preferred_element_type=jnp.float32)            # exp(l_x - m)

    # log / clip / div only on the small (tb, td) per-pixel values.
    p = jnp.clip(num / denom, EPS, 1.0 - EPS)
    return jnp.sum(jnp.log(p), axis=-1, keepdims=True)                         # (tb, 1)


def _mlp_hidden(z_ref, w1_ref, b1_ref, w2_ref, b2_ref):
    h = jnp.dot(z_ref[...], w1_ref[...], preferred_element_type=jnp.float32) + b1_ref[...]
    h = _leaky_relu(h)
    h = jnp.dot(h, w2_ref[...], preferred_element_type=jnp.float32) + b2_ref[...]
    return _leaky_relu(h)


# --------------------------------------------------------------------------------------
# Kernels
# --------------------------------------------------------------------------------------
def _decoder_kernel_single(z_ref, x_ref, w1_ref, b1_ref, w2_ref, b2_ref,
                           w3_ref, b3_ref, out_ref, *, num_vals):
    """nd == 1: the whole D*V axis fits one VMEM block -> no D-group grid axis (review #2)."""
    h = _mlp_hidden(z_ref, w1_ref, b1_ref, w2_ref, b2_ref)
    logits = jnp.dot(h.astype(w3_ref.dtype), w3_ref[...],
                     preferred_element_type=jnp.float32) + b3_ref[...]
    out_ref[...] = _log_categorical_tile(logits, x_ref[0], num_vals)


def _decoder_kernel_grouped(z_ref, x_ref, w1_ref, b1_ref, w2_ref, b2_ref,
                            w3_ref, b3_ref, out_ref, h_ref, acc_ref, *, num_vals):
    """Grid = (batch tile i, D-group j); w3/b3 columns streamed per D-group."""
    j = pl.program_id(1)

    @pl.when(j == 0)
    def _():
        h_ref[...] = _mlp_hidden(z_ref, w1_ref, b1_ref, w2_ref, b2_ref)
        acc_ref[...] = jnp.zeros_like(acc_ref)

    logits = jnp.dot(h_ref[...].astype(w3_ref.dtype), w3_ref[...],
                     preferred_element_type=jnp.float32) + b3_ref[...]
    acc_ref[...] = acc_ref[...] + _log_categorical_tile(logits, x_ref[0], num_vals)

    @pl.when(j == pl.num_programs(1) - 1)
    def _():
        out_ref[...] = acc_ref[...]          # write the HBM block once per batch tile (review #8)


# --------------------------------------------------------------------------------------
# Wrapper: tile selection + pallas_call
# --------------------------------------------------------------------------------------
def _round_up(a, m):
    return ((a + m - 1) // m) * m


def _choose_tb(B):
    """Batch tile >=128 where the batch allows it (review #1), but keep at least two batch
    tiles so v7x's 2 TensorCores both get work (review #7)."""
    tb = min(256, _round_up(B, 8))
    if B > 16 and _round_up(B, tb) // tb < 2:
        tb = max(8, _round_up((B + 1) // 2, 8))
    return tb


def _vmem_estimate_bytes(tb, td, V, L, M, w3_bytes):
    N = td * V
    stream = 2 * (M * N * w3_bytes + N * 4)          # double-buffered w3/b3 blocks
    resident = 2 * (L * M + M + M * M + M) * 4       # w1/b1/w2/b2
    io = 2 * (tb * L * 4 + tb * td * 4 + tb * 4)     # z, x, out blocks
    scratch = tb * M * 4 + tb * 4                    # hidden + accumulator scratch
    live = 7 * tb * N * 4 + 2 * N * td * 4           # logits/m/e/mask/... + S/E temporaries
    return stream + resident + io + scratch + live


def _choose_td(D, V, L, M, tb, w3_bytes, budget):
    """Largest lane-dense D-group that fits the VMEM budget (review #2/#3).
    t == D (full pixel axis, nd == 1) is always a legal block shape."""
    cands = sorted({t for t in range(1, D + 1)
                    if D % t == 0 and (t == D or (t * V) % 128 == 0)}, reverse=True)
    for t in cands:
        if _vmem_estimate_bytes(tb, t, V, L, M, w3_bytes) <= budget:
            return t
    return cands[-1]


def decoder_log_prob(z, x, params, *, tb=None, td=None, w3_dtype=jnp.bfloat16,
                     vmem_budget_bytes=32 * 2**20, w3_buffers=None, weight_buffers=None):
    """Decoder.forward(z, x, type='log_prob') for distribution='categorical'.

    w3_buffers / weight_buffers: optional pl.Buffered depths (e.g. 3 for w3 on v5e,
    1 for the resident w1/b1/w2/b2 on v7x).  Off by default for portability.
    """
    w1, b1, w2, b2, w3, b3 = params
    B, L = z.shape
    D = x.shape[1]
    M = w1.shape[1]
    DV = w3.shape[1]
    assert DV % D == 0, "decoder output width must be D * num_vals"
    V = DV // D

    # ---- tile selection (review #1/#2/#3/#7) ----
    if tb is None:
        tb = _choose_tb(B)
    tb = max(8, _round_up(min(tb, _round_up(B, 8)), 8))
    B_pad = _round_up(B, tb)
    nb = B_pad // tb

    w3_bytes = jnp.dtype(w3_dtype).itemsize
    if td is None:
        td = _choose_td(D, V, L, M, tb, w3_bytes, vmem_budget_bytes)
    assert D % td == 0 and (td == D or (td * V) % 128 == 0)
    nd = D // td

    # ---- operands: pad batch, regroup x per D-group, cast only the streamed w3 (review #5) ----
    zf = z.astype(jnp.float32)
    xi = x.astype(jnp.int32)
    if B_pad != B:
        zf = jnp.pad(zf, ((0, B_pad - B), (0, 0)))
        xi = jnp.pad(xi, ((0, B_pad - B), (0, 0)))
    x3 = xi.reshape(B_pad, nd, td).transpose(1, 0, 2)                 # (nd, B_pad, td)

    w1f, w2f = w1.astype(jnp.float32), w2.astype(jnp.float32)
    b1f, b2f, b3f = (b.astype(jnp.float32).reshape(1, -1) for b in (b1, b2, b3))
    w3c = w3.astype(w3_dtype)

    def _bspec(shape, index_map, buffers):
        if buffers is None:
            return pl.BlockSpec(shape, index_map)
        return pl.BlockSpec(shape, index_map, pipeline_mode=pl.Buffered(buffers))

    vmem_limit = int(min(max(vmem_budget_bytes + (16 << 20), 32 << 20), 60 << 20))

    if nd == 1:
        kernel = functools.partial(_decoder_kernel_single, num_vals=V)
        grid_spec = pltpu.PrefetchScalarGridSpec(
            num_scalar_prefetch=0,
            grid=(nb,),
            in_specs=[
                pl.BlockSpec((tb, L), lambda i: (i, 0)),
                pl.BlockSpec((1, tb, D), lambda i: (0, i, 0)),
                _bspec((L, M), lambda i: (0, 0), weight_buffers),
                _bspec((1, M), lambda i: (0, 0), weight_buffers),
                _bspec((M, M), lambda i: (0, 0), weight_buffers),
                _bspec((1, M), lambda i: (0, 0), weight_buffers),
                _bspec((M, D * V), lambda i: (0, 0), weight_buffers),
                _bspec((1, D * V), lambda i: (0, 0), weight_buffers),
            ],
            out_specs=pl.BlockSpec((tb, 1), lambda i: (i, 0)),
        )
        dims = ("parallel",)
    else:
        kernel = functools.partial(_decoder_kernel_grouped, num_vals=V)
        grid_spec = pltpu.PrefetchScalarGridSpec(
            num_scalar_prefetch=0,
            grid=(nb, nd),
            in_specs=[
                pl.BlockSpec((tb, L), lambda i, j: (i, 0)),
                pl.BlockSpec((1, tb, td), lambda i, j: (j, i, 0)),
                _bspec((L, M), lambda i, j: (0, 0), weight_buffers),
                _bspec((1, M), lambda i, j: (0, 0), weight_buffers),
                _bspec((M, M), lambda i, j: (0, 0), weight_buffers),
                _bspec((1, M), lambda i, j: (0, 0), weight_buffers),
                _bspec((M, td * V), lambda i, j: (0, j), w3_buffers),
                _bspec((1, td * V), lambda i, j: (0, j), w3_buffers),
            ],
            out_specs=pl.BlockSpec((tb, 1), lambda i, j: (i, 0)),
            scratch_shapes=[pltpu.VMEM((tb, M), jnp.float32),     # hidden activations
                            pltpu.VMEM((tb, 1), jnp.float32)],    # log-prob accumulator
        )
        dims = ("parallel", "arbitrary")

    out = pl.pallas_call(
        kernel,
        out_shape=jax.ShapeDtypeStruct((B_pad, 1), jnp.float32),
        grid_spec=grid_spec,
        compiler_params=pltpu.CompilerParams(
            dimension_semantics=dims, vmem_limit_bytes=vmem_limit),
    )(zf, x3, w1f, b1f, w2f, b2f, w3c, b3f)

    return out[:B, 0]


# --------------------------------------------------------------------------------------
# Pure-JAX reference (matches the PyTorch module's log_prob path)
# --------------------------------------------------------------------------------------
def reference_log_prob(z, x, params):
    w1, b1, w2, b2, w3, b3 = params
    h = _leaky_relu(z @ w1 + b1.reshape(1, -1))
    h = _leaky_relu(h @ w2 + b2.reshape(1, -1))
    h = h @ w3 + b3.reshape(1, -1)
    B, D = z.shape[0], x.shape[1]
    V = h.shape[1] // D
    p = jax.nn.softmax(h.reshape(B, D, V), axis=-1)
    p = jnp.clip(p, EPS, 1.0 - EPS)
    onehot = jax.nn.one_hot(x, V, dtype=jnp.float32)
    return jnp.sum(onehot * jnp.log(p), axis=(-1, -2))


if __name__ == "__main__":
    key = jax.random.PRNGKey(0)

    def make_case(k, B, L, M, D, V):
        ks = jax.random.split(k, 8)
        scale = 0.1
        w1 = scale * jax.random.normal(ks[0], (L, M), jnp.float32)
        b1 = scale * jax.random.normal(ks[1], (1, M), jnp.float32)
        w2 = scale * jax.random.normal(ks[2], (M, M), jnp.float32)
        b2 = scale * jax.random.normal(ks[3], (1, M), jnp.float32)
        w3 = scale * jax.random.normal(ks[4], (M, D * V), jnp.float32)
        b3 = scale * jax.random.normal(ks[5], (1, D * V), jnp.float32)
        z = jax.random.normal(ks[6], (B, L), jnp.float32)
        x = jax.random.randint(ks[7], (B, D), 0, V, dtype=jnp.int32)
        return (w1, b1, w2, b2, w3, b3), z, x

    k1, k2 = jax.random.split(key)

    # Case 1: lane-dense categorical decoder; B=256 -> tb=128, nb=2 ; td=D -> nd=1.
    params, z, x = make_case(k1, B=256, L=16, M=32, D=16, V=16)
    ref = reference_log_prob(z, x, params)

    out_bf16 = jax.block_until_ready(decoder_log_prob(z, x, params))   # default: bf16 w3
    assert out_bf16.shape == (256,)
    assert jnp.allclose(out_bf16, ref, rtol=1e-2, atol=1e-1), (out_bf16[:4], ref[:4])

    out_f32 = jax.block_until_ready(
        decoder_log_prob(z, x, params, w3_dtype=jnp.float32))
    assert jnp.allclose(out_f32, ref, rtol=5e-3, atol=5e-2), (out_f32[:4], ref[:4])

    # Case 2: force the grouped path (nd > 1, w3 columns streamed per D-group).
    out_grp = jax.block_until_ready(
        decoder_log_prob(z, x, params, td=8, w3_dtype=jnp.float32))
    assert jnp.allclose(out_grp, ref, rtol=5e-3, atol=5e-2), (out_grp[:4], ref[:4])

    # Case 3: odd num_vals (non-lane-aligned tile, max fallback) + ragged batch (padding).
    params3, z_odd, x_odd = make_case(k2, B=17, L=16, M=32, D=16, V=17)
    ref3 = reference_log_prob(z_odd, x_odd, params3)
    out3 = jax.block_until_ready(
        decoder_log_prob(z_odd, x_odd, params3, w3_dtype=jnp.float32))
    assert out3.shape == (17,)
    assert jnp.allclose(out3, ref3, rtol=5e-3, atol=5e-2), (out3[:4], ref3[:4])

    print("KERNEL_OK")
</pallas_src>

<mosaic_0001>
module attributes {stable_mosaic.version = 11 : i64} {
  func.func @_decoder_kernel_single(%arg0: i32, %arg1: memref<128x16xf32, #tpu.memory_space<vmem>>, %arg2: memref<1x128x16xi32, #tpu.memory_space<vmem>>, %arg3: memref<16x32xf32, #tpu.memory_space<vmem>>, %arg4: memref<1x32xf32, #tpu.memory_space<vmem>>, %arg5: memref<32x32xf32, #tpu.memory_space<vmem>>, %arg6: memref<1x32xf32, #tpu.memory_space<vmem>>, %arg7: memref<32x256xbf16, #tpu.memory_space<vmem>>, %arg8: memref<1x256xf32, #tpu.memory_space<vmem>>, %arg9: memref<128x1xf32, #tpu.memory_space<vmem>>) attributes {dimension_semantics = [#tpu.dimension_semantics<parallel>], iteration_bounds = array<i64: 2>, scalar_prefetch = 0 : i64, scratch_operands = 0 : i64, tpu.core_type = #tpu.core_type<tc>, window_params = [{transform_indices = @transform_0, window_bounds = array<i64: 128, 16>}, {transform_indices = @transform_1, window_bounds = array<i64: 1, 128, 16>}, {pipeline_mode = #tpu.pipeline_mode<synchronous>, transform_indices = @transform_2, window_bounds = array<i64: 16, 32>}, {pipeline_mode = #tpu.pipeline_mode<synchronous>, transform_indices = @transform_3, window_bounds = array<i64: 1, 32>}, {pipeline_mode = #tpu.pipeline_mode<synchronous>, transform_indices = @transform_4, window_bounds = array<i64: 32, 32>}, {pipeline_mode = #tpu.pipeline_mode<synchronous>, transform_indices = @transform_5, window_bounds = array<i64: 1, 32>}, {pipeline_mode = #tpu.pipeline_mode<synchronous>, transform_indices = @transform_6, window_bounds = array<i64: 32, 256>}, {pipeline_mode = #tpu.pipeline_mode<synchronous>, transform_indices = @transform_7, window_bounds = array<i64: 1, 256>}, {transform_indices = @transform_8, window_bounds = array<i64: 128, 1>}]} {
    %c0 = arith.constant 0 : index
    %c0_0 = arith.constant 0 : index
    %0 = vector.load %arg1[%c0, %c0_0] : memref<128x16xf32, #tpu.memory_space<vmem>>, vector<128x16xf32>
    %c0_1 = arith.constant 0 : index
    %c0_2 = arith.constant 0 : index
    %1 = vector.load %arg3[%c0_1, %c0_2] : memref<16x32xf32, #tpu.memory_space<vmem>>, vector<16x32xf32>
    %cst = arith.constant dense<0.000000e+00> : vector<128x32xf32>
    %2 = tpu.matmul %0, %1, %cst {dimension_numbers = #tpu.dot_dimension_numbers<[1], [0], [0], [1], [0, 0, 1, 1], [], []>} : vector<128x16xf32>, vector<16x32xf32>, vector<128x32xf32> -> vector<128x32xf32>
    %c0_3 = arith.constant 0 : index
    %c0_4 = arith.constant 0 : index
    %3 = vector.load %arg4[%c0_3, %c0_4] : memref<1x32xf32, #tpu.memory_space<vmem>>, vector<1x32xf32>
    %4 = vector.broadcast %3 : vector<1x32xf32> to vector<128x32xf32>
    %5 = arith.addf %2, %4 : vector<128x32xf32>
    %cst_5 = arith.constant 0.000000e+00 : f32
    %6 = vector.broadcast %cst_5 : f32 to vector<128x32xf32>
    %7 = arith.cmpf ogt, %5, %6 : vector<128x32xf32>
    %cst_6 = arith.constant 0.00999999977 : f32
    %8 = vector.broadcast %cst_6 : f32 to vector<128x32xf32>
    %9 = arith.mulf %8, %5 : vector<128x32xf32>
    %10 = arith.select %7, %5, %9 : vector<128x32xi1>, vector<128x32xf32>
    %c0_7 = arith.constant 0 : index
    %c0_8 = arith.constant 0 : index
    %11 = vector.load %arg5[%c0_7, %c0_8] : memref<32x32xf32, #tpu.memory_space<vmem>>, vector<32x32xf32>
    %cst_9 = arith.constant dense<0.000000e+00> : vector<128x32xf32>
    %12 = tpu.matmul %10, %11, %cst_9 {dimension_numbers = #tpu.dot_dimension_numbers<[1], [0], [0], [1], [0, 0, 1, 1], [], []>} : vector<128x32xf32>, vector<32x32xf32>, vector<128x32xf32> -> vector<128x32xf32>
    %c0_10 = arith.constant 0 : index
    %c0_11 = arith.constant 0 : index
    %13 = vector.load %arg6[%c0_10, %c0_11] : memref<1x32xf32, #tpu.memory_space<vmem>>, vector<1x32xf32>
    %14 = vector.broadcast %13 : vector<1x32xf32> to vector<128x32xf32>
    %15 = arith.addf %12, %14 : vector<128x32xf32>
    %cst_12 = arith.constant 0.000000e+00 : f32
    %16 = vector.broadcast %cst_12 : f32 to vector<128x32xf32>
    %17 = arith.cmpf ogt, %15, %16 : vector<128x32xf32>
    %cst_13 = arith.constant 0.00999999977 : f32
    %18 = vector.broadcast %cst_13 : f32 to vector<128x32xf32>
    %19 = arith.mulf %18, %15 : vector<128x32xf32>
    %20 = arith.select %17, %15, %19 : vector<128x32xi1>, vector<128x32xf32>
    %21 = arith.truncf %20 : vector<128x32xf32> to vector<128x32xbf16>
    %c0_14 = arith.constant 0 : index
    %c0_15 = arith.constant 0 : index
    %22 = vector.load %arg7[%c0_14, %c0_15] : memref<32x256xbf16, #tpu.memory_space<vmem>>, vector<32x256xbf16>
    %cst_16 = arith.constant dense<0.000000e+00> : vector<128x256xf32>
    %23 = tpu.matmul %21, %22, %cst_16 {dimension_numbers = #tpu.dot_dimension_numbers<[1], [0], [0], [1], [0, 0, 1, 1], [], []>} : vector<128x32xbf16>, vector<32x256xbf16>, vector<128x256xf32> -> vector<128x256xf32>
    %c0_17 = arith.constant 0 : index
    %c0_18 = arith.constant 0 : index
    %24 = vector.load %arg8[%c0_17, %c0_18] : memref<1x256xf32, #tpu.memory_space<vmem>>, vector<1x256xf32>
    %25 = vector.broadcast %24 : vector<1x256xf32> to vector<128x256xf32>
    %26 = arith.addf %23, %25 : vector<128x256xf32>
    %c0_19 = arith.constant 0 : index
    %c0_20 = arith.constant 0 : index
    %c0_21 = arith.constant 0 : index
    %27 = vector.load %arg2[%c0_19, %c0_20, %c0_21] : memref<1x128x16xi32, #tpu.memory_space<vmem>>, vector<1x128x16xi32>
    %28 = vector.shape_cast %27 : vector<1x128x16xi32> to vector<128x16xi32>
    %29 = tpu.iota {dimensions = array<i32: 1>} : vector<128x256xi32>
    %30 = arith.sitofp %29 : vector<128x256xi32> to vector<128x256xf32>
    %cst_22 = arith.constant 5.000000e-01 : f32
    %31 = vector.broadcast %cst_22 : f32 to vector<128x256xf32>
    %32 = arith.addf %30, %31 : vector<128x256xf32>
    %cst_23 = arith.constant 6.250000e-02 : f32
    %33 = vector.broadcast %cst_23 : f32 to vector<128x256xf32>
    %34 = arith.mulf %32, %33 : vector<128x256xf32>
    %35 = math.floor %34 : vector<128x256xf32>
    %cst_24 = arith.constant 1.600000e+01 : f32
    %36 = vector.broadcast %cst_24 : f32 to vector<128x256xf32>
    %37 = arith.mulf %35, %36 : vector<128x256xf32>
    %38 = arith.subf %30, %37 : vector<128x256xf32>
    %c1_i32 = arith.constant 1 : i32
    %39 = tpu.dynamic_rotate %26 by %c1_i32 dim 1 : vector<128x256xf32>, i32 -> vector<128x256xf32>
    %c1_i32_25 = arith.constant 1 : i32
    %40 = tpu.dynamic_rotate %35 by %c1_i32_25 dim 1 : vector<128x256xf32>, i32 -> vector<128x256xf32>
    %41 = arith.cmpf oeq, %40, %35 : vector<128x256xf32>
    %cst_26 = arith.constant 0xFF800000 : f32
    %42 = vector.broadcast %cst_26 : f32 to vector<128x256xf32>
    %43 = arith.select %41, %39, %42 : vector<128x256xi1>, vector<128x256xf32>
    %44 = arith.maximumf %26, %43 : vector<128x256xf32>
    %c255_i32 = arith.constant 255 : i32
    %45 = tpu.dynamic_rotate %44 by %c255_i32 dim 1 : vector<128x256xf32>, i32 -> vector<128x256xf32>
    %c255_i32_27 = arith.constant 255 : i32
    %46 = tpu.dynamic_rotate %35 by %c255_i32_27 dim 1 : vector<128x256xf32>, i32 -> vector<128x256xf32>
    %47 = arith.cmpf oeq, %46, %35 : vector<128x256xf32>
    %cst_28 = arith.constant 0xFF800000 : f32
    %48 = vector.broadcast %cst_28 : f32 to vector<128x256xf32>
    %49 = arith.select %47, %45, %48 : vector<128x256xi1>, vector<128x256xf32>
    %50 = arith.maximumf %44, %49 : vector<128x256xf32>
    %c2_i32 = arith.constant 2 : i32
    %51 = tpu.dynamic_rotate %50 by %c2_i32 dim 1 : vector<128x256xf32>, i32 -> vector<128x256xf32>
    %c2_i32_29 = arith.constant 2 : i32
    %52 = tpu.dynamic_rotate %35 by %c2_i32_29 dim 1 : vector<128x256xf32>, i32 -> vector<128x256xf32>
    %53 = arith.cmpf oeq, %52, %35 : vector<128x256xf32>
    %cst_30 = arith.constant 0xFF800000 : f32
    %54 = vector.broadcast %cst_30 : f32 to vector<128x256xf32>
    %55 = arith.select %53, %51, %54 : vector<128x256xi1>, vector<128x256xf32>
    %56 = arith.maximumf %50, %55 : vector<128x256xf32>
    %c254_i32 = arith.constant 254 : i32
    %57 = tpu.dynamic_rotate %56 by %c254_i32 dim 1 : vector<128x256xf32>, i32 -> vector<128x256xf32>
    %c254_i32_31 = arith.constant 254 : i32
    %58 = tpu.dynamic_rotate %35 by %c254_i32_31 dim 1 : vector<128x256xf32>, i32 -> vector<128x256xf32>
    %59 = arith.cmpf oeq, %58, %35 : vector<128x256xf32>
    %cst_32 = arith.constant 0xFF800000 : f32
    %60 = vector.broadcast %cst_32 : f32 to vector<128x256xf32>
    %61 = arith.select %59, %57, %60 : vector<128x256xi1>, vector<128x256xf32>
    %62 = arith.maximumf %56, %61 : vector<128x256xf32>
    %c4_i32 = arith.constant 4 : i32
    %63 = tpu.dynamic_rotate %62 by %c4_i32 dim 1 : vector<128x256xf32>, i32 -> vector<128x256xf32>
    %c4_i32_33 = arith.constant 4 : i32
    %64 = tpu.dynamic_rotate %35 by %c4_i32_33 dim 1 : vector<128x256xf32>, i32 -> vector<128x256xf32>
    %65 = arith.cmpf oeq, %64, %35 : vector<128x256xf32>
    %cst_34 = arith.constant 0xFF800000 : f32
    %66 = vector.broadcast %cst_34 : f32 to vector<128x256xf32>
    %67 = arith.select %65, %63, %66 : vector<128x256xi1>, vector<128x256xf32>
    %68 = arith.maximumf %62, %67 : vector<128x256xf32>
    %c252_i32 = arith.constant 252 : i32
    %69 = tpu.dynamic_rotate %68 by %c252_i32 dim 1 : vector<128x256xf32>, i32 -> vector<128x256xf32>
    %c252_i32_35 = arith.constant 252 : i32
    %70 = tpu.dynamic_rotate %35 by %c252_i32_35 dim 1 : vector<128x256xf32>, i32 -> vector<128x256xf32>
    %71 = arith.cmpf oeq, %70, %35 : vector<128x256xf32>
    %cst_36 = arith.constant 0xFF800000 : f32
    %72 = vector.broadcast %cst_36 : f32 to vector<128x256xf32>
    %73 = arith.select %71, %69, %72 : vector<128x256xi1>, vector<128x256xf32>
    %74 = arith.maximumf %68, %73 : vector<128x256xf32>
    %c8_i32 = arith.constant 8 : i32
    %75 = tpu.dynamic_rotate %74 by %c8_i32 dim 1 : vector<128x256xf32>, i32 -> vector<128x256xf32>
    %c8_i32_37 = arith.constant 8 : i32
    %76 = tpu.dynamic_rotate %35 by %c8_i32_37 dim 1 : vector<128x256xf32>, i32 -> vector<128x256xf32>
    %77 = arith.cmpf oeq, %76, %35 : vector<128x256xf32>
    %cst_38 = arith.constant 0xFF800000 : f32
    %78 = vector.broadcast %cst_38 : f32 to vector<128x256xf32>
    %79 = arith.select %77, %75, %78 : vector<128x256xi1>, vector<128x256xf32>
    %80 = arith.maximumf %74, %79 : vector<128x256xf32>
    %c248_i32 = arith.constant 248 : i32
    %81 = tpu.dynamic_rotate %80 by %c248_i32 dim 1 : vector<128x256xf32>, i32 -> vector<128x256xf32>
    %c248_i32_39 = arith.constant 248 : i32
    %82 = tpu.dynamic_rotate %35 by %c248_i32_39 dim 1 : vector<128x256xf32>, i32 -> vector<128x256xf32>
    %83 = arith.cmpf oeq, %82, %35 : vector<128x256xf32>
    %cst_40 = arith.constant 0xFF800000 : f32
    %84 = vector.broadcast %cst_40 : f32 to vector<128x256xf32>
    %85 = arith.select %83, %81, %84 : vector<128x256xi1>, vector<128x256xf32>
    %86 = arith.maximumf %80, %85 : vector<128x256xf32>
    %87 = arith.subf %26, %86 : vector<128x256xf32>
    %88 = math.exp %87 : vector<128x256xf32>
    %89 = tpu.iota {dimensions = array<i32: 0>} : vector<256x16xi32>
    %90 = tpu.iota {dimensions = array<i32: 1>} : vector<256x16xi32>
    %c16_i32 = arith.constant 16 : i32
    %91 = vector.broadcast %c16_i32 : i32 to vector<256x16xi32>
    %92 = arith.muli %90, %91 : vector<256x16xi32>
    %93 = arith.cmpi sge, %89, %92 : vector<256x16xi32>
    %c1_i32_41 = arith.constant 1 : i32
    %94 = vector.broadcast %c1_i32_41 : i32 to vector<256x16xi32>
    %95 = arith.addi %90, %94 : vector<256x16xi32>
    %c16_i32_42 = arith.constant 16 : i32
    %96 = vector.broadcast %c16_i32_42 : i32 to vector<256x16xi32>
    %97 = arith.muli %95, %96 : vector<256x16xi32>
    %98 = arith.cmpi slt, %89, %97 : vector<256x16xi32>
    %99 = arith.andi %93, %98 : vector<256x16xi1>
    %100 = arith.extui %99 : vector<256x16xi1> to vector<256x16xi32>
    %101 = arith.sitofp %100 : vector<256x16xi32> to vector<256x16xf32>
    %102 = tpu.iota {dimensions = array<i32: 0>} : vector<16x256xi32>
    %103 = tpu.iota {dimensions = array<i32: 1>} : vector<16x256xi32>
    %c16_i32_43 = arith.constant 16 : i32
    %104 = vector.broadcast %c16_i32_43 : i32 to vector<16x256xi32>
    %105 = arith.muli %102, %104 : vector<16x256xi32>
    %106 = arith.cmpi sge, %103, %105 : vector<16x256xi32>
    %c1_i32_44 = arith.constant 1 : i32
    %107 = vector.broadcast %c1_i32_44 : i32 to vector<16x256xi32>
    %108 = arith.addi %102, %107 : vector<16x256xi32>
    %c16_i32_45 = arith.constant 16 : i32
    %109 = vector.broadcast %c16_i32_45 : i32 to vector<16x256xi32>
    %110 = arith.muli %108, %109 : vector<16x256xi32>
    %111 = arith.cmpi slt, %103, %110 : vector<16x256xi32>
    %112 = arith.andi %106, %111 : vector<16x256xi1>
    %113 = arith.extui %112 : vector<16x256xi1> to vector<16x256xi32>
    %114 = arith.sitofp %113 : vector<16x256xi32> to vector<16x256xf32>
    %115 = arith.sitofp %28 : vector<128x16xi32> to vector<128x16xf32>
    %cst_46 = arith.constant dense<0.000000e+00> : vector<128x256xf32>
    %116 = tpu.matmul %115, %114, %cst_46 {dimension_numbers = #tpu.dot_dimension_numbers<[1], [0], [0], [1], [0, 0, 1, 1], [], []>} : vector<128x16xf32>, vector<16x256xf32>, vector<128x256xf32> -> vector<128x256xf32>
    %117 = arith.subf %38, %116 : vector<128x256xf32>
    %118 = math.absf %117 : vector<128x256xf32>
    %cst_47 = arith.constant 5.000000e-01 : f32
    %119 = vector.broadcast %cst_47 : f32 to vector<128x256xf32>
    %120 = arith.cmpf olt, %118, %119 : vector<128x256xf32>
    %121 = arith.extui %120 : vector<128x256xi1> to vector<128x256xi32>
    %122 = arith.sitofp %121 : vector<128x256xi32> to vector<128x256xf32>
    %cst_48 = arith.constant dense<0.000000e+00> : vector<128x16xf32>
    %123 = tpu.matmul %88, %101, %cst_48 {dimension_numbers = #tpu.dot_dimension_numbers<[1], [0], [0], [1], [0, 0, 1, 1], [], []>} : vector<128x256xf32>, vector<256x16xf32>, vector<128x16xf32> -> vector<128x16xf32>
    %124 = arith.mulf %88, %122 : vector<128x256xf32>
    %cst_49 = arith.constant dense<0.000000e+00> : vector<128x16xf32>
    %125 = tpu.matmul %124, %101, %cst_49 {dimension_numbers = #tpu.dot_dimension_numbers<[1], [0], [0], [1], [0, 0, 1, 1], [], []>} : vector<128x256xf32>, vector<256x16xf32>, vector<128x16xf32> -> vector<128x16xf32>
    %126 = arith.divf %125, %123 : vector<128x16xf32>
    %cst_50 = arith.constant 9.99999974E-6 : f32
    %cst_51 = arith.constant 0.999989986 : f32
    %127 = vector.broadcast %cst_50 : f32 to vector<128x16xf32>
    %128 = arith.maximumf %127, %126 : vector<128x16xf32>
    %129 = vector.broadcast %cst_51 : f32 to vector<128x16xf32>
    %130 = arith.minimumf %129, %128 : vector<128x16xf32>
    %131 = math.log %130 : vector<128x16xf32>
    %cst_52 = arith.constant dense<0.000000e+00> : vector<128xf32>
    %132 = vector.multi_reduction <add>, %131, %cst_52 [1] : vector<128x16xf32> to vector<128xf32>
    %133 = vector.shape_cast %132 : vector<128xf32> to vector<128x1xf32>
    %c0_53 = arith.constant 0 : index
    %c0_54 = arith.constant 0 : index
    %134 = vector.load %arg9[%c0_53, %c0_54] : memref<128x1xf32, #tpu.memory_space<vmem>>, vector<128x1xf32>
    tpu.vector_store %arg9[%c0_53, %c0_54], %133 {strides = array<i32>} : memref<128x1xf32, #tpu.memory_space<vmem>>, vector<128x1xf32>,
    return
  }
  func.func @transform_0(%arg0: i32) -> (i32, i32) {
    %c0_i32 = arith.constant 0 : i32
    %c0_i32_0 = arith.constant 0 : i32
    return %arg0, %c0_i32 : i32, i32
  }
  func.func @transform_1(%arg0: i32) -> (i32, i32, i32) {
    %c0_i32 = arith.constant 0 : i32
    %c0_i32_0 = arith.constant 0 : i32
    %c0_i32_1 = arith.constant 0 : i32
    return %c0_i32, %arg0, %c0_i32_0 : i32, i32, i32
  }
  func.func @transform_2(%arg0: i32) -> (i32, i32) {
    %c0_i32 = arith.constant 0 : i32
    %c0_i32_0 = arith.constant 0 : i32
    %c0_i32_1 = arith.constant 0 : i32
    return %c0_i32, %c0_i32_0 : i32, i32
  }
  func.func @transform_3(%arg0: i32) -> (i32, i32) {
    %c0_i32 = arith.constant 0 : i32
    %c0_i32_0 = arith.constant 0 : i32
    %c0_i32_1 = arith.constant 0 : i32
    return %c0_i32, %c0_i32_0 : i32, i32
  }
  func.func @transform_4(%arg0: i32) -> (i32, i32) {
    %c0_i32 = arith.constant 0 : i32
    %c0_i32_0 = arith.constant 0 : i32
    %c0_i32_1 = arith.constant 0 : i32
    return %c0_i32, %c0_i32_0 : i32, i32
  }
  func.func @transform_5(%arg0: i32) -> (i32, i32) {
    %c0_i32 = arith.constant 0 : i32
    %c0_i32_0 = arith.constant 0 : i32
    %c0_i32_1 = arith.constant 0 : i32
    return %c0_i32, %c0_i32_0 : i32, i32
  }
  func.func @transform_6(%arg0: i32) -> (i32, i32) {
    %c0_i32 = arith.constant 0 : i32
    %c0_i32_0 = arith.constant 0 : i32
    %c0_i32_1 = arith.constant 0 : i32
    return %c0_i32, %c0_i32_0 : i32, i32
  }
  func.func @transform_7(%arg0: i32) -> (i32, i32) {
    %c0_i32 = arith.constant 0 : i32
    %c0_i32_0 = arith.constant 0 : i32
    %c0_i32_1 = arith.constant 0 : i32
    return %c0_i32, %c0_i32_0 : i32, i32
  }
  func.func @transform_8(%arg0: i32) -> (i32, i32) {
    %c0_i32 = arith.constant 0 : i32
    %c0_i32_0 = arith.constant 0 : i32
    return %arg0, %c0_i32 : i32, i32
  }
}

</mosaic_0001>

<bundles_post_ra>
// kernel: tpu_custom_call.1
= control target key start
LH: loop header
LB: loop body
LE: loop exit
PB: predicated region body
PF: predicated region fallthrough
CT: control target
= control target key end

     0   :  { %s4436_s27 = smov 0   ;;  %s7897_s0 = inlined_call_operand.vmem [shape: f32[256,16], index: 0, kind: input, shape index: {}]   ;;  %s7898_s1 = inlined_call_operand.vmem [shape: s32[1,256,16], index: 1, kind: input, shape index: {}]   ;;  %s7899_s2 = inlined_call_operand.vmem [shape: f32[16,32], index: 2, kind: input, shape index: {}]   ;;  %s7900_s3 = inlined_call_operand.vmem [shape: f32[1,32], index: 3, kind: input, shape index: {}]   ;;  %s7901_s4 = inlined_call_operand.vmem [shape: f32[32,32], index: 4, kind: input, shape index: {}]   ;;  %s7902_s5 = inlined_call_operand.vmem [shape: f32[1,32], index: 5, kind: input, shape index: {}]   ;;  %s7903_s6 = inlined_call_operand.vmem [shape: bf16[32,256], index: 6, kind: input, shape index: {}]   ;;  %s7904_s7 = inlined_call_operand.vmem [shape: f32[1,256], index: 7, kind: input, shape index: {}]   ;;  %s7905_s8 = inlined_call_operand.vmem [shape: f32[256,1], index: 8, kind: output, shape index: {}]  }
   0x1 LB: > { %s3670_s28 = sadd.s32 4294967295, %s4378_s27   ;;  %p3674_p0 = scmp.ge.s32.totalorder %s4378_s27, 1  ;;  %s4378_s27 = sphi %s4436_s27, %s18_s27  }
   0x2   : > { %p274_p1 = scmp.lt.s32.totalorder %s4378_s27, 3 }
   0x4   : > { %p275_p2 = pnand %p3674_p0, %p274_p1 }
   0x6   : > { %278 = sbr.rel (%p275_p2) target bundleno = 2097 (0x831), region = 52 }
   0xd   : > { %v348_v0 = vld [vmem:[%s7899_s2] sm:$0xff]  ;;  %v349_v1 = vld [vmem:[%s7899_s2 + $0x8] sm:$0xff]  ;;  %s3675_s11 = sshll.u32 %s3670_s28, 4  ;;  %vm357_vm0 = vcmask 130048   ;;  %v601_v22 = vld [vmem:[%s7901_s4 + $0x10] sm:$0xff]  ;;  %vm610_vm3 = vcmask 261120  }
   0xe   : > { %v4139_v2 = vpack.c.bf16 %v349_v1, %v348_v0  ;;  %p314_p3 = scmp.lt.s32.totalorder %s3675_s11, 31  ;;  %v599_v19 = vld [vmem:[%s7901_s4] sm:$0xff]  ;;  %v600_v20 = vld [vmem:[%s7901_s4 + $0x8] sm:$0xff]  ;;  %v602_v23 = vld [vmem:[%s7901_s4 + $0x18] sm:$0xff]  ;;  %s4381_s14 = smov 1  }
   0xf   : > { %v4143_v21 = vpack.c.bf16 %v600_v20, %v599_v19  ;;  %v4147_v24 = vpack.c.bf16 %v602_v23, %v601_v22  ;;  %v4238_v25 = vld [vmem:[%s7903_s6] ss:$8 sps:$4 sm:$0xff]   ;;  %v4240_v26 = vld [vmem:[%s7903_s6 + $0x4] ss:$8 sps:$4 sm:$0xff]   ;;  %v4243_v27 = vld [vmem:[%s7903_s6 + $0x14] ss:$8 sps:$4 sm:$0xff]  }
  0x10   : > { %4140 = vmatprep.subr.bf16.mxu0 %v4139_v2  ;;  %s8140_s11 = smov (!%p314_p3, %s3675_s11), 31  ;;  %v4241_v28 = vld [vmem:[%s7903_s6 + $0x10] ss:$8 sps:$4 sm:$0xff]   ;;  %v4517_v29 = vld [vmem:[%s7900_s3] ss:$0 sm:$0xff]  ;;  %s4383_s16 = smov 2  }
  0x11   : > { %4142 = vmatpush3.bf16.msra.mxu0 %v4139_v2  ;;  %s4450_s12 = sshll.u32 %s8140_s11, 3  ;;  %4144 = vmatprep.subr.bf16.mxu1 %v4143_v21  ;;  %s4384_s17 = smov 126  }
  0x12   : > { %s4456_s15 = scalar_lea.vmem %s7897_s0, %s4450_s12  ;;  %4146 = vmatpush3.bf16.msra.mxu1 %v4143_v21  ;;  %920 = vmatprep.subr.bf16.mxu0 %v4240_v26  ;;  %s4385_s18 = smov 4  }
  0x13   : > { %v332_v3 = vld [vmem:[%s4456_s15] sm:$0xff]  ;;  %v333_v4 = vld [vmem:[%s4456_s15 + $0x8] sm:$0xff]  ;;  %v334_v5 = vld [vmem:[%s4456_s15 + $0x10] sm:$0xff]  ;;  %4148 = vmatprep.subr.bf16.mxu1 %v4147_v24  ;;  %s4386_s19 = smov 124   ;;  %s4387_s20 = smov 8  }
  0x14   : > { %4083 = vmatprep.mubr.msk.f32.mxu0 %vm357_vm0, %v332_v3  ;;  %v335_v6 = vld [vmem:[%s4456_s15 + $0x18] sm:$0xff]  ;;  %v336_v7 = vld [vmem:[%s4456_s15 + $0x20] sm:$0xff]  ;;  %v337_v8 = vld [vmem:[%s4456_s15 + $0x28] sm:$0xff]  ;;  %s4388_s21 = smov 120   ;;  %s6246_s29 = scalar_lea.vmem %s7898_s1, %s4450_s12 }
  0x15   : > { %4084 = vmatmul.mubr.msk.f32.vlgmr.msra.gmra.mrb[0].mxu0 %vm357_vm0, %v333_v4  ;;  %v338_v9 = vld [vmem:[%s4456_s15 + $0x30] sm:$0xff]  ;;  %v339_v10 = vld [vmem:[%s4456_s15 + $0x38] sm:$0xff]  ;;  %v340_v11 = vld [vmem:[%s4456_s15 + $0x40] sm:$0xff]  ;;  %s7860_s10 = scalar_lea.vmem %s7905_s8, %s4450_s12 }
  0x16   : > { %4086 = vmatprep.mubr.msk.f32.mxu0 %vm357_vm0, %v334_v5  ;;  %v341_v12 = vld [vmem:[%s4456_s15 + $0x48] sm:$0xff]  ;;  %v342_v13 = vld [vmem:[%s4456_s15 + $0x50] sm:$0xff]  ;;  %v343_v14 = vld [vmem:[%s4456_s15 + $0x58] sm:$0xff]  ;;  %4150 = vmatpush3.bf16.msra.mxu1 %v4147_v24 }
  0x17   : > { %v344_v15 = vld [vmem:[%s4456_s15 + $0x60] sm:$0xff]  ;;  %v345_v16 = vld [vmem:[%s4456_s15 + $0x68] sm:$0xff]  ;;  %v346_v17 = vld [vmem:[%s4456_s15 + $0x70] sm:$0xff]  ;;  %921 = vmatpush1.bf16.msra.mxu0 %v4238_v25 }
  0x18   : > { %v347_v18 = vld [vmem:[%s4456_s15 + $0x78] sm:$0xff]  ;;  %922 = vmatprep.subr.bf16.mxu0 %v4243_v27  ;;  %s4382_s15 = smov 127  }
  0x19   : > { %4087 = vmatmul.mubr.msk.f32.gmra.mrb[2].mxu0 %vm357_vm0, %v335_v6 }
  0x1a   : > { %4089 = vmatprep.mubr.msk.f32.mxu0 %vm357_vm0, %v336_v7 }
  0x1b   : > { %923 = vmatpush1.bf16.msra.mxu0 %v4241_v28 }
  0x1d   : > { %4090 = vmatmul.mubr.msk.f32.gmra.mrb[4].mxu0 %vm357_vm0, %v337_v8 }
  0x1e   : > { %4092 = vmatprep.mubr.msk.f32.mxu0 %vm357_vm0, %v338_v9 }
  0x21   : > { %4093 = vmatmul.mubr.msk.f32.gmra.mrb[6].mxu0 %vm357_vm0, %v339_v10 }
  0x22   : > { %4095 = vmatprep.mubr.msk.f32.mxu0 %vm357_vm0, %v340_v11 }
  0x25   : > { %4096 = vmatmul.mubr.msk.f32.gmra.mrb[8].mxu0 %vm357_vm0, %v341_v12 }
  0x26   : > { %4098 = vmatprep.mubr.msk.f32.mxu0 %vm357_vm0, %v342_v13 }
  0x29   : > { %4099 = vmatmul.mubr.msk.f32.gmra.mrb[10].mxu0 %vm357_vm0, %v343_v14 }
  0x2a   : > { %4101 = vmatprep.mubr.msk.f32.mxu0 %vm357_vm0, %v344_v15 }
  0x2d   : > { %4102 = vmatmul.mubr.msk.f32.gmra.mrb[12].mxu0 %vm357_vm0, %v345_v16 }
  0x2e   : > { %4104 = vmatprep.mubr.msk.f32.mxu0 %vm357_vm0, %v346_v17 }
  0x31   : > { %4105 = vmatmul.mubr.msk.f32.gmra.mrb[14].mxu0 %vm357_vm0, %v347_v18 }
  0xe8   : > { %v4085_v30 = vpop.f32.mrb[0].mxu0 }
  0xe9   : > { %v478_v31 = vadd.f32 %v4085_v30, %v4517_v29  ;;  %v472_v32 = vpop.f32.mrb[1].mxu0 }
  0xea   : > { %v473_v33 = vadd.f32 %v4517_v29, %v472_v32  ;;  %v866_v32 = vlaneseq }
  0xeb   : > { %v568_v34 = vmul.f32 0.01, %v478_v31  ;;  %vm552_vm1 = vcmp.gt.f32.partialorder %v478_v31, 0.0 }
  0xec   : > { %v4088_v35 = vpop.f32.mrb[2].mxu0  ;;  %vm551_vm2 = vcmp.gt.f32.partialorder %v473_v33, 0.0  ;;  %v567_v36 = vmul.f32 0.01, %v473_v33 }
  0xed   : > { %v488_v37 = vadd.f32 %v4088_v35, %v4517_v29  ;;  %v482_v38 = vpop.f32.mrb[3].mxu0  ;;  %v584_v42 = vsel %vm552_vm1, %v478_v31, %v568_v34  ;;  %v4380_v31 = vmov 0  }
  0xee   : > { %v483_v39 = vadd.f32 %v4517_v29, %v482_v38  ;;  %v583_v40 = vsel %vm551_vm2, %v473_v33, %v567_v36  ;;  %952 = vmatprep.mubr.bf16.mxu0 %v4380_v31 }
  0xef   : > { %vm554_vm4 = vcmp.gt.f32.partialorder %v488_v37, 0.0  ;;  %v570_v41 = vmul.f32 0.01, %v488_v37  ;;  %4115 = vmatprep.mubr.msk.f32.mxu1 %vm610_vm3, %v583_v40 }
  0xf0   : > { %vm553_vm5 = vcmp.gt.f32.partialorder %v483_v39, 0.0  ;;  %v569_v43 = vmul.f32 0.01, %v483_v39  ;;  %4116 = vmatmul.mubr.msk.f32.vlgmr.msra.gmra.mrb[0].mxu1 %vm610_vm3, %v584_v42  ;;  %v4091_v44 = vpop.f32.mrb[4].mxu0  ;;  %v4603_v42 = vld [vmem:[%s7902_s5] ss:$0 sm:$0xff] }
  0xf1   : > { %v498_v45 = vadd.f32 %v4091_v44, %v4517_v29  ;;  %v586_v46 = vsel %vm554_vm4, %v488_v37, %v570_v41  ;;  %v492_v47 = vpop.f32.mrb[5].mxu0 }
  0xf2   : > { %v585_v48 = vsel %vm553_vm5, %v483_v39, %v569_v43  ;;  %v493_v49 = vadd.f32 %v4517_v29, %v492_v47 }
  0xf3   : > { %4118 = vmatprep.mubr.msk.f32.mxu1 %vm610_vm3, %v585_v48  ;;  %vm556_vm6 = vcmp.gt.f32.partialorder %v498_v45, 0.0  ;;  %v572_v50 = vmul.f32 0.01, %v498_v45 }
  0xf4   : > { %4119 = vmatmul.mubr.msk.f32.gmra.mrb[2].mxu1 %vm610_vm3, %v586_v46  ;;  %vm555_vm7 = vcmp.gt.f32.partialorder %v493_v49, 0.0  ;;  %v571_v51 = vmul.f32 0.01, %v493_v49  ;;  %v4094_v52 = vpop.f32.mrb[6].mxu0 }
  0xf5   : > { %v508_v53 = vadd.f32 %v4094_v52, %v4517_v29  ;;  %v588_v54 = vsel %vm556_vm6, %v498_v45, %v572_v50  ;;  %v502_v55 = vpop.f32.mrb[7].mxu0 }
  0xf6   : > { %v587_v56 = vsel %vm555_vm7, %v493_v49, %v571_v51  ;;  %v503_v57 = vadd.f32 %v4517_v29, %v502_v55 }
  0xf7   : > { %4121 = vmatprep.mubr.msk.f32.mxu1 %vm610_vm3, %v587_v56  ;;  %vm558_vm8 = vcmp.gt.f32.partialorder %v508_v53, 0.0  ;;  %v574_v58 = vmul.f32 0.01, %v508_v53 }
  0xf8   : > { %4122 = vmatmul.mubr.msk.f32.gmra.mrb[4].mxu1 %vm610_vm3, %v588_v54  ;;  %vm557_vm9 = vcmp.gt.f32.partialorder %v503_v57, 0.0  ;;  %v573_v59 = vmul.f32 0.01, %v503_v57  ;;  %v4097_v60 = vpop.f32.mrb[8].mxu0 }
  0xf9   : > { %v518_v61 = vadd.f32 %v4097_v60, %v4517_v29  ;;  %v590_v62 = vsel %vm558_vm8, %v508_v53, %v574_v58  ;;  %v512_v63 = vpop.f32.mrb[9].mxu0 }
  0xfa   : > { %v589_v0 = vsel %vm557_vm9, %v503_v57, %v573_v59  ;;  %v513_v1 = vadd.f32 %v4517_v29, %v512_v63 }
  0xfb   : > { %4124 = vmatprep.mubr.msk.f32.mxu1 %vm610_vm3, %v589_v0  ;;  %vm560_vm10 = vcmp.gt.f32.partialorder %v518_v61, 0.0  ;;  %v576_v2 = vmul.f32 0.01, %v518_v61 }
  0xfc   : > { %4125 = vmatmul.mubr.msk.f32.gmra.mrb[6].mxu1 %vm610_vm3, %v590_v62  ;;  %vm559_vm11 = vcmp.gt.f32.partialorder %v513_v1, 0.0  ;;  %v575_v3 = vmul.f32 0.01, %v513_v1  ;;  %v4100_v4 = vpop.f32.mrb[10].mxu0 }
  0xfd   : > { %v528_v5 = vadd.f32 %v4100_v4, %v4517_v29  ;;  %v592_v6 = vsel %vm560_vm10, %v518_v61, %v576_v2  ;;  %v522_v7 = vpop.f32.mrb[11].mxu0 }
  0xfe   : > { %v591_v8 = vsel %vm559_vm11, %v513_v1, %v575_v3  ;;  %v523_v9 = vadd.f32 %v4517_v29, %v522_v7 }
  0xff   : > { %4127 = vmatprep.mubr.msk.f32.mxu1 %vm610_vm3, %v591_v8  ;;  %vm562_vm12 = vcmp.gt.f32.partialorder %v528_v5, 0.0  ;;  %v578_v10 = vmul.f32 0.01, %v528_v5 }
 0x100   : > { %4128 = vmatmul.mubr.msk.f32.gmra.mrb[8].mxu1 %vm610_vm3, %v592_v6  ;;  %vm561_vm13 = vcmp.gt.f32.partialorder %v523_v9, 0.0  ;;  %v577_v11 = vmul.f32 0.01, %v523_v9  ;;  %v4103_v12 = vpop.f32.mrb[12].mxu0 }
 0x101   : > { %v538_v13 = vadd.f32 %v4103_v12, %v4517_v29  ;;  %v594_v14 = vsel %vm562_vm12, %v528_v5, %v578_v10  ;;  %v532_v15 = vpop.f32.mrb[13].mxu0 }
 0x102   : > { %v593_v16 = vsel %vm561_vm13, %v523_v9, %v577_v11  ;;  %v533_v17 = vadd.f32 %v4517_v29, %v532_v15 }
 0x103   : > { %4130 = vmatprep.mubr.msk.f32.mxu1 %vm610_vm3, %v593_v16  ;;  %vm564_vm14 = vcmp.gt.f32.partialorder %v538_v13, 0.0  ;;  %v580_v18 = vmul.f32 0.01, %v538_v13 }
 0x104   : > { %4131 = vmatmul.mubr.msk.f32.gmra.mrb[10].mxu1 %vm610_vm3, %v594_v14  ;;  %vm563_vm15 = vcmp.gt.f32.partialorder %v533_v17, 0.0  ;;  %v579_v19 = vmul.f32 0.01, %v533_v17  ;;  %v4106_v20 = vpop.f32.mrb[14].mxu0 }
 0x105   : > { %v548_v21 = vadd.f32 %v4106_v20, %v4517_v29  ;;  %v596_v22 = vsel %vm564_vm14, %v538_v13, %v580_v18  ;;  %v542_v23 = vpop.f32.mrb[15].mxu0 }
 0x106   : > { %v595_v24 = vsel %vm563_vm15, %v533_v17, %v579_v19  ;;  %v543_v25 = vadd.f32 %v4517_v29, %v542_v23  ;;  %v4553_v29 = vand.u32 127, %v866_v32 }
 0x107   : > { %4133 = vmatprep.mubr.msk.f32.mxu1 %vm610_vm3, %v595_v24  ;;  %vm566_vm1 = vcmp.gt.f32.partialorder %v548_v21, 0.0  ;;  %v582_v26 = vmul.f32 0.01, %v548_v21 }
 0x108   : > { %4134 = vmatmul.mubr.msk.f32.gmra.mrb[12].mxu1 %vm610_vm3, %v596_v22  ;;  %vm565_vm2 = vcmp.gt.f32.partialorder %v543_v25, 0.0  ;;  %v581_v27 = vmul.f32 0.01, %v543_v25  ;;  %v7907_v33 = vcvt.s32.f32 %v4553_v29  ;;  %v4557_v34 = vadd.s32 128, %v4553_v29 }
 0x109   : > { %v598_v28 = vsel %vm566_vm1, %v548_v21, %v582_v26 }
 0x10a   : > { %v597_v30 = vsel %vm565_vm2, %v543_v25, %v581_v27  ;;  %v1054_v35 = vadd.f32 0.5, %v7907_v33  ;;  %v7906_v36 = vcvt.s32.f32 %v4557_v34 }
 0x10b   : > { %4136 = vmatprep.mubr.msk.f32.mxu1 %vm610_vm3, %v597_v30 }
 0x10c   : > { %4137 = vmatmul.mubr.msk.f32.gmra.mrb[14].mxu1 %vm610_vm3, %v598_v28  ;;  %v1056_v37 = vmul.f32 0.0625, %v1054_v35  ;;  %v1055_v38 = vadd.f32 0.5, %v7906_v36 }
 0x10e   : > { %v4564_v39 = vfloor.f32 %v1056_v37  ;;  %v1057_v40 = vmul.f32 0.0625, %v1055_v38 }
 0x110   : > { %1161 = vrot.lane.b32.xlu0 %v4564_v39, %s4381_s14  ;;  %v4568_v41 = vfloor.f32 %v1057_v40 }
 0x112   : > { %1332 = vrot.lane.b32.xlu1 %v4568_v41, %s4382_s15 }
 0x114   : > { %1330 = vrot.lane.b32.xlu0 %v4564_v39, %s4382_s15 }
 0x116   : > { %1501 = vrot.lane.b32.xlu1 %v4568_v41, %s4383_s16 }
 0x118   : > { %1499 = vrot.lane.b32.xlu0 %v4564_v39, %s4383_s16 }
 0x11a   : > { %1670 = vrot.lane.b32.xlu1 %v4568_v41, %s4384_s17 }
 0x11c   : > { %1163 = vrot.lane.b32.xlu0 %v4568_v41, %s4381_s14 }
 0x11e   : > { %1839 = vrot.lane.b32.xlu1 %v4568_v41, %s4385_s18 }
 0x120   : > { %1668 = vrot.lane.b32.xlu0 %v4564_v39, %s4384_s17 }
 0x122   : > { %2008 = vrot.lane.b32.xlu1 %v4568_v41, %s4386_s19 }
 0x124   : > { %1837 = vrot.lane.b32.xlu0 %v4564_v39, %s4385_s18 }
 0x126   : > { %2177 = vrot.lane.b32.xlu1 %v4568_v41, %s4387_s20 }
 0x128   : > { %2006 = vrot.lane.b32.xlu0 %v4564_v39, %s4386_s19 }
 0x12a   : > { %2346 = vrot.lane.b32.xlu1 %v4568_v41, %s4388_s21 }
 0x12c   : > { %2175 = vrot.lane.b32.xlu0 %v4564_v39, %s4387_s20 }
 0x130   : > { %2344 = vrot.lane.b32.xlu0 %v4564_v39, %s4388_s21 }
 0x1c3   : > { %v4117_v43 = vpop.f32.mrb[0].mxu1 }
 0x1c4   : > { %v731_v44 = vadd.f32 %v4117_v43, %v4603_v42  ;;  %v725_v45 = vpop.f32.mrb[1].mxu1 }
 0x1c5   : > { %v726_v46 = vadd.f32 %v4603_v42, %v725_v45 }
 0x1c6   : > { %vm805_vm4 = vcmp.gt.f32.partialorder %v731_v44, 0.0  ;;  %v821_v47 = vmul.f32 0.01, %v731_v44 }
 0x1c7   : > { %vm804_vm5 = vcmp.gt.f32.partialorder %v726_v46, 0.0  ;;  %v820_v48 = vmul.f32 0.01, %v726_v46  ;;  %v4120_v49 = vpop.f32.mrb[2].mxu1 }
 0x1c8   : > { %v837_v50 = vsel %vm805_vm4, %v731_v44, %v821_v47  ;;  %v741_v51 = vadd.f32 %v4120_v49, %v4603_v42  ;;  %v735_v52 = vpop.f32.mrb[3].mxu1 }
 0x1c9   : > { %v836_v53 = vsel %vm804_vm5, %v726_v46, %v820_v48  ;;  %v736_v54 = vadd.f32 %v4603_v42, %v735_v52 }
 0x1ca   : > { %v852_v55 = vpack.c.bf16 %v837_v50, %v836_v53  ;;  %vm807_vm6 = vcmp.gt.f32.partialorder %v741_v51, 0.0  ;;  %v823_v56 = vmul.f32 0.01, %v741_v51 }
 0x1cb   : > { %vm806_vm7 = vcmp.gt.f32.partialorder %v736_v54, 0.0  ;;  %v822_v57 = vmul.f32 0.01, %v736_v54  ;;  %v4123_v58 = vpop.f32.mrb[4].mxu1 }
 0x1cc   : > { %v839_v59 = vsel %vm807_vm6, %v741_v51, %v823_v56  ;;  %3719 = vmatmul.mubr.msk.bf16.vlgmr.msra.gmra.mrb[16].mxu0 %vm610_vm3, %v852_v55  ;;  %v751_v60 = vadd.f32 %v4123_v58, %v4603_v42  ;;  %v745_v61 = vpop.f32.mrb[5].mxu1 }
 0x1cd   : > { %v838_v62 = vsel %vm806_vm7, %v736_v54, %v822_v57  ;;  %v746_v63 = vadd.f32 %v4603_v42, %v745_v61  ;;  %962 = vmatprep.mubr.bf16.mxu0 %v4380_v31  ;;  %v864_v61 = vld [vmem:[%s7904_s7] sm:$0x3] }
 0x1ce   : > { %v853_v0 = vpack.c.bf16 %v839_v59, %v838_v62  ;;  %vm809_vm8 = vcmp.gt.f32.partialorder %v751_v60, 0.0  ;;  %v825_v1 = vmul.f32 0.01, %v751_v60 }
 0x1cf   : > { %vm808_vm9 = vcmp.gt.f32.partialorder %v746_v63, 0.0  ;;  %v824_v2 = vmul.f32 0.01, %v746_v63  ;;  %v4126_v3 = vpop.f32.mrb[6].mxu1 }
 0x1d0   : > { %v841_v4 = vsel %vm809_vm8, %v751_v60, %v825_v1  ;;  %v761_v5 = vadd.f32 %v4126_v3, %v4603_v42  ;;  %v755_v6 = vpop.f32.mrb[7].mxu1  ;;  %vm1297_vm8 = vcmp.lt.s32.totalorder %v4553_v29, 127 }
 0x1d1   : > { %v840_v7 = vsel %vm808_vm9, %v746_v63, %v824_v2  ;;  %v756_v8 = vadd.f32 %v4603_v42, %v755_v6 }
 0x1d2   : > { %v854_v9 = vpack.c.bf16 %v841_v4, %v840_v7  ;;  %vm811_vm10 = vcmp.gt.f32.partialorder %v761_v5, 0.0  ;;  %v827_v10 = vmul.f32 0.01, %v761_v5 }
 0x1d3   : > { %vm810_vm11 = vcmp.gt.f32.partialorder %v756_v8, 0.0  ;;  %v826_v11 = vmul.f32 0.01, %v756_v8  ;;  %v4129_v12 = vpop.f32.mrb[8].mxu1 }
 0x1d4   : > { %3720 = vmatmul.mubr.msk.bf16.gmra.mrb[20].mxu0 %vm610_vm3, %v853_v0  ;;  %v843_v13 = vsel %vm811_vm10, %v761_v5, %v827_v10  ;;  %v771_v14 = vadd.f32 %v4129_v12, %v4603_v42  ;;  %v765_v15 = vpop.f32.mrb[9].mxu1 }
 0x1d5   : > { %v842_v16 = vsel %vm810_vm11, %v756_v8, %v826_v11  ;;  %972 = vmatprep.mubr.bf16.mxu0 %v4380_v31  ;;  %v766_v17 = vadd.f32 %v4603_v42, %v765_v15  ;;  %vm1466_vm11 = vcmp.lt.s32.totalorder %v4553_v29, 2 }
 0x1d6   : > { %v855_v18 = vpack.c.bf16 %v843_v13, %v842_v16  ;;  %vm813_vm12 = vcmp.gt.f32.partialorder %v771_v14, 0.0  ;;  %v829_v19 = vmul.f32 0.01, %v771_v14 }
 0x1d7   : > { %vm812_vm13 = vcmp.gt.f32.partialorder %v766_v17, 0.0  ;;  %v828_v20 = vmul.f32 0.01, %v766_v17  ;;  %v4132_v21 = vpop.f32.mrb[10].mxu1 }
 0x1d8   : > { %v845_v22 = vsel %vm813_vm12, %v771_v14, %v829_v19  ;;  %v781_v23 = vadd.f32 %v4132_v21, %v4603_v42  ;;  %v775_v24 = vpop.f32.mrb[11].mxu1 }
 0x1d9   : > { %v844_v25 = vsel %vm812_vm13, %v766_v17, %v828_v20  ;;  %v776_v26 = vadd.f32 %v4603_v42, %v775_v24 }
 0x1da   : > { %v856_v27 = vpack.c.bf16 %v845_v22, %v844_v25  ;;  %vm815_vm14 = vcmp.gt.f32.partialorder %v781_v23, 0.0  ;;  %v831_v28 = vmul.f32 0.01, %v781_v23 }
 0x1db   : > { %vm814_vm15 = vcmp.gt.f32.partialorder %v776_v26, 0.0  ;;  %v830_v30 = vmul.f32 0.01, %v776_v26  ;;  %v4135_v35 = vpop.f32.mrb[12].mxu1 }
 0x1dc   : > { %3721 = vmatmul.mubr.msk.bf16.gmra.mrb[24].mxu0 %vm610_vm3, %v854_v9  ;;  %v847_v37 = vsel %vm815_vm14, %v781_v23, %v831_v28  ;;  %v791_v38 = vadd.f32 %v4135_v35, %v4603_v42  ;;  %v785_v40 = vpop.f32.mrb[13].mxu1  ;;  %vm1635_vm14 = vcmp.lt.s32.totalorder %v4553_v29, 126 }
 0x1dd   : > { %982 = vmatprep.mubr.bf16.mxu0 %v4380_v31  ;;  %v846_v43 = vsel %vm814_vm15, %v776_v26, %v830_v30  ;;  %v786_v44 = vadd.f32 %v4603_v42, %v785_v40 }
 0x1de   : > { %v857_v45 = vpack.c.bf16 %v847_v37, %v846_v43  ;;  %vm817_vm1 = vcmp.gt.f32.partialorder %v791_v38, 0.0  ;;  %v833_v46 = vmul.f32 0.01, %v791_v38 }
 0x1df   : > { %vm816_vm2 = vcmp.gt.f32.partialorder %v786_v44, 0.0  ;;  %v832_v47 = vmul.f32 0.01, %v786_v44  ;;  %v4138_v48 = vpop.f32.mrb[14].mxu1 }
 0x1e0   : > { %v849_v49 = vsel %vm817_vm1, %v791_v38, %v833_v46  ;;  %v801_v50 = vadd.f32 %v4138_v48, %v4603_v42  ;;  %v795_v51 = vpop.f32.mrb[15].mxu1 }
 0x1e1   : > { %v848_v52 = vsel %vm816_vm2, %v786_v44, %v832_v47  ;;  %v796_v53 = vadd.f32 %v4603_v42, %v795_v51  ;;  %v4637_v42 = vshrl.u32 %v866_v32, 7  ;;  %vm1804_vm2 = vcmp.lt.s32.totalorder %v4553_v29, 4 }
 0x1e2   : > { %v858_v54 = vpack.c.bf16 %v849_v49, %v848_v52  ;;  %vm819_vm4 = vcmp.gt.f32.partialorder %v801_v50, 0.0  ;;  %v835_v55 = vmul.f32 0.01, %v801_v50 }
 0x1e3   : > { %vm818_vm5 = vcmp.gt.f32.partialorder %v796_v53, 0.0  ;;  %v834_v56 = vmul.f32 0.01, %v796_v53  ;;  %v868_v60 = vsub.s32 0, %v4637_v42  ;;  %v872_v63 = vsub.s32 1, %v4637_v42 }
 0x1e4   : > { %3722 = vmatmul.mubr.msk.bf16.gmra.mrb[28].mxu0 %vm610_vm3, %v855_v18  ;;  %v851_v57 = vsel %vm819_vm4, %v801_v50, %v835_v55 }
 0x1e5   : > { %992 = vmatprep.mubr.bf16.mxu0 %v4380_v31  ;;  %v850_v58 = vsel %vm818_vm5, %v796_v53, %v834_v56  ;;  %v4643_v62 = vrot.slane %v864_v61, %v868_v60 }
 0x1e6   : > { %v859_v59 = vpack.c.bf16 %v851_v57, %v850_v58 }
 0x1ec   : > { %3723 = vmatmul.mubr.msk.bf16.gmra.mrb[32].mxu0 %vm610_vm3, %v856_v27 }
 0x1ed   : > { %1002 = vmatprep.mubr.bf16.mxu0 %v4380_v31 }
 0x1f4   : > { %3724 = vmatmul.mubr.msk.bf16.gmra.mrb[36].mxu0 %vm610_vm3, %v857_v45 }
 0x1f5   : > { %1012 = vmatprep.mubr.bf16.mxu0 %v4380_v31 }
 0x1fc   : > { %3725 = vmatmul.mubr.msk.bf16.gmra.mrb[40].mxu0 %vm610_vm3, %v858_v54 }
 0x1fd   : > { %1022 = vmatprep.mubr.bf16.mxu0 %v4380_v31  ;;  %v4649_v31 = vrot.slane %v864_v61, %v872_v63 }
 0x204   : > { %3726 = vmatmul.mubr.msk.bf16.gmra.mrb[44].mxu0 %vm610_vm3, %v859_v59  ;;  %vm1128_vm3 = vcmp.lt.s32.totalorder %v4553_v29, 1 }
 0x29f   : > { %v954_v0 = vpop.f32.mrb[16].mxu0 }
 0x2a0   : > { %v4647_v1 = vadd.f32 %v954_v0, %v4643_v62  ;;  %v956_v2 = vpop.f32.mrb[17].mxu0 }
 0x2a1   : > { %v958_v3 = vpop.f32.mrb[18].mxu0  ;;  %v4657_v5 = vadd.f32 %v956_v2, %v4649_v31 }
 0x2a2   : > { %v4652_v32 = vadd.f32 %v958_v3, %v4643_v62  ;;  %v960_v4 = vpop.f32.mrb[19].mxu0  ;;  %1064 = vrot.lane.b32.xlu1 %v4647_v1, %s4381_s14 }
 0x2a3   : > { %7959 = vst [vmem:[#allocation3_spill] sm:$0xff] %v4657_v5  ;;  %v4664_v7 = vadd.f32 %v960_v4, %v4649_v31 }
 0x2a4   : > { %7958 = vst [vmem:[#allocation2_spill] sm:$0xff] %v4652_v32  ;;  %1066 = vrot.lane.b32.xlu0 %v4652_v32, %s4381_s14 }
 0x2a5   : > { %7960 = vst [vmem:[#allocation4_spill] sm:$0xff] %v4664_v7 }
 0x2a6   : > { %1096 = vrot.lane.b32.xlu1 %v4657_v5, %s4381_s14 }
 0x2a7   : > { %v964_v6 = vpop.f32.mrb[20].mxu0 }
 0x2a8   : > { %v4667_v8 = vadd.f32 %v964_v6, %v4643_v62  ;;  %v966_v9 = vpop.f32.mrb[21].mxu0 }
 0x2a9   : > { %v968_v10 = vpop.f32.mrb[22].mxu0  ;;  %v4674_v12 = vadd.f32 %v966_v9, %v4649_v31 }
 0x2aa   : > { %7961 = vst [vmem:[#allocation5_spill] sm:$0xff] %v4667_v8  ;;  %v970_v11 = vpop.f32.mrb[23].mxu0  ;;  %1068 = vrot.lane.b32.xlu0 %v4667_v8, %s4381_s14  ;;  %1098 = vrot.lane.b32.xlu1 %v4664_v7, %s4381_s14  ;;  %v4677_v13 = vadd.f32 %v968_v10, %v4643_v62 }
 0x2ab   : > { %7962 = vst [vmem:[#allocation6_spill] sm:$0xff] %v4674_v12  ;;  %v4684_v15 = vadd.f32 %v970_v11, %v4649_v31 }
 0x2ac   : > { %7963 = vst [vmem:[#allocation7_spill] sm:$0xff] %v4677_v13 }
 0x2ad   : > { %7964 = vst [vmem:[#allocation8_spill] sm:$0xff] %v4684_v15 }
 0x2ae   : > { %1070 = vrot.lane.b32.xlu0 %v4677_v13, %s4381_s14  ;;  %1100 = vrot.lane.b32.xlu1 %v4674_v12, %s4381_s14 }
 0x2af   : > { %v974_v14 = vpop.f32.mrb[24].mxu0 }
 0x2b0   : > { %v4687_v16 = vadd.f32 %v974_v14, %v4643_v62  ;;  %v976_v17 = vpop.f32.mrb[25].mxu0 }
 0x2b1   : > { %v978_v18 = vpop.f32.mrb[26].mxu0  ;;  %v4694_v20 = vadd.f32 %v976_v17, %v4649_v31  ;;  %v1162_v17 = vpop.permute.xlu0 %1161 }
 0x2b2   : > { %7965 = vst [vmem:[#allocation9_spill] sm:$0xff] %v4687_v16  ;;  %v980_v19 = vpop.f32.mrb[27].mxu0  ;;  %1072 = vrot.lane.b32.xlu0 %v4687_v16, %s4381_s14  ;;  %1102 = vrot.lane.b32.xlu1 %v4684_v15, %s4381_s14  ;;  %v4697_v21 = vadd.f32 %v978_v18, %v4643_v62  ;;  %v4808_v18 = vpop.permute.xlu1 %1332 }
 0x2b3   : > { %7966 = vst [vmem:[#allocation10_spill] sm:$0xff] %v4694_v20  ;;  %v4704_v23 = vadd.f32 %v980_v19, %v4649_v31 }
 0x2b4   : > { %7967 = vst [vmem:[#allocation11_spill] sm:$0xff] %v4697_v21 }
 0x2b5   : > { %7968 = vst [vmem:[#allocation12_spill] sm:$0xff] %v4704_v23  ;;  %v4810_v19 = vpop.permute.xlu0 %1330 }
 0x2b6   : > { %1074 = vrot.lane.b32.xlu0 %v4697_v21, %s4381_s14  ;;  %1104 = vrot.lane.b32.xlu1 %v4694_v20, %s4381_s14 }
 0x2b7   : > { %v984_v22 = vpop.f32.mrb[28].mxu0 }
 0x2b8   : > { %v4707_v24 = vadd.f32 %v984_v22, %v4643_v62  ;;  %v986_v25 = vpop.f32.mrb[29].mxu0  ;;  %v4812_v22 = vpop.permute.xlu1 %1501 }
 0x2b9   : > { %v988_v26 = vpop.f32.mrb[30].mxu0  ;;  %v4714_v28 = vadd.f32 %v986_v25, %v4649_v31 }
 0x2ba   : > { %7969 = vst [vmem:[#allocation13_spill] sm:$0xff] %v4707_v24  ;;  %v990_v27 = vpop.f32.mrb[31].mxu0  ;;  %1076 = vrot.lane.b32.xlu0 %v4707_v24, %s4381_s14  ;;  %1106 = vrot.lane.b32.xlu1 %v4704_v23, %s4381_s14  ;;  %v4717_v30 = vadd.f32 %v988_v26, %v4643_v62 }
 0x2bb   : > { %7970 = vst [vmem:[#allocation14_spill] sm:$0xff] %v4714_v28  ;;  %v4724_v37 = vadd.f32 %v990_v27, %v4649_v31 }
 0x2bc   : > { %7971 = vst [vmem:[#allocation15_spill] sm:$0xff] %v4717_v30  ;;  %v4816_v25 = vpop.permute.xlu1 %1670 }
 0x2bd   : > { %7972 = vst [vmem:[#allocation16_spill] sm:$0xff] %v4724_v37 }
 0x2be   : > { %1078 = vrot.lane.b32.xlu0 %v4717_v30, %s4381_s14  ;;  %1108 = vrot.lane.b32.xlu1 %v4714_v28, %s4381_s14 }
 0x2bf   : > { %v994_v35 = vpop.f32.mrb[32].mxu0 }
 0x2c0   : > { %v4727_v38 = vadd.f32 %v994_v35, %v4643_v62  ;;  %v996_v40 = vpop.f32.mrb[33].mxu0  ;;  %v4820_v35 = vpop.permute.xlu1 %1839 }
 0x2c1   : > { %v998_v43 = vpop.f32.mrb[34].mxu0  ;;  %v4734_v45 = vadd.f32 %v996_v40, %v4649_v31 }
 0x2c2   : > { %7973 = vst [vmem:[#allocation17_spill] sm:$0xff] %v4727_v38  ;;  %v1000_v44 = vpop.f32.mrb[35].mxu0  ;;  %1080 = vrot.lane.b32.xlu0 %v4727_v38, %s4381_s14  ;;  %1110 = vrot.lane.b32.xlu1 %v4724_v37, %s4381_s14  ;;  %v4737_v46 = vadd.f32 %v998_v43, %v4643_v62 }
 0x2c3   : > { %7974 = vst [vmem:[#allocation18_spill] sm:$0xff] %v4734_v45  ;;  %v4744_v48 = vadd.f32 %v1000_v44, %v4649_v31 }
 0x2c4   : > { %7975 = vst [vmem:[#allocation19_spill] sm:$0xff] %v4737_v46  ;;  %v4824_v40 = vpop.permute.xlu1 %2008 }
 0x2c5   : > { %7976 = vst [vmem:[#allocation20_spill] sm:$0xff] %v4744_v48 }
 0x2c6   : > { %1082 = vrot.lane.b32.xlu0 %v4737_v46, %s4381_s14  ;;  %1112 = vrot.lane.b32.xlu1 %v4734_v45, %s4381_s14 }
 0x2c7   : > { %v1004_v47 = vpop.f32.mrb[36].mxu0 }
 0x2c8   : > { %v4747_v49 = vadd.f32 %v1004_v47, %v4643_v62  ;;  %v1006_v50 = vpop.f32.mrb[37].mxu0  ;;  %v4828_v44 = vpop.permute.xlu1 %2177 }
 0x2c9   : > { %v1008_v51 = vpop.f32.mrb[38].mxu0  ;;  %v4754_v53 = vadd.f32 %v1006_v50, %v4649_v31 }
 0x2ca   : > { %7977 = vst [vmem:[#allocation21_spill] sm:$0xff] %v4747_v49  ;;  %v1010_v52 = vpop.f32.mrb[39].mxu0  ;;  %1084 = vrot.lane.b32.xlu0 %v4747_v49, %s4381_s14  ;;  %1114 = vrot.lane.b32.xlu1 %v4744_v48, %s4381_s14  ;;  %v4757_v54 = vadd.f32 %v1008_v51, %v4643_v62 }
 0x2cb   : > { %7978 = vst [vmem:[#allocation22_spill] sm:$0xff] %v4754_v53  ;;  %v4764_v56 = vadd.f32 %v1010_v52, %v4649_v31 }
 0x2cc   : > { %7979 = vst [vmem:[#allocation23_spill] sm:$0xff] %v4757_v54  ;;  %v4832_v50 = vpop.permute.xlu1 %2346 }
 0x2cd   : > { %7980 = vst [vmem:[#allocation24_spill] sm:$0xff] %v4764_v56 }
 0x2ce   : > { %1086 = vrot.lane.b32.xlu0 %v4757_v54, %s4381_s14  ;;  %1116 = vrot.lane.b32.xlu1 %v4754_v53, %s4381_s14 }
 0x2cf   : > { %v1014_v55 = vpop.f32.mrb[40].mxu0 }
 0x2d0   : > { %v4767_v57 = vadd.f32 %v1014_v55, %v4643_v62  ;;  %v1016_v58 = vpop.f32.mrb[41].mxu0 }
 0x2d1   : > { %v1018_v59 = vpop.f32.mrb[42].mxu0  ;;  %v4774_v61 = vadd.f32 %v1016_v58, %v4649_v31 }
 0x2d2   : > { %7981 = vst [vmem:[#allocation25_spill] sm:$0xff] %v4767_v57  ;;  %v1020_v60 = vpop.f32.mrb[43].mxu0  ;;  %1088 = vrot.lane.b32.xlu0 %v4767_v57, %s4381_s14  ;;  %1118 = vrot.lane.b32.xlu1 %v4764_v56, %s4381_s14  ;;  %v4777_v63 = vadd.f32 %v1018_v59, %v4643_v62 }
 0x2d3   : > { %7982 = vst [vmem:[#allocation26_spill] sm:$0xff] %v4774_v61  ;;  %v4784_v2 = vadd.f32 %v1020_v60, %v4649_v31 }
 0x2d4   : > { %7983 = vst [vmem:[#allocation27_spill] sm:$0xff] %v4777_v63 }
 0x2d5   : > { %7984 = vst [vmem:[#allocation28_spill] sm:$0xff] %v4784_v2 }
 0x2d6   : > { %1090 = vrot.lane.b32.xlu0 %v4777_v63, %s4381_s14  ;;  %1120 = vrot.lane.b32.xlu1 %v4774_v61, %s4381_s14 }
 0x2d7   : > { %v1024_v0 = vpop.f32.mrb[44].mxu0 }
 0x2d8   : > { %v4787_v3 = vadd.f32 %v1024_v0, %v4643_v62  ;;  %v1026_v4 = vpop.f32.mrb[45].mxu0 }
 0x2d9   : > { %v1028_v6 = vpop.f32.mrb[46].mxu0  ;;  %v4794_v10 = vadd.f32 %v1026_v4, %v4649_v31 }
 0x2da   : > { %7985 = vst [vmem:[#allocation29_spill] sm:$0xff] %v4787_v3  ;;  %v1030_v9 = vpop.f32.mrb[47].mxu0  ;;  %1092 = vrot.lane.b32.xlu0 %v4787_v3, %s4381_s14  ;;  %1122 = vrot.lane.b32.xlu1 %v4784_v2, %s4381_s14  ;;  %v4797_v11 = vadd.f32 %v1028_v6, %v4643_v62  ;;  %v4814_v62 = vpop.permute.xlu0 %1499 }
 0x2db   : > { %7986 = vst [vmem:[#allocation30_spill] sm:$0xff] %v4794_v10  ;;  %v4804_v14 = vadd.f32 %v1030_v9, %v4649_v31 }
 0x2dc   : > { %7987 = vst [vmem:[#allocation31_spill] sm:$0xff] %v4797_v11 }
 0x2dd   : > { %7988 = vst [vmem:[#allocation32_spill] sm:$0xff] %v4804_v14 }
 0x2de   : > { %1094 = vrot.lane.b32.xlu0 %v4797_v11, %s4381_s14  ;;  %1124 = vrot.lane.b32.xlu1 %v4794_v10, %s4381_s14  ;;  %v1164_v26 = vpop.permute.xlu0 %1163 }
 0x2df   : > { %v1165_v55 = vsel %vm1128_vm3, %v1162_v17, %v1164_v26  ;;  %v1166_v58 = vsel %vm1128_vm3, %v1164_v26, %v1162_v17 }
 0x2e0   : > { %vm4842_vm6 = vcmp.eq.f32.partialorder %v1166_v58, %v4564_v39  ;;  %vm4847_vm7 = vcmp.eq.f32.partialorder %v1165_v55, %v4568_v41 }
 0x2e2   : > { %1126 = vrot.lane.b32.xlu1 %v4804_v14, %s4381_s14  ;;  %v4818_v27 = vpop.permute.xlu0 %1668 }
 0x2e6   : > { %v4822_v31 = vpop.permute.xlu0 %1837 }
 0x2ea   : > { %v4826_v43 = vpop.permute.xlu0 %2006 }
 0x2ee   : > { %v4830_v47 = vpop.permute.xlu0 %2175 }
 0x2f2   : > { %v4835_v51 = vpop.permute.xlu0 %2344 }
 0x2f3   : > { %7989 = vst [vmem:[#allocation33_spill] sm:$0xff] %v4835_v51 }
 0x314   : > { %v1065_v52 = vpop.permute.xlu1 %1064 }
 0x316   : > { %v1067_v59 = vpop.permute.xlu0 %1066 }
 0x318   : > { %v1097_v60 = vpop.permute.xlu1 %1096 }
 0x319   : > { %v1129_v6 = vsel %vm1128_vm3, %v1065_v52, %v1097_v60  ;;  %v1145_v9 = vsel %vm1128_vm3, %v1097_v60, %v1065_v52 }
 0x31a   : > { %v1169_v17 = vsel %vm4842_vm6, %v1145_v9, -inf  ;;  %v1170_v26 = vsel %vm4847_vm7, %v1129_v6, -inf }
 0x31b   : > { %v4860_v58 = vmax.f32 %v4647_v1, %v1169_v17  ;;  %v4863_v55 = vmax.f32 %v4657_v5, %v1170_v26 }
 0x31c   : > { %v1069_v36 = vpop.permute.xlu0 %1068  ;;  %v1099_v33 = vpop.permute.xlu1 %1098 }
 0x31d   : > { %v1130_v51 = vsel %vm1128_vm3, %v1067_v59, %v1099_v33  ;;  %v1146_v52 = vsel %vm1128_vm3, %v1099_v33, %v1067_v59  ;;  %1233 = vrot.lane.b32.xlu0 %v4860_v58, %s4382_s15  ;;  %1265 = vrot.lane.b32.xlu1 %v4863_v55, %s4382_s15 }
 0x31e   : > { %v1171_v60 = vsel %vm4842_vm6, %v1146_v52, -inf  ;;  %v1172_v6 = vsel %vm4847_vm7, %v1130_v51, -inf }
 0x31f   : > { %v4878_v9 = vmax.f32 %v4652_v32, %v1171_v60  ;;  %v4881_v17 = vmax.f32 %v4664_v7, %v1172_v6 }
 0x320   : > { %v1071_v26 = vpop.permute.xlu0 %1070  ;;  %v1101_v33 = vpop.permute.xlu1 %1100 }
 0x321   : > { %v1131_v59 = vsel %vm1128_vm3, %v1069_v36, %v1101_v33  ;;  %v1147_v5 = vsel %vm1128_vm3, %v1101_v33, %v1069_v36  ;;  %1235 = vrot.lane.b32.xlu0 %v4878_v9, %s4382_s15  ;;  %1267 = vrot.lane.b32.xlu1 %v4881_v17, %s4382_s15 }
 0x322   : > { %v1173_v51 = vsel %vm4842_vm6, %v1147_v5, -inf  ;;  %v1174_v52 = vsel %vm4847_vm7, %v1131_v59, -inf }
 0x323   : > { %v4896_v60 = vmax.f32 %v4667_v8, %v1173_v51  ;;  %v4899_v6 = vmax.f32 %v4674_v12, %v1174_v52 }
 0x324   : > { %v1073_v7 = vpop.permute.xlu0 %1072  ;;  %v1103_v36 = vpop.permute.xlu1 %1102 }
 0x325   : > { %v1132_v33 = vsel %vm1128_vm3, %v1071_v26, %v1103_v36  ;;  %v1148_v32 = vsel %vm1128_vm3, %v1103_v36, %v1071_v26  ;;  %1237 = vrot.lane.b32.xlu0 %v4896_v60, %s4382_s15  ;;  %1269 = vrot.lane.b32.xlu1 %v4899_v6, %s4382_s15 }
 0x326   : > { %v1175_v5 = vsel %vm4842_vm6, %v1148_v32, -inf  ;;  %v1176_v59 = vsel %vm4847_vm7, %v1132_v33, -inf }
 0x327   : > { %v4914_v51 = vmax.f32 %v4677_v13, %v1175_v5  ;;  %v4917_v52 = vmax.f32 %v4684_v15, %v1176_v59 }
 0x328   : > { %v1075_v12 = vpop.permute.xlu0 %1074  ;;  %v1105_v26 = vpop.permute.xlu1 %1104 }
 0x329   : > { %v1133_v36 = vsel %vm1128_vm3, %v1073_v7, %v1105_v26  ;;  %v1149_v8 = vsel %vm1128_vm3, %v1105_v26, %v1073_v7  ;;  %1239 = vrot.lane.b32.xlu0 %v4914_v51, %s4382_s15  ;;  %1271 = vrot.lane.b32.xlu1 %v4917_v52, %s4382_s15 }
 0x32a   : > { %v1177_v32 = vsel %vm4842_vm6, %v1149_v8, -inf  ;;  %v1178_v33 = vsel %vm4847_vm7, %v1133_v36, -inf }
 0x32b   : > { %v4932_v5 = vmax.f32 %v4687_v16, %v1177_v32  ;;  %v4935_v59 = vmax.f32 %v4694_v20, %v1178_v33 }
 0x32c   : > { %v1077_v15 = vpop.permute.xlu0 %1076  ;;  %v1107_v7 = vpop.permute.xlu1 %1106 }
 0x32d   : > { %v1134_v26 = vsel %vm1128_vm3, %v1075_v12, %v1107_v7  ;;  %v1150_v13 = vsel %vm1128_vm3, %v1107_v7, %v1075_v12  ;;  %1241 = vrot.lane.b32.xlu0 %v4932_v5, %s4382_s15  ;;  %1273 = vrot.lane.b32.xlu1 %v4935_v59, %s4382_s15 }
 0x32e   : > { %v1179_v8 = vsel %vm4842_vm6, %v1150_v13, -inf  ;;  %v1180_v36 = vsel %vm4847_vm7, %v1134_v26, -inf }
 0x32f   : > { %v4950_v32 = vmax.f32 %v4697_v21, %v1179_v8  ;;  %v4953_v33 = vmax.f32 %v4704_v23, %v1180_v36 }
 0x330   : > { %v1079_v20 = vpop.permute.xlu0 %1078  ;;  %v1109_v12 = vpop.permute.xlu1 %1108 }
 0x331   : > { %v1135_v7 = vsel %vm1128_vm3, %v1077_v15, %v1109_v12  ;;  %v1151_v16 = vsel %vm1128_vm3, %v1109_v12, %v1077_v15  ;;  %1243 = vrot.lane.b32.xlu0 %v4950_v32, %s4382_s15  ;;  %1275 = vrot.lane.b32.xlu1 %v4953_v33, %s4382_s15 }
 0x332   : > { %v1181_v13 = vsel %vm4842_vm6, %v1151_v16, -inf  ;;  %v1182_v26 = vsel %vm4847_vm7, %v1135_v7, -inf }
 0x333   : > { %v4968_v8 = vmax.f32 %v4707_v24, %v1181_v13  ;;  %v4971_v36 = vmax.f32 %v4714_v28, %v1182_v26 }
 0x334   : > { %v1081_v23 = vpop.permute.xlu0 %1080  ;;  %v1111_v15 = vpop.permute.xlu1 %1110 }
 0x335   : > { %v1136_v12 = vsel %vm1128_vm3, %v1079_v20, %v1111_v15  ;;  %v1152_v21 = vsel %vm1128_vm3, %v1111_v15, %v1079_v20  ;;  %1245 = vrot.lane.b32.xlu0 %v4968_v8, %s4382_s15  ;;  %1277 = vrot.lane.b32.xlu1 %v4971_v36, %s4382_s15 }
 0x336   : > { %v1183_v16 = vsel %vm4842_vm6, %v1152_v21, -inf  ;;  %v1184_v7 = vsel %vm4847_vm7, %v1136_v12, -inf }
 0x337   : > { %v4986_v13 = vmax.f32 %v4717_v30, %v1183_v16  ;;  %v4989_v26 = vmax.f32 %v4724_v37, %v1184_v7 }
 0x338   : > { %v1083_v28 = vpop.permute.xlu0 %1082  ;;  %v1113_v20 = vpop.permute.xlu1 %1112 }
 0x339   : > { %v1137_v15 = vsel %vm1128_vm3, %v1081_v23, %v1113_v20  ;;  %v1153_v24 = vsel %vm1128_vm3, %v1113_v20, %v1081_v23  ;;  %1247 = vrot.lane.b32.xlu0 %v4986_v13, %s4382_s15  ;;  %1279 = vrot.lane.b32.xlu1 %v4989_v26, %s4382_s15 }
 0x33a   : > { %v1185_v21 = vsel %vm4842_vm6, %v1153_v24, -inf  ;;  %v1186_v12 = vsel %vm4847_vm7, %v1137_v15, -inf }
 0x33b   : > { %v5004_v16 = vmax.f32 %v4727_v38, %v1185_v21  ;;  %v5007_v7 = vmax.f32 %v4734_v45, %v1186_v12 }
 0x33c   : > { %v1085_v37 = vpop.permute.xlu0 %1084  ;;  %v1115_v23 = vpop.permute.xlu1 %1114 }
 0x33d   : > { %v1138_v20 = vsel %vm1128_vm3, %v1083_v28, %v1115_v23  ;;  %v1154_v30 = vsel %vm1128_vm3, %v1115_v23, %v1083_v28  ;;  %1249 = vrot.lane.b32.xlu0 %v5004_v16, %s4382_s15  ;;  %1281 = vrot.lane.b32.xlu1 %v5007_v7, %s4382_s15 }
 0x33e   : > { %v1187_v24 = vsel %vm4842_vm6, %v1154_v30, -inf  ;;  %v1188_v15 = vsel %vm4847_vm7, %v1138_v20, -inf }
 0x33f   : > { %v5022_v21 = vmax.f32 %v4737_v46, %v1187_v24  ;;  %v5025_v12 = vmax.f32 %v4744_v48, %v1188_v15 }
 0x340   : > { %v1087_v45 = vpop.permute.xlu0 %1086  ;;  %v1117_v28 = vpop.permute.xlu1 %1116 }
 0x341   : > { %v1139_v23 = vsel %vm1128_vm3, %v1085_v37, %v1117_v28  ;;  %v1155_v38 = vsel %vm1128_vm3, %v1117_v28, %v1085_v37  ;;  %1251 = vrot.lane.b32.xlu0 %v5022_v21, %s4382_s15  ;;  %1283 = vrot.lane.b32.xlu1 %v5025_v12, %s4382_s15 }
 0x342   : > { %v1189_v30 = vsel %vm4842_vm6, %v1155_v38, -inf  ;;  %v1190_v20 = vsel %vm4847_vm7, %v1139_v23, -inf }
 0x343   : > { %v5040_v24 = vmax.f32 %v4747_v49, %v1189_v30  ;;  %v5043_v15 = vmax.f32 %v4754_v53, %v1190_v20 }
 0x344   : > { %v1089_v48 = vpop.permute.xlu0 %1088  ;;  %v1119_v37 = vpop.permute.xlu1 %1118 }
 0x345   : > { %v1140_v28 = vsel %vm1128_vm3, %v1087_v45, %v1119_v37  ;;  %v1156_v46 = vsel %vm1128_vm3, %v1119_v37, %v1087_v45  ;;  %1253 = vrot.lane.b32.xlu0 %v5040_v24, %s4382_s15  ;;  %1285 = vrot.lane.b32.xlu1 %v5043_v15, %s4382_s15 }
 0x346   : > { %v1191_v38 = vsel %vm4842_vm6, %v1156_v46, -inf  ;;  %v1192_v23 = vsel %vm4847_vm7, %v1140_v28, -inf }
 0x347   : > { %v5058_v30 = vmax.f32 %v4757_v54, %v1191_v38  ;;  %v5061_v20 = vmax.f32 %v4764_v56, %v1192_v23 }
 0x348   : > { %v1091_v53 = vpop.permute.xlu0 %1090  ;;  %v1121_v45 = vpop.permute.xlu1 %1120 }
 0x349   : > { %v1141_v37 = vsel %vm1128_vm3, %v1089_v48, %v1121_v45  ;;  %v1157_v49 = vsel %vm1128_vm3, %v1121_v45, %v1089_v48  ;;  %1255 = vrot.lane.b32.xlu0 %v5058_v30, %s4382_s15  ;;  %1287 = vrot.lane.b32.xlu1 %v5061_v20, %s4382_s15 }
 0x34a   : > { %v1193_v46 = vsel %vm4842_vm6, %v1157_v49, -inf  ;;  %v1194_v28 = vsel %vm4847_vm7, %v1141_v37, -inf }
 0x34b   : > { %v5076_v38 = vmax.f32 %v4767_v57, %v1193_v46  ;;  %v5079_v23 = vmax.f32 %v4774_v61, %v1194_v28 }
 0x34c   : > { %v1123_v56 = vpop.permute.xlu1 %1122  ;;  %v1093_v49 = vpop.permute.xlu0 %1092 }
 0x34d   : > { %v1142_v48 = vsel %vm1128_vm3, %v1091_v53, %v1123_v56  ;;  %v1158_v45 = vsel %vm1128_vm3, %v1123_v56, %v1091_v53  ;;  %1257 = vrot.lane.b32.xlu0 %v5076_v38, %s4382_s15  ;;  %1289 = vrot.lane.b32.xlu1 %v5079_v23, %s4382_s15 }
 0x34e   : > { %v1195_v37 = vsel %vm4842_vm6, %v1158_v45, -inf  ;;  %v1196_v46 = vsel %vm4847_vm7, %v1142_v48, -inf }
 0x34f   : > { %v5094_v28 = vmax.f32 %v4777_v63, %v1195_v37  ;;  %v5097_v61 = vmax.f32 %v4784_v2, %v1196_v46 }
 0x350   : > { %v1125_v53 = vpop.permute.xlu1 %1124  ;;  %v1095_v2 = vpop.permute.xlu0 %1094 }
 0x351   : > { %v1143_v56 = vsel %vm1128_vm3, %v1093_v49, %v1125_v53  ;;  %v1159_v57 = vsel %vm1128_vm3, %v1125_v53, %v1093_v49  ;;  %1259 = vrot.lane.b32.xlu0 %v5094_v28, %s4382_s15  ;;  %1291 = vrot.lane.b32.xlu1 %v5097_v61, %s4382_s15 }
 0x352   : > { %v1197_v48 = vsel %vm4842_vm6, %v1159_v57, -inf  ;;  %v1198_v45 = vsel %vm4847_vm7, %v1143_v56, -inf }
 0x353   : > { %v5112_v37 = vmax.f32 %v4787_v3, %v1197_v48  ;;  %v5115_v46 = vmax.f32 %v4794_v10, %v1198_v45 }
 0x354   : > { %v1127_v49 = vpop.permute.xlu1 %1126 }
 0x355   : > { %v1144_v53 = vsel %vm1128_vm3, %v1095_v2, %v1127_v49  ;;  %v1160_v63 = vsel %vm1128_vm3, %v1127_v49, %v1095_v2  ;;  %1261 = vrot.lane.b32.xlu0 %v5112_v37, %s4382_s15  ;;  %1293 = vrot.lane.b32.xlu1 %v5115_v46, %s4382_s15  ;;  %v1335_v2 = vsel %vm1297_vm8, %v4808_v18, %v4810_v19 }
 0x356   : > { %v1199_v57 = vsel %vm4842_vm6, %v1160_v63, -inf  ;;  %v1200_v56 = vsel %vm4847_vm7, %v1144_v53, -inf  ;;  %v1334_v63 = vsel %vm1297_vm8, %v4810_v19, %v4808_v18  ;;  %vm5154_vm10 = vcmp.eq.f32.partialorder %v1335_v2, %v4568_v41 }
 0x357   : > { %v5130_v48 = vmax.f32 %v4797_v11, %v1199_v57  ;;  %v5133_v45 = vmax.f32 %v4804_v14, %v1200_v56  ;;  %vm5149_vm9 = vcmp.eq.f32.partialorder %v1334_v63, %v4564_v39  ;;  %v1503_v49 = vsel %vm1466_vm11, %v4814_v62, %v4812_v22 }
 0x358   : > { %vm5461_vm13 = vcmp.eq.f32.partialorder %v1503_v49, %v4568_v41 }
 0x359   : > { %1263 = vrot.lane.b32.xlu0 %v5130_v48, %s4382_s15  ;;  %1295 = vrot.lane.b32.xlu1 %v5133_v45, %s4382_s15 }
 0x38f   : > { %v1234_v0 = vpop.permute.xlu0 %1233  ;;  %v1266_v4 = vpop.permute.xlu1 %1265 }
 0x390   : > { %v1298_v57 = vsel %vm1297_vm8, %v1234_v0, %v1266_v4  ;;  %v1314_v56 = vsel %vm1297_vm8, %v1266_v4, %v1234_v0 }
 0x391   : > { %v1338_v18 = vsel %vm5149_vm9, %v1298_v57, -inf  ;;  %v1339_v19 = vsel %vm5154_vm10, %v1314_v56, -inf }
 0x392   : > { %v5167_v63 = vmax.f32 %v4863_v55, %v1339_v19  ;;  %v5170_v2 = vmax.f32 %v4860_v58, %v1338_v18 }
 0x393   : > { %v1236_v14 = vpop.permute.xlu0 %1235  ;;  %v1268_v11 = vpop.permute.xlu1 %1267 }
 0x394   : > { %v1299_v10 = vsel %vm1297_vm8, %v1236_v14, %v1268_v11  ;;  %v1315_v0 = vsel %vm1297_vm8, %v1268_v11, %v1236_v14  ;;  %1434 = vrot.lane.b32.xlu1 %v5167_v63, %s4383_s16  ;;  %1402 = vrot.lane.b32.xlu0 %v5170_v2, %s4383_s16 }
 0x395   : > { %v1340_v55 = vsel %vm5149_vm9, %v1299_v10, -inf  ;;  %v1341_v58 = vsel %vm5154_vm10, %v1315_v0, -inf }
 0x396   : > { %v5185_v4 = vmax.f32 %v4881_v17, %v1341_v58  ;;  %v5188_v57 = vmax.f32 %v4878_v9, %v1340_v55 }
 0x397   : > { %v1238_v56 = vpop.permute.xlu0 %1237  ;;  %v1270_v11 = vpop.permute.xlu1 %1269 }
 0x398   : > { %v1300_v14 = vsel %vm1297_vm8, %v1238_v56, %v1270_v11  ;;  %v1316_v18 = vsel %vm1297_vm8, %v1270_v11, %v1238_v56  ;;  %1436 = vrot.lane.b32.xlu1 %v5185_v4, %s4383_s16  ;;  %1404 = vrot.lane.b32.xlu0 %v5188_v57, %s4383_s16 }
 0x399   : > { %v1342_v10 = vsel %vm5149_vm9, %v1300_v14, -inf  ;;  %v1343_v9 = vsel %vm5154_vm10, %v1316_v18, -inf }
 0x39a   : > { %v5203_v17 = vmax.f32 %v4899_v6, %v1343_v9  ;;  %v5206_v19 = vmax.f32 %v4896_v60, %v1342_v10 }
 0x39b   : > { %v1240_v0 = vpop.permute.xlu0 %1239  ;;  %v1272_v55 = vpop.permute.xlu1 %1271 }
 0x39c   : > { %v1301_v58 = vsel %vm1297_vm8, %v1240_v0, %v1272_v55  ;;  %v1317_v56 = vsel %vm1297_vm8, %v1272_v55, %v1240_v0  ;;  %1438 = vrot.lane.b32.xlu1 %v5203_v17, %s4383_s16  ;;  %1406 = vrot.lane.b32.xlu0 %v5206_v19, %s4383_s16 }
 0x39d   : > { %v1344_v6 = vsel %vm5149_vm9, %v1301_v58, -inf  ;;  %v1345_v60 = vsel %vm5154_vm10, %v1317_v56, -inf }
 0x39e   : > { %v5221_v11 = vmax.f32 %v4917_v52, %v1345_v60  ;;  %v5224_v14 = vmax.f32 %v4914_v51, %v1344_v6 }
 0x39f   : > { %v1242_v18 = vpop.permute.xlu0 %1241  ;;  %v1274_v10 = vpop.permute.xlu1 %1273 }
 0x3a0   : > { %v1302_v9 = vsel %vm1297_vm8, %v1242_v18, %v1274_v10  ;;  %v1318_v0 = vsel %vm1297_vm8, %v1274_v10, %v1242_v18  ;;  %1440 = vrot.lane.b32.xlu1 %v5221_v11, %s4383_s16  ;;  %1408 = vrot.lane.b32.xlu0 %v5224_v14, %s4383_s16 }
 0x3a1   : > { %v1346_v52 = vsel %vm5149_vm9, %v1302_v9, -inf  ;;  %v1347_v51 = vsel %vm5154_vm10, %v1318_v0, -inf }
 0x3a2   : > { %v5239_v55 = vmax.f32 %v4935_v59, %v1347_v51  ;;  %v5242_v58 = vmax.f32 %v4932_v5, %v1346_v52 }
 0x3a3   : > { %v1244_v56 = vpop.permute.xlu0 %1243  ;;  %v1276_v6 = vpop.permute.xlu1 %1275 }
 0x3a4   : > { %v1303_v60 = vsel %vm1297_vm8, %v1244_v56, %v1276_v6  ;;  %v1319_v18 = vsel %vm1297_vm8, %v1276_v6, %v1244_v56  ;;  %1442 = vrot.lane.b32.xlu1 %v5239_v55, %s4383_s16  ;;  %1410 = vrot.lane.b32.xlu0 %v5242_v58, %s4383_s16 }
 0x3a5   : > { %v1348_v59 = vsel %vm5149_vm9, %v1303_v60, -inf  ;;  %v1349_v5 = vsel %vm5154_vm10, %v1319_v18, -inf }
 0x3a6   : > { %v5257_v10 = vmax.f32 %v4953_v33, %v1349_v5  ;;  %v5260_v9 = vmax.f32 %v4950_v32, %v1348_v59 }
 0x3a7   : > { %v1246_v0 = vpop.permute.xlu0 %1245  ;;  %v1278_v52 = vpop.permute.xlu1 %1277 }
 0x3a8   : > { %v1304_v51 = vsel %vm1297_vm8, %v1246_v0, %v1278_v52  ;;  %v1320_v56 = vsel %vm1297_vm8, %v1278_v52, %v1246_v0  ;;  %1444 = vrot.lane.b32.xlu1 %v5257_v10, %s4383_s16  ;;  %1412 = vrot.lane.b32.xlu0 %v5260_v9, %s4383_s16 }
 0x3a9   : > { %v1350_v33 = vsel %vm5149_vm9, %v1304_v51, -inf  ;;  %v1351_v32 = vsel %vm5154_vm10, %v1320_v56, -inf }
 0x3aa   : > { %v5275_v6 = vmax.f32 %v4971_v36, %v1351_v32  ;;  %v5278_v60 = vmax.f32 %v4968_v8, %v1350_v33 }
 0x3ab   : > { %v1248_v18 = vpop.permute.xlu0 %1247  ;;  %v1280_v59 = vpop.permute.xlu1 %1279 }
 0x3ac   : > { %v1305_v5 = vsel %vm1297_vm8, %v1248_v18, %v1280_v59  ;;  %v1321_v0 = vsel %vm1297_vm8, %v1280_v59, %v1248_v18  ;;  %1446 = vrot.lane.b32.xlu1 %v5275_v6, %s4383_s16  ;;  %1414 = vrot.lane.b32.xlu0 %v5278_v60, %s4383_s16 }
 0x3ad   : > { %v1352_v36 = vsel %vm5149_vm9, %v1305_v5, -inf  ;;  %v1353_v8 = vsel %vm5154_vm10, %v1321_v0, -inf }
 0x3ae   : > { %v5293_v52 = vmax.f32 %v4989_v26, %v1353_v8  ;;  %v5296_v51 = vmax.f32 %v4986_v13, %v1352_v36 }
 0x3af   : > { %v1250_v56 = vpop.permute.xlu0 %1249  ;;  %v1282_v33 = vpop.permute.xlu1 %1281 }
 0x3b0   : > { %v1306_v32 = vsel %vm1297_vm8, %v1250_v56, %v1282_v33  ;;  %v1322_v18 = vsel %vm1297_vm8, %v1282_v33, %v1250_v56  ;;  %1448 = vrot.lane.b32.xlu1 %v5293_v52, %s4383_s16  ;;  %1416 = vrot.lane.b32.xlu0 %v5296_v51, %s4383_s16 }
 0x3b1   : > { %v1354_v26 = vsel %vm5149_vm9, %v1306_v32, -inf  ;;  %v1355_v13 = vsel %vm5154_vm10, %v1322_v18, -inf }
 0x3b2   : > { %v5311_v59 = vmax.f32 %v5007_v7, %v1355_v13  ;;  %v5314_v5 = vmax.f32 %v5004_v16, %v1354_v26 }
 0x3b3   : > { %v1252_v0 = vpop.permute.xlu0 %1251  ;;  %v1284_v36 = vpop.permute.xlu1 %1283 }
 0x3b4   : > { %v1307_v8 = vsel %vm1297_vm8, %v1252_v0, %v1284_v36  ;;  %v1323_v56 = vsel %vm1297_vm8, %v1284_v36, %v1252_v0  ;;  %1450 = vrot.lane.b32.xlu1 %v5311_v59, %s4383_s16  ;;  %1418 = vrot.lane.b32.xlu0 %v5314_v5, %s4383_s16 }
 0x3b5   : > { %v1356_v7 = vsel %vm5149_vm9, %v1307_v8, -inf  ;;  %v1357_v16 = vsel %vm5154_vm10, %v1323_v56, -inf }
 0x3b6   : > { %v5329_v33 = vmax.f32 %v5022_v21, %v1356_v7  ;;  %v5332_v32 = vmax.f32 %v5025_v12, %v1357_v16 }
 0x3b7   : > { %v1254_v18 = vpop.permute.xlu0 %1253  ;;  %v1286_v26 = vpop.permute.xlu1 %1285 }
 0x3b8   : > { %v1308_v13 = vsel %vm1297_vm8, %v1254_v18, %v1286_v26  ;;  %v1324_v0 = vsel %vm1297_vm8, %v1286_v26, %v1254_v18  ;;  %1452 = vrot.lane.b32.xlu1 %v5332_v32, %s4383_s16  ;;  %1420 = vrot.lane.b32.xlu0 %v5329_v33, %s4383_s16 }
 0x3b9   : > { %v1358_v21 = vsel %vm5149_vm9, %v1308_v13, -inf  ;;  %v1359_v12 = vsel %vm5154_vm10, %v1324_v0, -inf }
 0x3ba   : > { %v5347_v36 = vmax.f32 %v5040_v24, %v1358_v21  ;;  %v5350_v8 = vmax.f32 %v5043_v15, %v1359_v12 }
 0x3bb   : > { %v1256_v56 = vpop.permute.xlu0 %1255  ;;  %v1288_v7 = vpop.permute.xlu1 %1287 }
 0x3bc   : > { %v1309_v16 = vsel %vm1297_vm8, %v1256_v56, %v1288_v7  ;;  %v1325_v18 = vsel %vm1297_vm8, %v1288_v7, %v1256_v56  ;;  %1454 = vrot.lane.b32.xlu1 %v5350_v8, %s4383_s16  ;;  %1422 = vrot.lane.b32.xlu0 %v5347_v36, %s4383_s16 }
 0x3bd   : > { %v1360_v24 = vsel %vm5149_vm9, %v1309_v16, -inf  ;;  %v1361_v15 = vsel %vm5154_vm10, %v1325_v18, -inf }
 0x3be   : > { %v5365_v26 = vmax.f32 %v5058_v30, %v1360_v24  ;;  %v5368_v13 = vmax.f32 %v5061_v20, %v1361_v15 }
 0x3bf   : > { %v1258_v0 = vpop.permute.xlu0 %1257  ;;  %v1290_v21 = vpop.permute.xlu1 %1289 }
 0x3c0   : > { %v1310_v12 = vsel %vm1297_vm8, %v1258_v0, %v1290_v21  ;;  %v1326_v56 = vsel %vm1297_vm8, %v1290_v21, %v1258_v0  ;;  %1456 = vrot.lane.b32.xlu1 %v5368_v13, %s4383_s16  ;;  %1424 = vrot.lane.b32.xlu0 %v5365_v26, %s4383_s16 }
 0x3c1   : > { %v1362_v30 = vsel %vm5149_vm9, %v1310_v12, -inf  ;;  %v1363_v20 = vsel %vm5154_vm10, %v1326_v56, -inf }
 0x3c2   : > { %v5383_v7 = vmax.f32 %v5076_v38, %v1362_v30  ;;  %v5386_v16 = vmax.f32 %v5079_v23, %v1363_v20 }
 0x3c3   : > { %v1260_v18 = vpop.permute.xlu0 %1259  ;;  %v1292_v24 = vpop.permute.xlu1 %1291 }
 0x3c4   : > { %v1311_v15 = vsel %vm1297_vm8, %v1260_v18, %v1292_v24  ;;  %v1327_v0 = vsel %vm1297_vm8, %v1292_v24, %v1260_v18  ;;  %1458 = vrot.lane.b32.xlu1 %v5386_v16, %s4383_s16  ;;  %1426 = vrot.lane.b32.xlu0 %v5383_v7, %s4383_s16 }
 0x3c5   : > { %v1364_v38 = vsel %vm5149_vm9, %v1311_v15, -inf  ;;  %v1365_v23 = vsel %vm5154_vm10, %v1327_v0, -inf }
 0x3c6   : > { %v5401_v21 = vmax.f32 %v5094_v28, %v1364_v38  ;;  %v5404_v12 = vmax.f32 %v5097_v61, %v1365_v23 }
 0x3c7   : > { %v1262_v56 = vpop.permute.xlu0 %1261  ;;  %v1294_v30 = vpop.permute.xlu1 %1293 }
 0x3c8   : > { %v1312_v20 = vsel %vm1297_vm8, %v1262_v56, %v1294_v30  ;;  %v1328_v18 = vsel %vm1297_vm8, %v1294_v30, %v1262_v56  ;;  %1460 = vrot.lane.b32.xlu1 %v5404_v12, %s4383_s16  ;;  %1428 = vrot.lane.b32.xlu0 %v5401_v21, %s4383_s16 }
 0x3c9   : > { %v1366_v28 = vsel %vm5149_vm9, %v1312_v20, -inf  ;;  %v1367_v61 = vsel %vm5154_vm10, %v1328_v18, -inf  ;;  %v1672_v18 = vsel %vm1635_vm14, %v4818_v27, %v4816_v25 }
 0x3ca   : > { %v5419_v24 = vmax.f32 %v5112_v37, %v1366_v28  ;;  %v5422_v15 = vmax.f32 %v5115_v46, %v1367_v61  ;;  %vm5763_vm15 = vcmp.eq.f32.partialorder %v1672_v18, %v4564_v39 }
 0x3cb   : > { %v1264_v0 = vpop.permute.xlu0 %1263  ;;  %v1296_v38 = vpop.permute.xlu1 %1295 }
 0x3cc   : > { %v1313_v23 = vsel %vm1297_vm8, %v1264_v0, %v1296_v38  ;;  %v1329_v56 = vsel %vm1297_vm8, %v1296_v38, %v1264_v0  ;;  %1462 = vrot.lane.b32.xlu1 %v5422_v15, %s4383_s16  ;;  %1430 = vrot.lane.b32.xlu0 %v5419_v24, %s4383_s16 }
 0x3cd   : > { %v1368_v37 = vsel %vm5149_vm9, %v1313_v23, -inf  ;;  %v1369_v46 = vsel %vm5154_vm10, %v1329_v56, -inf }
 0x3ce   : > { %v5437_v30 = vmax.f32 %v5130_v48, %v1368_v37  ;;  %v5440_v20 = vmax.f32 %v5133_v45, %v1369_v46  ;;  %v1504_v48 = vsel %vm1466_vm11, %v4812_v22, %v4814_v62 }
 0x3cf   : > { %vm5456_vm12 = vcmp.eq.f32.partialorder %v1504_v48, %v4564_v39 }
 0x3d0   : > { %1464 = vrot.lane.b32.xlu1 %v5440_v20, %s4383_s16  ;;  %1432 = vrot.lane.b32.xlu0 %v5437_v30, %s4383_s16 }
 0x406   : > { %v1403_v45 = vpop.permute.xlu0 %1402  ;;  %v1435_v53 = vpop.permute.xlu1 %1434 }
 0x407   : > { %v1467_v61 = vsel %vm1466_vm11, %v1403_v45, %v1435_v53  ;;  %v1483_v0 = vsel %vm1466_vm11, %v1435_v53, %v1403_v45 }
 0x408   : > { %v1507_v22 = vsel %vm5456_vm12, %v1483_v0, -inf  ;;  %v1508_v62 = vsel %vm5461_vm13, %v1467_v61, -inf }
 0x409   : > { %v5474_v38 = vmax.f32 %v5170_v2, %v1507_v22  ;;  %v5477_v23 = vmax.f32 %v5167_v63, %v1508_v62 }
 0x40a   : > { %v1405_v56 = vpop.permute.xlu0 %1404  ;;  %v1437_v37 = vpop.permute.xlu1 %1436 }
 0x40b   : > { %v1468_v46 = vsel %vm1466_vm11, %v1405_v56, %v1437_v37  ;;  %v1484_v49 = vsel %vm1466_vm11, %v1437_v37, %v1405_v56  ;;  %1571 = vrot.lane.b32.xlu0 %v5474_v38, %s4384_s17  ;;  %1603 = vrot.lane.b32.xlu1 %v5477_v23, %s4384_s17 }
 0x40c   : > { %v1509_v2 = vsel %vm5456_vm12, %v1484_v49, -inf  ;;  %v1510_v63 = vsel %vm5461_vm13, %v1468_v46, -inf }
 0x40d   : > { %v5492_v48 = vmax.f32 %v5188_v57, %v1509_v2  ;;  %v5495_v45 = vmax.f32 %v5185_v4, %v1510_v63 }
 0x40e   : > { %v1407_v53 = vpop.permute.xlu0 %1406  ;;  %v1439_v61 = vpop.permute.xlu1 %1438 }
 0x40f   : > { %v1469_v0 = vsel %vm1466_vm11, %v1407_v53, %v1439_v61  ;;  %v1485_v22 = vsel %vm1466_vm11, %v1439_v61, %v1407_v53  ;;  %1573 = vrot.lane.b32.xlu0 %v5492_v48, %s4384_s17  ;;  %1605 = vrot.lane.b32.xlu1 %v5495_v45, %s4384_s17 }
 0x410   : > { %v1511_v57 = vsel %vm5456_vm12, %v1485_v22, -inf  ;;  %v1512_v4 = vsel %vm5461_vm13, %v1469_v0, -inf }
 0x411   : > { %v5510_v62 = vmax.f32 %v5206_v19, %v1511_v57  ;;  %v5513_v56 = vmax.f32 %v5203_v17, %v1512_v4 }
 0x412   : > { %v1409_v37 = vpop.permute.xlu0 %1408  ;;  %v1441_v46 = vpop.permute.xlu1 %1440 }
 0x413   : > { %v1470_v49 = vsel %vm1466_vm11, %v1409_v37, %v1441_v46  ;;  %v1486_v2 = vsel %vm1466_vm11, %v1441_v46, %v1409_v37  ;;  %1575 = vrot.lane.b32.xlu0 %v5510_v62, %s4384_s17  ;;  %1607 = vrot.lane.b32.xlu1 %v5513_v56, %s4384_s17 }
 0x414   : > { %v1513_v19 = vsel %vm5456_vm12, %v1486_v2, -inf  ;;  %v1514_v17 = vsel %vm5461_vm13, %v1470_v49, -inf }
 0x415   : > { %v5528_v63 = vmax.f32 %v5224_v14, %v1513_v19  ;;  %v5531_v53 = vmax.f32 %v5221_v11, %v1514_v17 }
 0x416   : > { %v1411_v61 = vpop.permute.xlu0 %1410  ;;  %v1443_v0 = vpop.permute.xlu1 %1442 }
 0x417   : > { %v1471_v22 = vsel %vm1466_vm11, %v1411_v61, %v1443_v0  ;;  %v1487_v57 = vsel %vm1466_vm11, %v1443_v0, %v1411_v61  ;;  %1577 = vrot.lane.b32.xlu0 %v5528_v63, %s4384_s17  ;;  %1609 = vrot.lane.b32.xlu1 %v5531_v53, %s4384_s17 }
 0x418   : > { %v1515_v14 = vsel %vm5456_vm12, %v1487_v57, -inf  ;;  %v1516_v11 = vsel %vm5461_vm13, %v1471_v22, -inf }
 0x419   : > { %v5546_v4 = vmax.f32 %v5242_v58, %v1515_v14  ;;  %v5549_v37 = vmax.f32 %v5239_v55, %v1516_v11 }
 0x41a   : > { %v1413_v46 = vpop.permute.xlu0 %1412  ;;  %v1445_v49 = vpop.permute.xlu1 %1444 }
 0x41b   : > { %v1472_v2 = vsel %vm1466_vm11, %v1413_v46, %v1445_v49  ;;  %v1488_v19 = vsel %vm1466_vm11, %v1445_v49, %v1413_v46  ;;  %1579 = vrot.lane.b32.xlu0 %v5546_v4, %s4384_s17  ;;  %1611 = vrot.lane.b32.xlu1 %v5549_v37, %s4384_s17 }
 0x41c   : > { %v1517_v58 = vsel %vm5456_vm12, %v1488_v19, -inf  ;;  %v1518_v55 = vsel %vm5461_vm13, %v1472_v2, -inf }
 0x41d   : > { %v5564_v17 = vmax.f32 %v5260_v9, %v1517_v58  ;;  %v5567_v61 = vmax.f32 %v5257_v10, %v1518_v55 }
 0x41e   : > { %v1415_v0 = vpop.permute.xlu0 %1414  ;;  %v1447_v22 = vpop.permute.xlu1 %1446 }
 0x41f   : > { %v1473_v57 = vsel %vm1466_vm11, %v1415_v0, %v1447_v22  ;;  %v1489_v14 = vsel %vm1466_vm11, %v1447_v22, %v1415_v0  ;;  %1581 = vrot.lane.b32.xlu0 %v5564_v17, %s4384_s17  ;;  %1613 = vrot.lane.b32.xlu1 %v5567_v61, %s4384_s17 }
 0x420   : > { %v1519_v9 = vsel %vm5456_vm12, %v1489_v14, -inf  ;;  %v1520_v10 = vsel %vm5461_vm13, %v1473_v57, -inf }
 0x421   : > { %v5582_v11 = vmax.f32 %v5278_v60, %v1519_v9  ;;  %v5585_v46 = vmax.f32 %v5275_v6, %v1520_v10 }
 0x422   : > { %v1417_v49 = vpop.permute.xlu0 %1416  ;;  %v1449_v2 = vpop.permute.xlu1 %1448 }
 0x423   : > { %v1474_v19 = vsel %vm1466_vm11, %v1417_v49, %v1449_v2  ;;  %v1490_v58 = vsel %vm1466_vm11, %v1449_v2, %v1417_v49  ;;  %1583 = vrot.lane.b32.xlu0 %v5582_v11, %s4384_s17  ;;  %1615 = vrot.lane.b32.xlu1 %v5585_v46, %s4384_s17 }
 0x424   : > { %v1521_v60 = vsel %vm5456_vm12, %v1490_v58, -inf  ;;  %v1522_v6 = vsel %vm5461_vm13, %v1474_v19, -inf }
 0x425   : > { %v5600_v55 = vmax.f32 %v5296_v51, %v1521_v60  ;;  %v5603_v0 = vmax.f32 %v5293_v52, %v1522_v6 }
 0x426   : > { %v1419_v22 = vpop.permute.xlu0 %1418  ;;  %v1451_v57 = vpop.permute.xlu1 %1450 }
 0x427   : > { %v1475_v14 = vsel %vm1466_vm11, %v1419_v22, %v1451_v57  ;;  %v1491_v9 = vsel %vm1466_vm11, %v1451_v57, %v1419_v22  ;;  %1585 = vrot.lane.b32.xlu0 %v5600_v55, %s4384_s17  ;;  %1617 = vrot.lane.b32.xlu1 %v5603_v0, %s4384_s17 }
 0x428   : > { %v1523_v51 = vsel %vm5456_vm12, %v1491_v9, -inf  ;;  %v1524_v52 = vsel %vm5461_vm13, %v1475_v14, -inf }
 0x429   : > { %v5618_v10 = vmax.f32 %v5314_v5, %v1523_v51  ;;  %v5621_v49 = vmax.f32 %v5311_v59, %v1524_v52 }
 0x42a   : > { %v1421_v2 = vpop.permute.xlu0 %1420  ;;  %v1453_v19 = vpop.permute.xlu1 %1452 }
 0x42b   : > { %v1476_v58 = vsel %vm1466_vm11, %v1421_v2, %v1453_v19  ;;  %v1492_v60 = vsel %vm1466_vm11, %v1453_v19, %v1421_v2  ;;  %1587 = vrot.lane.b32.xlu0 %v5618_v10, %s4384_s17  ;;  %1619 = vrot.lane.b32.xlu1 %v5621_v49, %s4384_s17 }
 0x42c   : > { %v1525_v5 = vsel %vm5456_vm12, %v1492_v60, -inf  ;;  %v1526_v59 = vsel %vm5461_vm13, %v1476_v58, -inf }
 0x42d   : > { %v5636_v6 = vmax.f32 %v5329_v33, %v1525_v5  ;;  %v5639_v22 = vmax.f32 %v5332_v32, %v1526_v59 }
 0x42e   : > { %v1423_v57 = vpop.permute.xlu0 %1422  ;;  %v1455_v14 = vpop.permute.xlu1 %1454 }
 0x42f   : > { %v1477_v9 = vsel %vm1466_vm11, %v1423_v57, %v1455_v14  ;;  %v1493_v51 = vsel %vm1466_vm11, %v1455_v14, %v1423_v57  ;;  %1589 = vrot.lane.b32.xlu0 %v5636_v6, %s4384_s17  ;;  %1621 = vrot.lane.b32.xlu1 %v5639_v22, %s4384_s17 }
 0x430   : > { %v1527_v33 = vsel %vm5456_vm12, %v1493_v51, -inf  ;;  %v1528_v32 = vsel %vm5461_vm13, %v1477_v9, -inf }
 0x431   : > { %v5654_v52 = vmax.f32 %v5347_v36, %v1527_v33  ;;  %v5657_v2 = vmax.f32 %v5350_v8, %v1528_v32 }
 0x432   : > { %v1425_v19 = vpop.permute.xlu0 %1424  ;;  %v1457_v58 = vpop.permute.xlu1 %1456 }
 0x433   : > { %v1478_v60 = vsel %vm1466_vm11, %v1425_v19, %v1457_v58  ;;  %v1494_v5 = vsel %vm1466_vm11, %v1457_v58, %v1425_v19  ;;  %1591 = vrot.lane.b32.xlu0 %v5654_v52, %s4384_s17  ;;  %1623 = vrot.lane.b32.xlu1 %v5657_v2, %s4384_s17 }
 0x434   : > { %v1529_v36 = vsel %vm5456_vm12, %v1494_v5, -inf  ;;  %v1530_v8 = vsel %vm5461_vm13, %v1478_v60, -inf }
 0x435   : > { %v5672_v59 = vmax.f32 %v5365_v26, %v1529_v36  ;;  %v5675_v57 = vmax.f32 %v5368_v13, %v1530_v8 }
 0x436   : > { %v1427_v14 = vpop.permute.xlu0 %1426  ;;  %v1459_v9 = vpop.permute.xlu1 %1458 }
 0x437   : > { %v1479_v51 = vsel %vm1466_vm11, %v1427_v14, %v1459_v9  ;;  %v1495_v33 = vsel %vm1466_vm11, %v1459_v9, %v1427_v14  ;;  %1593 = vrot.lane.b32.xlu0 %v5672_v59, %s4384_s17  ;;  %1625 = vrot.lane.b32.xlu1 %v5675_v57, %s4384_s17 }
 0x438   : > { %v1531_v26 = vsel %vm5456_vm12, %v1495_v33, -inf  ;;  %v1532_v13 = vsel %vm5461_vm13, %v1479_v51, -inf }
 0x439   : > { %v5690_v32 = vmax.f32 %v5383_v7, %v1531_v26  ;;  %v5693_v19 = vmax.f32 %v5386_v16, %v1532_v13 }
 0x43a   : > { %v1429_v58 = vpop.permute.xlu0 %1428  ;;  %v1461_v60 = vpop.permute.xlu1 %1460 }
 0x43b   : > { %v1480_v5 = vsel %vm1466_vm11, %v1429_v58, %v1461_v60  ;;  %v1496_v36 = vsel %vm1466_vm11, %v1461_v60, %v1429_v58  ;;  %1595 = vrot.lane.b32.xlu0 %v5690_v32, %s4384_s17  ;;  %1627 = vrot.lane.b32.xlu1 %v5693_v19, %s4384_s17 }
 0x43c   : > { %v1533_v7 = vsel %vm5456_vm12, %v1496_v36, -inf  ;;  %v1534_v16 = vsel %vm5461_vm13, %v1480_v5, -inf }
 0x43d   : > { %v5708_v8 = vmax.f32 %v5401_v21, %v1533_v7  ;;  %v5711_v14 = vmax.f32 %v5404_v12, %v1534_v16 }
 0x43e   : > { %v1431_v9 = vpop.permute.xlu0 %1430  ;;  %v1463_v51 = vpop.permute.xlu1 %1462 }
 0x43f   : > { %v1481_v33 = vsel %vm1466_vm11, %v1431_v9, %v1463_v51  ;;  %v1497_v26 = vsel %vm1466_vm11, %v1463_v51, %v1431_v9  ;;  %1597 = vrot.lane.b32.xlu0 %v5708_v8, %s4384_s17  ;;  %1629 = vrot.lane.b32.xlu1 %v5711_v14, %s4384_s17  ;;  %v1841_v51 = vsel %vm1804_vm2, %v4822_v31, %v4820_v35 }
 0x440   : > { %v1535_v21 = vsel %vm5456_vm12, %v1497_v26, -inf  ;;  %v1536_v12 = vsel %vm5461_vm13, %v1481_v33, -inf  ;;  %vm6075_vm5 = vcmp.eq.f32.partialorder %v1841_v51, %v4568_v41 }
 0x441   : > { %v5726_v13 = vmax.f32 %v5419_v24, %v1535_v21  ;;  %v5729_v58 = vmax.f32 %v5422_v15, %v1536_v12 }
 0x442   : > { %v1433_v60 = vpop.permute.xlu0 %1432  ;;  %v1465_v5 = vpop.permute.xlu1 %1464 }
 0x443   : > { %v1482_v36 = vsel %vm1466_vm11, %v1433_v60, %v1465_v5  ;;  %v1498_v7 = vsel %vm1466_vm11, %v1465_v5, %v1433_v60  ;;  %1599 = vrot.lane.b32.xlu0 %v5726_v13, %s4384_s17  ;;  %1631 = vrot.lane.b32.xlu1 %v5729_v58, %s4384_s17 }
 0x444   : > { %v1537_v24 = vsel %vm5456_vm12, %v1498_v7, -inf  ;;  %v1538_v15 = vsel %vm5461_vm13, %v1482_v36, -inf }
 0x445   : > { %v5744_v16 = vmax.f32 %v5437_v30, %v1537_v24  ;;  %v5747_v9 = vmax.f32 %v5440_v20, %v1538_v15  ;;  %v1673_v30 = vsel %vm1635_vm14, %v4816_v25, %v4818_v27 }
 0x446   : > { %vm5768_vm1 = vcmp.eq.f32.partialorder %v1673_v30, %v4568_v41 }
 0x447   : > { %1601 = vrot.lane.b32.xlu0 %v5744_v16, %s4384_s17  ;;  %1633 = vrot.lane.b32.xlu1 %v5747_v9, %s4384_s17 }
 0x47d   : > { %v1572_v20 = vpop.permute.xlu0 %1571  ;;  %v1604_v28 = vpop.permute.xlu1 %1603 }
 0x47e   : > { %v1636_v26 = vsel %vm1635_vm14, %v1572_v20, %v1604_v28  ;;  %v1652_v21 = vsel %vm1635_vm14, %v1604_v28, %v1572_v20 }
 0x47f   : > { %v1676_v25 = vsel %vm5763_vm15, %v1636_v26, -inf  ;;  %v1677_v27 = vsel %vm5768_vm1, %v1652_v21, -inf }
 0x480   : > { %v5781_v12 = vmax.f32 %v5474_v38, %v1676_v25  ;;  %v5784_v60 = vmax.f32 %v5477_v23, %v1677_v27 }
 0x481   : > { %v1574_v5 = vpop.permute.xlu0 %1573  ;;  %v1606_v36 = vpop.permute.xlu1 %1605 }
 0x482   : > { %v1637_v7 = vsel %vm1635_vm14, %v1574_v5, %v1606_v36  ;;  %v1653_v24 = vsel %vm1635_vm14, %v1606_v36, %v1574_v5  ;;  %1772 = vrot.lane.b32.xlu1 %v5784_v60, %s4385_s18  ;;  %1740 = vrot.lane.b32.xlu0 %v5781_v12, %s4385_s18 }
 0x483   : > { %v1678_v38 = vsel %vm5763_vm15, %v1637_v7, -inf  ;;  %v1679_v23 = vsel %vm5768_vm1, %v1653_v24, -inf }
 0x484   : > { %v5799_v15 = vmax.f32 %v5492_v48, %v1678_v38  ;;  %v5802_v18 = vmax.f32 %v5495_v45, %v1679_v23 }
 0x485   : > { %v1576_v30 = vpop.permute.xlu0 %1575  ;;  %v1608_v20 = vpop.permute.xlu1 %1607 }
 0x486   : > { %v1638_v28 = vsel %vm1635_vm14, %v1576_v30, %v1608_v20  ;;  %v1654_v26 = vsel %vm1635_vm14, %v1608_v20, %v1576_v30  ;;  %1774 = vrot.lane.b32.xlu1 %v5802_v18, %s4385_s18  ;;  %1742 = vrot.lane.b32.xlu0 %v5799_v15, %s4385_s18 }
 0x487   : > { %v1680_v48 = vsel %vm5763_vm15, %v1638_v28, -inf  ;;  %v1681_v45 = vsel %vm5768_vm1, %v1654_v26, -inf }
 0x488   : > { %v5817_v21 = vmax.f32 %v5510_v62, %v1680_v48  ;;  %v5820_v25 = vmax.f32 %v5513_v56, %v1681_v45 }
 0x489   : > { %v1578_v27 = vpop.permute.xlu0 %1577  ;;  %v1610_v5 = vpop.permute.xlu1 %1609 }
 0x48a   : > { %v1639_v36 = vsel %vm1635_vm14, %v1578_v27, %v1610_v5  ;;  %v1655_v7 = vsel %vm1635_vm14, %v1610_v5, %v1578_v27  ;;  %1776 = vrot.lane.b32.xlu1 %v5820_v25, %s4385_s18  ;;  %1744 = vrot.lane.b32.xlu0 %v5817_v21, %s4385_s18 }
 0x48b   : > { %v1682_v62 = vsel %vm5763_vm15, %v1639_v36, -inf  ;;  %v1683_v56 = vsel %vm5768_vm1, %v1655_v7, -inf }
 0x48c   : > { %v5835_v24 = vmax.f32 %v5528_v63, %v1682_v62  ;;  %v5838_v38 = vmax.f32 %v5531_v53, %v1683_v56 }
 0x48d   : > { %v1580_v23 = vpop.permute.xlu0 %1579  ;;  %v1612_v30 = vpop.permute.xlu1 %1611 }
 0x48e   : > { %v1640_v20 = vsel %vm1635_vm14, %v1580_v23, %v1612_v30  ;;  %v1656_v28 = vsel %vm1635_vm14, %v1612_v30, %v1580_v23  ;;  %1778 = vrot.lane.b32.xlu1 %v5838_v38, %s4385_s18  ;;  %1746 = vrot.lane.b32.xlu0 %v5835_v24, %s4385_s18 }
 0x48f   : > { %v1684_v63 = vsel %vm5763_vm15, %v1640_v20, -inf  ;;  %v1685_v53 = vsel %vm5768_vm1, %v1656_v28, -inf }
 0x490   : > { %v5853_v26 = vmax.f32 %v5546_v4, %v1684_v63  ;;  %v5856_v48 = vmax.f32 %v5549_v37, %v1685_v53 }
 0x491   : > { %v1582_v45 = vpop.permute.xlu0 %1581  ;;  %v1614_v27 = vpop.permute.xlu1 %1613 }
 0x492   : > { %v1641_v5 = vsel %vm1635_vm14, %v1582_v45, %v1614_v27  ;;  %v1657_v36 = vsel %vm1635_vm14, %v1614_v27, %v1582_v45  ;;  %1780 = vrot.lane.b32.xlu1 %v5856_v48, %s4385_s18  ;;  %1748 = vrot.lane.b32.xlu0 %v5853_v26, %s4385_s18 }
 0x493   : > { %v1686_v4 = vsel %vm5763_vm15, %v1641_v5, -inf  ;;  %v1687_v37 = vsel %vm5768_vm1, %v1657_v36, -inf }
 0x494   : > { %v5871_v7 = vmax.f32 %v5564_v17, %v1686_v4  ;;  %v5874_v62 = vmax.f32 %v5567_v61, %v1687_v37 }
 0x495   : > { %v1584_v56 = vpop.permute.xlu0 %1583  ;;  %v1616_v23 = vpop.permute.xlu1 %1615 }
 0x496   : > { %v1642_v30 = vsel %vm1635_vm14, %v1584_v56, %v1616_v23  ;;  %v1658_v20 = vsel %vm1635_vm14, %v1616_v23, %v1584_v56  ;;  %1782 = vrot.lane.b32.xlu1 %v5874_v62, %s4385_s18  ;;  %1750 = vrot.lane.b32.xlu0 %v5871_v7, %s4385_s18 }
 0x497   : > { %v1688_v17 = vsel %vm5763_vm15, %v1642_v30, -inf  ;;  %v1689_v61 = vsel %vm5768_vm1, %v1658_v20, -inf }
 0x498   : > { %v5889_v28 = vmax.f32 %v5582_v11, %v1688_v17  ;;  %v5892_v63 = vmax.f32 %v5585_v46, %v1689_v61 }
 0x499   : > { %v1586_v53 = vpop.permute.xlu0 %1585  ;;  %v1618_v45 = vpop.permute.xlu1 %1617 }
 0x49a   : > { %v1643_v27 = vsel %vm1635_vm14, %v1586_v53, %v1618_v45  ;;  %v1659_v5 = vsel %vm1635_vm14, %v1618_v45, %v1586_v53  ;;  %1784 = vrot.lane.b32.xlu1 %v5892_v63, %s4385_s18  ;;  %1752 = vrot.lane.b32.xlu0 %v5889_v28, %s4385_s18 }
 0x49b   : > { %v1690_v11 = vsel %vm5763_vm15, %v1643_v27, -inf  ;;  %v1691_v46 = vsel %vm5768_vm1, %v1659_v5, -inf }
 0x49c   : > { %v5907_v36 = vmax.f32 %v5600_v55, %v1690_v11  ;;  %v5910_v4 = vmax.f32 %v5603_v0, %v1691_v46 }
 0x49d   : > { %v1588_v37 = vpop.permute.xlu0 %1587  ;;  %v1620_v56 = vpop.permute.xlu1 %1619 }
 0x49e   : > { %v1644_v23 = vsel %vm1635_vm14, %v1588_v37, %v1620_v56  ;;  %v1660_v30 = vsel %vm1635_vm14, %v1620_v56, %v1588_v37  ;;  %1786 = vrot.lane.b32.xlu1 %v5910_v4, %s4385_s18  ;;  %1754 = vrot.lane.b32.xlu0 %v5907_v36, %s4385_s18 }
 0x49f   : > { %v1692_v55 = vsel %vm5763_vm15, %v1644_v23, -inf  ;;  %v1693_v0 = vsel %vm5768_vm1, %v1660_v30, -inf }
 0x4a0   : > { %v5925_v20 = vmax.f32 %v5618_v10, %v1692_v55  ;;  %v5928_v17 = vmax.f32 %v5621_v49, %v1693_v0 }
 0x4a1   : > { %v1590_v61 = vpop.permute.xlu0 %1589  ;;  %v1622_v53 = vpop.permute.xlu1 %1621 }
 0x4a2   : > { %v1645_v45 = vsel %vm1635_vm14, %v1590_v61, %v1622_v53  ;;  %v1661_v27 = vsel %vm1635_vm14, %v1622_v53, %v1590_v61  ;;  %1788 = vrot.lane.b32.xlu1 %v5928_v17, %s4385_s18  ;;  %1756 = vrot.lane.b32.xlu0 %v5925_v20, %s4385_s18 }
 0x4a3   : > { %v1694_v10 = vsel %vm5763_vm15, %v1645_v45, -inf  ;;  %v1695_v49 = vsel %vm5768_vm1, %v1661_v27, -inf }
 0x4a4   : > { %v5943_v5 = vmax.f32 %v5636_v6, %v1694_v10  ;;  %v5946_v11 = vmax.f32 %v5639_v22, %v1695_v49 }
 0x4a5   : > { %v1592_v46 = vpop.permute.xlu0 %1591  ;;  %v1624_v37 = vpop.permute.xlu1 %1623 }
 0x4a6   : > { %v1646_v56 = vsel %vm1635_vm14, %v1592_v46, %v1624_v37  ;;  %v1662_v23 = vsel %vm1635_vm14, %v1624_v37, %v1592_v46  ;;  %1790 = vrot.lane.b32.xlu1 %v5946_v11, %s4385_s18  ;;  %1758 = vrot.lane.b32.xlu0 %v5943_v5, %s4385_s18 }
 0x4a7   : > { %v1696_v6 = vsel %vm5763_vm15, %v1646_v56, -inf  ;;  %v1697_v22 = vsel %vm5768_vm1, %v1662_v23, -inf }
 0x4a8   : > { %v5961_v30 = vmax.f32 %v5654_v52, %v1696_v6  ;;  %v5964_v55 = vmax.f32 %v5657_v2, %v1697_v22 }
 0x4a9   : > { %v1594_v0 = vpop.permute.xlu0 %1593  ;;  %v1626_v61 = vpop.permute.xlu1 %1625 }
 0x4aa   : > { %v1647_v53 = vsel %vm1635_vm14, %v1594_v0, %v1626_v61  ;;  %v1663_v45 = vsel %vm1635_vm14, %v1626_v61, %v1594_v0  ;;  %1792 = vrot.lane.b32.xlu1 %v5964_v55, %s4385_s18  ;;  %1760 = vrot.lane.b32.xlu0 %v5961_v30, %s4385_s18 }
 0x4ab   : > { %v1698_v52 = vsel %vm5763_vm15, %v1647_v53, -inf  ;;  %v1699_v2 = vsel %vm5768_vm1, %v1663_v45, -inf }
 0x4ac   : > { %v5979_v27 = vmax.f32 %v5672_v59, %v1698_v52  ;;  %v5982_v10 = vmax.f32 %v5675_v57, %v1699_v2 }
 0x4ad   : > { %v1596_v49 = vpop.permute.xlu0 %1595  ;;  %v1628_v46 = vpop.permute.xlu1 %1627 }
 0x4ae   : > { %v1648_v37 = vsel %vm1635_vm14, %v1596_v49, %v1628_v46  ;;  %v1664_v56 = vsel %vm1635_vm14, %v1628_v46, %v1596_v49  ;;  %1794 = vrot.lane.b32.xlu1 %v5982_v10, %s4385_s18  ;;  %1762 = vrot.lane.b32.xlu0 %v5979_v27, %s4385_s18 }
 0x4af   : > { %v1700_v59 = vsel %vm5763_vm15, %v1648_v37, -inf  ;;  %v1701_v57 = vsel %vm5768_vm1, %v1664_v56, -inf }
 0x4b0   : > { %v5997_v23 = vmax.f32 %v5690_v32, %v1700_v59  ;;  %v6000_v6 = vmax.f32 %v5693_v19, %v1701_v57 }
 0x4b1   : > { %v1598_v22 = vpop.permute.xlu0 %1597  ;;  %v1630_v0 = vpop.permute.xlu1 %1629 }
 0x4b2   : > { %v1649_v61 = vsel %vm1635_vm14, %v1598_v22, %v1630_v0  ;;  %v1665_v53 = vsel %vm1635_vm14, %v1630_v0, %v1598_v22  ;;  %1796 = vrot.lane.b32.xlu1 %v6000_v6, %s4385_s18  ;;  %1764 = vrot.lane.b32.xlu0 %v5997_v23, %s4385_s18 }
 0x4b3   : > { %v1702_v32 = vsel %vm5763_vm15, %v1649_v61, -inf  ;;  %v1703_v19 = vsel %vm5768_vm1, %v1665_v53, -inf }
 0x4b4   : > { %v6015_v45 = vmax.f32 %v5708_v8, %v1702_v32  ;;  %v6018_v52 = vmax.f32 %v5711_v14, %v1703_v19 }
 0x4b5   : > { %v1600_v2 = vpop.permute.xlu0 %1599  ;;  %v1632_v49 = vpop.permute.xlu1 %1631 }
 0x4b6   : > { %v1650_v46 = vsel %vm1635_vm14, %v1600_v2, %v1632_v49  ;;  %v1666_v37 = vsel %vm1635_vm14, %v1632_v49, %v1600_v2  ;;  %1798 = vrot.lane.b32.xlu1 %v6018_v52, %s4385_s18  ;;  %1766 = vrot.lane.b32.xlu0 %v6015_v45, %s4385_s18  ;;  %v1045_v2 = vld [vmem:[%s6246_s29 + $0x60] sm:$0xff] }
 0x4b7   : > { %v1704_v8 = vsel %vm5763_vm15, %v1650_v46, -inf  ;;  %v1705_v14 = vsel %vm5768_vm1, %v1666_v37, -inf }
 0x4b8   : > { %v6033_v56 = vmax.f32 %v5726_v13, %v1704_v8  ;;  %v6036_v59 = vmax.f32 %v5729_v58, %v1705_v14 }
 0x4b9   : > { %v1602_v57 = vpop.permute.xlu0 %1601  ;;  %v1634_v22 = vpop.permute.xlu1 %1633 }
 0x4ba   : > { %v1651_v0 = vsel %vm1635_vm14, %v1602_v57, %v1634_v22  ;;  %v1667_v61 = vsel %vm1635_vm14, %v1634_v22, %v1602_v57  ;;  %1800 = vrot.lane.b32.xlu1 %v6036_v59, %s4385_s18  ;;  %1768 = vrot.lane.b32.xlu0 %v6033_v56, %s4385_s18 }
 0x4bb   : > { %v1706_v13 = vsel %vm5763_vm15, %v1651_v0, -inf  ;;  %v1707_v58 = vsel %vm5768_vm1, %v1667_v61, -inf  ;;  %v6106_v61 = vadd.s32 8, %v4637_v42 }
 0x4bc   : > { %v6051_v53 = vmax.f32 %v5744_v16, %v1706_v13  ;;  %v6054_v32 = vmax.f32 %v5747_v9, %v1707_v58  ;;  %v1842_v16 = vsel %vm1804_vm2, %v4820_v35, %v4822_v31  ;;  %v2708_v13 = vmul.u32 16, %v4637_v42 }
 0x4bd   : > { %vm6070_vm4 = vcmp.eq.f32.partialorder %v1842_v16, %v4564_v39  ;;  %v2714_v16 = vadd.s32 1, %v4637_v42 }
 0x4be   : > { %1802 = vrot.lane.b32.xlu1 %v6054_v32, %s4385_s18  ;;  %1770 = vrot.lane.b32.xlu0 %v6051_v53, %s4385_s18  ;;  %vm6127_vm3 = vcmp.ge.s32.totalorder %v4557_v34, %v2708_v13  ;;  %vm6157_vm10 = vcmp.ge.s32.totalorder %v4553_v29, %v2708_v13 }
 0x4f4   : > { %v1741_v9 = vpop.permute.xlu0 %1740  ;;  %v1773_v33 = vpop.permute.xlu1 %1772 }
 0x4f5   : > { %v1805_v49 = vsel %vm1804_vm2, %v1741_v9, %v1773_v33  ;;  %v1821_v46 = vsel %vm1804_vm2, %v1773_v33, %v1741_v9 }
 0x4f6   : > { %v1845_v35 = vsel %vm6070_vm4, %v1821_v46, -inf  ;;  %v1846_v31 = vsel %vm6075_vm5, %v1805_v49, -inf  ;;  %v2709_v49 = vmul.u32 16, %v6106_v61  ;;  %v2715_v46 = vadd.s32 1, %v6106_v61 }
 0x4f7   : > { %v6088_v37 = vmax.f32 %v5781_v12, %v1845_v35  ;;  %v6091_v8 = vmax.f32 %v5784_v60, %v1846_v31 }
 0x4f8   : > { %v1743_v14 = vpop.permute.xlu0 %1742  ;;  %v1775_v57 = vpop.permute.xlu1 %1774  ;;  %vm6136_vm6 = vcmp.ge.s32.totalorder %v4557_v34, %v2709_v49  ;;  %vm6162_vm11 = vcmp.ge.s32.totalorder %v4553_v29, %v2709_v49 }
 0x4f9   : > { %v1806_v22 = vsel %vm1804_vm2, %v1743_v14, %v1775_v57  ;;  %v1822_v0 = vsel %vm1804_vm2, %v1775_v57, %v1743_v14  ;;  %1909 = vrot.lane.b32.xlu0 %v6088_v37, %s4386_s19  ;;  %1941 = vrot.lane.b32.xlu1 %v6091_v8, %s4386_s19 }
 0x4fa   : > { %v1847_v12 = vsel %vm6070_vm4, %v1822_v0, -inf  ;;  %v1848_v60 = vsel %vm6075_vm5, %v1806_v22, -inf  ;;  %v2717_v0 = vmul.u32 16, %v2715_v46 }
 0x4fb   : > { %v6110_v58 = vmax.f32 %v5799_v15, %v1847_v12  ;;  %v6113_v51 = vmax.f32 %v5802_v18, %v1848_v60  ;;  %v2716_v18 = vmul.u32 16, %v2714_v16 }
 0x4fc   : > { %v1745_v9 = vpop.permute.xlu0 %1744  ;;  %v1777_v33 = vpop.permute.xlu1 %1776  ;;  %vm2721_vm8 = vcmp.lt.s32.totalorder %v4557_v34, %v2717_v0  ;;  %vm6182_vm14 = vcmp.lt.s32.totalorder %v4553_v29, %v2717_v0 }
 0x4fd   : > { %v1807_v35 = vsel %vm1804_vm2, %v1745_v9, %v1777_v33  ;;  %v1823_v31 = vsel %vm1804_vm2, %v1777_v33, %v1745_v9  ;;  %1911 = vrot.lane.b32.xlu0 %v6110_v58, %s4386_s19  ;;  %1943 = vrot.lane.b32.xlu1 %v6113_v51, %s4386_s19  ;;  %vm6147_vm7 = vcmp.lt.s32.totalorder %v4557_v34, %v2716_v18  ;;  %vm2725_vm13 = vmand %vm6136_vm6, %vm2721_vm8 }
 0x4fe   : > { %v1849_v14 = vsel %vm6070_vm4, %v1823_v31, -inf  ;;  %v1850_v57 = vsel %vm6075_vm5, %v1807_v35, -inf  ;;  %vm2723_vm9 = vmand %vm6127_vm3, %vm6147_vm7  ;;  %vm6167_vm12 = vcmp.lt.s32.totalorder %v4553_v29, %v2716_v18 }
 0x4ff   : > { %v6141_v12 = vmax.f32 %v5817_v21, %v1849_v14  ;;  %v6144_v60 = vmax.f32 %v5820_v25, %v1850_v57  ;;  %vm4151_vm15 = vmpackc.low %vm2725_vm13, %vm2723_vm9  ;;  %v4389_v57 = vmov 1.0|1.0  }
 0x500   : > { %v1747_v9 = vpop.permute.xlu0 %1746  ;;  %v1779_v33 = vpop.permute.xlu1 %1778  ;;  %4152 = vmatprep.subr.msk.bf16.mxu1 %vm4151_vm15, %v4389_v57  ;;  %vm2722_vm1 = vmand %vm6157_vm10, %vm6167_vm12 }
 0x501   : > { %v1808_v35 = vsel %vm1804_vm2, %v1747_v9, %v1779_v33  ;;  %v1824_v31 = vsel %vm1804_vm2, %v1779_v33, %v1747_v9  ;;  %1913 = vrot.lane.b32.xlu0 %v6141_v12, %s4386_s19  ;;  %1945 = vrot.lane.b32.xlu1 %v6144_v60, %s4386_s19  ;;  %vm2724_vm3 = vmand %vm6162_vm11, %vm6182_vm14 }
 0x502   : > { %v1851_v49 = vsel %vm6070_vm4, %v1824_v31, -inf  ;;  %v1852_v15 = vsel %vm6075_vm5, %v1808_v35, -inf  ;;  %vm4153_vm6 = vmpackc.low %vm2724_vm3, %vm2722_vm1 }
 0x503   : > { %v6191_v18 = vmax.f32 %v5835_v24, %v1851_v49  ;;  %v6194_v14 = vmax.f32 %v5838_v38, %v1852_v15  ;;  %4154 = vmatpush1.bf16.msk.msra.mxu1 %vm4153_vm6, %v4389_v57 }
 0x504   : > { %v1749_v22 = vpop.permute.xlu0 %1748  ;;  %v1781_v0 = vpop.permute.xlu1 %1780 }
 0x505   : > { %v1809_v24 = vsel %vm1804_vm2, %v1749_v22, %v1781_v0  ;;  %v1825_v38 = vsel %vm1804_vm2, %v1781_v0, %v1749_v22  ;;  %1915 = vrot.lane.b32.xlu0 %v6191_v18, %s4386_s19  ;;  %1947 = vrot.lane.b32.xlu1 %v6194_v14, %s4386_s19 }
 0x506   : > { %v1853_v16 = vsel %vm6070_vm4, %v1825_v38, -inf  ;;  %v1854_v9 = vsel %vm6075_vm5, %v1809_v24, -inf }
 0x507   : > { %v6219_v33 = vmax.f32 %v5853_v26, %v1853_v16  ;;  %v6222_v21 = vmax.f32 %v5856_v48, %v1854_v9  ;;  %v1033_v9 = vld [vmem:[%s6246_s29] sm:$0xff] }
 0x508   : > { %v1751_v25 = vpop.permute.xlu0 %1750  ;;  %v1783_v46 = vpop.permute.xlu1 %1782 }
 0x509   : > { %v1810_v35 = vsel %vm1804_vm2, %v1751_v25, %v1783_v46  ;;  %v1826_v31 = vsel %vm1804_vm2, %v1783_v46, %v1751_v25  ;;  %1917 = vrot.lane.b32.xlu0 %v6219_v33, %s4386_s19  ;;  %1949 = vrot.lane.b32.xlu1 %v6222_v21, %s4386_s19 }
 0x50a   : > { %v1855_v26 = vsel %vm6070_vm4, %v1826_v31, -inf  ;;  %v1856_v48 = vsel %vm6075_vm5, %v1810_v35, -inf  ;;  %v2734_v35 = vcvt.s32.f32 %v1033_v9 }
 0x50b   : > { %v6237_v13 = vmax.f32 %v5871_v7, %v1855_v26  ;;  %v6240_v49 = vmax.f32 %v5874_v62, %v1856_v48  ;;  %v7938_v48 = vmov 0.0  }
 0x50c   : > { %v1753_v15 = vpop.permute.xlu0 %1752  ;;  %v1785_v22 = vpop.permute.xlu1 %1784  ;;  %2862 = vmatprep.mubr.f32.mxu1 %v7938_v48 }
 0x50d   : > { %v1811_v0 = vsel %vm1804_vm2, %v1753_v15, %v1785_v22  ;;  %v1827_v24 = vsel %vm1804_vm2, %v1785_v22, %v1753_v15  ;;  %1919 = vrot.lane.b32.xlu0 %v6237_v13, %s4386_s19  ;;  %1951 = vrot.lane.b32.xlu1 %v6240_v49, %s4386_s19 }
 0x50e   : > { %v1857_v7 = vsel %vm6070_vm4, %v1827_v24, -inf  ;;  %v1858_v62 = vsel %vm6075_vm5, %v1811_v0, -inf  ;;  %3767 = vmatmul.mubr.msk.f32.vlgmr.msra.gmra.mrb[16].mxu1 %vm357_vm0, %v2734_v35  ;;  %v1034_v0 = vld [vmem:[%s6246_s29 + $0x8] sm:$0xff] }
 0x50f   : > { %v6261_v38 = vmax.f32 %v5889_v28, %v1857_v7  ;;  %v6264_v16 = vmax.f32 %v5892_v63, %v1858_v62  ;;  %2868 = vmatprep.mubr.f32.mxu1 %v7938_v48  ;;  %v2735_v62 = vcvt.s32.f32 %v1034_v0 }
 0x510   : > { %v1755_v25 = vpop.permute.xlu0 %1754  ;;  %v1787_v46 = vpop.permute.xlu1 %1786 }
 0x511   : > { %v1812_v31 = vsel %vm1804_vm2, %v1755_v25, %v1787_v46  ;;  %v1828_v26 = vsel %vm1804_vm2, %v1787_v46, %v1755_v25  ;;  %1921 = vrot.lane.b32.xlu0 %v6261_v38, %s4386_s19  ;;  %1953 = vrot.lane.b32.xlu1 %v6264_v16, %s4386_s19 }
 0x512   : > { %v1859_v28 = vsel %vm6070_vm4, %v1828_v26, -inf  ;;  %v1860_v63 = vsel %vm6075_vm5, %v1812_v31, -inf  ;;  %3768 = vmatmul.mubr.msk.f32.gmra.mrb[18].mxu1 %vm357_vm0, %v2735_v62  ;;  %v1035_v31 = vld [vmem:[%s6246_s29 + $0x10] sm:$0xff] }
 0x513   : > { %v6281_v15 = vmax.f32 %v5907_v36, %v1859_v28  ;;  %v6284_v22 = vmax.f32 %v5910_v4, %v1860_v63  ;;  %2874 = vmatprep.mubr.f32.mxu1 %v7938_v48  ;;  %v2736_v63 = vcvt.s32.f32 %v1035_v31 }
 0x514   : > { %v1757_v24 = vpop.permute.xlu0 %1756  ;;  %v1789_v7 = vpop.permute.xlu1 %1788 }
 0x515   : > { %v1813_v9 = vsel %vm1804_vm2, %v1757_v24, %v1789_v7  ;;  %v1829_v25 = vsel %vm1804_vm2, %v1789_v7, %v1757_v24  ;;  %1923 = vrot.lane.b32.xlu0 %v6281_v15, %s4386_s19  ;;  %1955 = vrot.lane.b32.xlu1 %v6284_v22, %s4386_s19 }
 0x516   : > { %v1861_v36 = vsel %vm6070_vm4, %v1829_v25, -inf  ;;  %v1862_v4 = vsel %vm6075_vm5, %v1813_v9, -inf  ;;  %3769 = vmatmul.mubr.msk.f32.gmra.mrb[20].mxu1 %vm357_vm0, %v2736_v63  ;;  %v1036_v9 = vld [vmem:[%s6246_s29 + $0x18] sm:$0xff] }
 0x517   : > { %v6302_v46 = vmax.f32 %v5925_v20, %v1861_v36  ;;  %v6305_v35 = vmax.f32 %v5928_v17, %v1862_v4  ;;  %2880 = vmatprep.mubr.f32.mxu1 %v7938_v48  ;;  %v2737_v4 = vcvt.s32.f32 %v1036_v9 }
 0x518   : > { %v1759_v26 = vpop.permute.xlu0 %1758  ;;  %v1791_v28 = vpop.permute.xlu1 %1790 }
 0x519   : > { %v1814_v0 = vsel %vm1804_vm2, %v1759_v26, %v1791_v28  ;;  %v1830_v24 = vsel %vm1804_vm2, %v1791_v28, %v1759_v26  ;;  %1925 = vrot.lane.b32.xlu0 %v6302_v46, %s4386_s19  ;;  %1957 = vrot.lane.b32.xlu1 %v6305_v35, %s4386_s19 }
 0x51a   : > { %v1863_v20 = vsel %vm6070_vm4, %v1830_v24, -inf  ;;  %v1864_v17 = vsel %vm6075_vm5, %v1814_v0, -inf  ;;  %3770 = vmatmul.mubr.msk.f32.gmra.mrb[22].mxu1 %vm357_vm0, %v2737_v4  ;;  %v1037_v0 = vld [vmem:[%s6246_s29 + $0x20] sm:$0xff] }
 0x51b   : > { %v6323_v7 = vmax.f32 %v5943_v5, %v1863_v20  ;;  %v6326_v62 = vmax.f32 %v5946_v11, %v1864_v17  ;;  %2886 = vmatprep.mubr.f32.mxu1 %v7938_v48  ;;  %v2738_v17 = vcvt.s32.f32 %v1037_v0 }
 0x51c   : > { %v1761_v25 = vpop.permute.xlu0 %1760  ;;  %v1793_v36 = vpop.permute.xlu1 %1792 }
 0x51d   : > { %v1815_v31 = vsel %vm1804_vm2, %v1761_v25, %v1793_v36  ;;  %v1831_v26 = vsel %vm1804_vm2, %v1793_v36, %v1761_v25  ;;  %1927 = vrot.lane.b32.xlu0 %v6323_v7, %s4386_s19  ;;  %1959 = vrot.lane.b32.xlu1 %v6326_v62, %s4386_s19 }
 0x51e   : > { %v1865_v5 = vsel %vm6070_vm4, %v1831_v26, -inf  ;;  %v1866_v11 = vsel %vm6075_vm5, %v1815_v31, -inf  ;;  %3771 = vmatmul.mubr.msk.f32.gmra.mrb[24].mxu1 %vm357_vm0, %v2738_v17  ;;  %v1038_v31 = vld [vmem:[%s6246_s29 + $0x28] sm:$0xff] }
 0x51f   : > { %v6344_v28 = vmax.f32 %v5961_v30, %v1865_v5  ;;  %v6347_v63 = vmax.f32 %v5964_v55, %v1866_v11  ;;  %2892 = vmatprep.mubr.f32.mxu1 %v7938_v48  ;;  %v2739_v11 = vcvt.s32.f32 %v1038_v31 }
 0x520   : > { %v1763_v24 = vpop.permute.xlu0 %1762  ;;  %v1795_v20 = vpop.permute.xlu1 %1794 }
 0x521   : > { %v1816_v9 = vsel %vm1804_vm2, %v1763_v24, %v1795_v20  ;;  %v1832_v25 = vsel %vm1804_vm2, %v1795_v20, %v1763_v24  ;;  %1929 = vrot.lane.b32.xlu0 %v6344_v28, %s4386_s19  ;;  %1961 = vrot.lane.b32.xlu1 %v6347_v63, %s4386_s19 }
 0x522   : > { %v1867_v30 = vsel %vm6070_vm4, %v1832_v25, -inf  ;;  %v1868_v55 = vsel %vm6075_vm5, %v1816_v9, -inf  ;;  %3772 = vmatmul.mubr.msk.f32.gmra.mrb[26].mxu1 %vm357_vm0, %v2739_v11  ;;  %v1039_v9 = vld [vmem:[%s6246_s29 + $0x30] sm:$0xff] }
 0x523   : > { %v6365_v36 = vmax.f32 %v5979_v27, %v1867_v30  ;;  %v6368_v4 = vmax.f32 %v5982_v10, %v1868_v55  ;;  %2898 = vmatprep.mubr.f32.mxu1 %v7938_v48  ;;  %v2740_v55 = vcvt.s32.f32 %v1039_v9  ;;  %v1041_v9 = vld [vmem:[%s6246_s29 + $0x40] sm:$0xff] }
 0x524   : > { %v1765_v26 = vpop.permute.xlu0 %1764  ;;  %v1797_v5 = vpop.permute.xlu1 %1796 }
 0x525   : > { %v1817_v0 = vsel %vm1804_vm2, %v1765_v26, %v1797_v5  ;;  %v1833_v24 = vsel %vm1804_vm2, %v1797_v5, %v1765_v26  ;;  %1931 = vrot.lane.b32.xlu0 %v6365_v36, %s4386_s19  ;;  %1963 = vrot.lane.b32.xlu1 %v6368_v4, %s4386_s19 }
 0x526   : > { %v1869_v27 = vsel %vm6070_vm4, %v1833_v24, -inf  ;;  %v1870_v10 = vsel %vm6075_vm5, %v1817_v0, -inf  ;;  %3773 = vmatmul.mubr.msk.f32.gmra.mrb[28].mxu1 %vm357_vm0, %v2740_v55  ;;  %v1040_v0 = vld [vmem:[%s6246_s29 + $0x38] sm:$0xff] }
 0x527   : > { %v6386_v20 = vmax.f32 %v5997_v23, %v1869_v27  ;;  %v6389_v17 = vmax.f32 %v6000_v6, %v1870_v10  ;;  %2904 = vmatprep.mubr.f32.mxu1 %v7938_v48  ;;  %v2741_v10 = vcvt.s32.f32 %v1040_v0  ;;  %v1042_v0 = vld [vmem:[%s6246_s29 + $0x48] sm:$0xff] }
 0x528   : > { %v1767_v25 = vpop.permute.xlu0 %1766  ;;  %v1799_v30 = vpop.permute.xlu1 %1798 }
 0x529   : > { %v1818_v31 = vsel %vm1804_vm2, %v1767_v25, %v1799_v30  ;;  %v1834_v23 = vsel %vm1804_vm2, %v1799_v30, %v1767_v25  ;;  %1933 = vrot.lane.b32.xlu0 %v6386_v20, %s4386_s19  ;;  %1965 = vrot.lane.b32.xlu1 %v6389_v17, %s4386_s19 }
 0x52a   : > { %v1871_v6 = vsel %vm6070_vm4, %v1834_v23, -inf  ;;  %v1872_v26 = vsel %vm6075_vm5, %v1818_v31, -inf  ;;  %3774 = vmatmul.mubr.msk.f32.gmra.mrb[30].mxu1 %vm357_vm0, %v2741_v10  ;;  %v2742_v23 = vcvt.s32.f32 %v1041_v9 }
 0x52b   : > { %v6407_v5 = vmax.f32 %v6015_v45, %v1871_v6  ;;  %v6410_v11 = vmax.f32 %v6018_v52, %v1872_v26  ;;  %2910 = vmatprep.mubr.f32.mxu1 %v7938_v48 }
 0x52c   : > { %v1769_v24 = vpop.permute.xlu0 %1768  ;;  %v1801_v27 = vpop.permute.xlu1 %1800 }
 0x52d   : > { %v1819_v25 = vsel %vm1804_vm2, %v1769_v24, %v1801_v27  ;;  %v1835_v45 = vsel %vm1804_vm2, %v1801_v27, %v1769_v24  ;;  %1935 = vrot.lane.b32.xlu0 %v6407_v5, %s4386_s19  ;;  %1967 = vrot.lane.b32.xlu1 %v6410_v11, %s4386_s19 }
 0x52e   : > { %v1873_v52 = vsel %vm6070_vm4, %v1835_v45, -inf  ;;  %v1874_v30 = vsel %vm6075_vm5, %v1819_v25, -inf  ;;  %3775 = vmatmul.mubr.msk.f32.gmra.mrb[32].mxu1 %vm357_vm0, %v2742_v23  ;;  %v2743_v25 = vcvt.s32.f32 %v1042_v0  ;;  %v1043_v45 = vld [vmem:[%s6246_s29 + $0x50] sm:$0xff]  ;;  %v1048_v0 = vld [vmem:[%s6246_s29 + $0x78] sm:$0xff] }
 0x52f   : > { %v6429_v55 = vmax.f32 %v6033_v56, %v1873_v52  ;;  %v6432_v31 = vmax.f32 %v6036_v59, %v1874_v30  ;;  %2916 = vmatprep.mubr.f32.mxu1 %v7938_v48  ;;  %v2746_v52 = vcvt.s32.f32 %v1045_v2  ;;  %v1046_v30 = vld [vmem:[%s6246_s29 + $0x68] sm:$0xff] }
 0x530   : > { %v1771_v6 = vpop.permute.xlu0 %1770  ;;  %v1803_v26 = vpop.permute.xlu1 %1802  ;;  %v2747_v23 = vcvt.s32.f32 %v1046_v30 }
 0x531   : > { %v1820_v24 = vsel %vm1804_vm2, %v1771_v6, %v1803_v26  ;;  %v1836_v27 = vsel %vm1804_vm2, %v1803_v26, %v1771_v6  ;;  %1937 = vrot.lane.b32.xlu0 %v6429_v55, %s4386_s19  ;;  %1969 = vrot.lane.b32.xlu1 %v6432_v31, %s4386_s19  ;;  %v1047_v6 = vld [vmem:[%s6246_s29 + $0x70] sm:$0xff]  ;;  %vm1973_vm2 = vcmp.lt.s32.totalorder %v4553_v29, 124 }
 0x532   : > { %v1875_v56 = vsel %vm6070_vm4, %v1836_v27, -inf  ;;  %v1876_v59 = vsel %vm6075_vm5, %v1820_v24, -inf  ;;  %3776 = vmatmul.mubr.msk.f32.gmra.mrb[34].mxu1 %vm357_vm0, %v2743_v25  ;;  %v2748_v26 = vcvt.s32.f32 %v1047_v6  ;;  %v2749_v24 = vcvt.s32.f32 %v1048_v0 }
 0x533   : > { %v6450_v10 = vmax.f32 %v6051_v53, %v1875_v56  ;;  %v6453_v9 = vmax.f32 %v6054_v32, %v1876_v59  ;;  %v2744_v53 = vcvt.s32.f32 %v1043_v45  ;;  %2922 = vmatprep.mubr.f32.mxu1 %v7938_v48  ;;  %v1044_v32 = vld [vmem:[%s6246_s29 + $0x58] sm:$0xff]  ;;  %v2010_v27 = vsel %vm1973_vm2, %v4826_v43, %v4824_v40 }
 0x534   : > { %v2745_v19 = vcvt.s32.f32 %v1044_v32  ;;  %v2011_v56 = vsel %vm1973_vm2, %v4824_v40, %v4826_v43  ;;  %vm6490_vm4 = vcmp.eq.f32.partialorder %v2010_v27, %v4564_v39 }
 0x535   : > { %1939 = vrot.lane.b32.xlu0 %v6450_v10, %s4386_s19  ;;  %1971 = vrot.lane.b32.xlu1 %v6453_v9, %s4386_s19  ;;  %vm6495_vm5 = vcmp.eq.f32.partialorder %v2011_v56, %v4568_v41 }
 0x536   : > { %3777 = vmatmul.mubr.msk.f32.gmra.mrb[36].mxu1 %vm357_vm0, %v2744_v53  ;;  %v2517_v53 = vadd.s32 32, %v4637_v42 }
 0x537   : > { %2928 = vmatprep.mubr.f32.mxu1 %v7938_v48 }
 0x53a   : > { %3778 = vmatmul.mubr.msk.f32.gmra.mrb[38].mxu1 %vm357_vm0, %v2745_v19 }
 0x53b   : > { %2934 = vmatprep.mubr.f32.mxu1 %v7938_v48 }
 0x53e   : > { %3779 = vmatmul.mubr.msk.f32.gmra.mrb[40].mxu1 %vm357_vm0, %v2746_v52 }
 0x53f   : > { %2940 = vmatprep.mubr.f32.mxu1 %v7938_v48 }
 0x542   : > { %3780 = vmatmul.mubr.msk.f32.gmra.mrb[42].mxu1 %vm357_vm0, %v2747_v23 }
 0x543   : > { %2946 = vmatprep.mubr.f32.mxu1 %v7938_v48 }
 0x546   : > { %3781 = vmatmul.mubr.msk.f32.gmra.mrb[44].mxu1 %vm357_vm0, %v2748_v26 }
 0x547   : > { %2952 = vmatprep.mubr.f32.mxu1 %v7938_v48 }
 0x54a   : > { %3782 = vmatmul.mubr.msk.f32.gmra.mrb[46].mxu1 %vm357_vm0, %v2749_v24 }
 0x56b   : > { %v1910_v59 = vpop.permute.xlu0 %1909  ;;  %v1942_v25 = vpop.permute.xlu1 %1941 }
 0x56c   : > { %v1974_v32 = vsel %vm1973_vm2, %v1910_v59, %v1942_v25  ;;  %v1990_v19 = vsel %vm1973_vm2, %v1942_v25, %v1910_v59 }
 0x56d   : > { %v2014_v40 = vsel %vm6490_vm4, %v1974_v32, -inf  ;;  %v2015_v43 = vsel %vm6495_vm5, %v1990_v19, -inf }
 0x56e   : > { %v6508_v2 = vmax.f32 %v6088_v37, %v2014_v40  ;;  %v6511_v52 = vmax.f32 %v6091_v8, %v2015_v43 }
 0x56f   : > { %v1912_v30 = vpop.permute.xlu0 %1911  ;;  %v1944_v23 = vpop.permute.xlu1 %1943 }
 0x570   : > { %v1975_v6 = vsel %vm1973_vm2, %v1912_v30, %v1944_v23  ;;  %v1991_v26 = vsel %vm1973_vm2, %v1944_v23, %v1912_v30  ;;  %2110 = vrot.lane.b32.xlu1 %v6511_v52, %s4387_s20  ;;  %2078 = vrot.lane.b32.xlu0 %v6508_v2, %s4387_s20 }
 0x571   : > { %v2016_v37 = vsel %vm6490_vm4, %v1975_v6, -inf  ;;  %v2017_v8 = vsel %vm6495_vm5, %v1991_v26, -inf }
 0x572   : > { %v6526_v0 = vmax.f32 %v6110_v58, %v2016_v37  ;;  %v6529_v24 = vmax.f32 %v6113_v51, %v2017_v8 }
 0x573   : > { %v1914_v27 = vpop.permute.xlu0 %1913  ;;  %v1946_v56 = vpop.permute.xlu1 %1945 }
 0x574   : > { %v1976_v59 = vsel %vm1973_vm2, %v1914_v27, %v1946_v56  ;;  %v1992_v25 = vsel %vm1973_vm2, %v1946_v56, %v1914_v27  ;;  %2112 = vrot.lane.b32.xlu1 %v6529_v24, %s4387_s20  ;;  %2080 = vrot.lane.b32.xlu0 %v6526_v0, %s4387_s20 }
 0x575   : > { %v2018_v58 = vsel %vm6490_vm4, %v1976_v59, -inf  ;;  %v2019_v51 = vsel %vm6495_vm5, %v1992_v25, -inf }
 0x576   : > { %v6544_v32 = vmax.f32 %v6141_v12, %v2018_v58  ;;  %v6547_v19 = vmax.f32 %v6144_v60, %v2019_v51 }
 0x577   : > { %v1916_v40 = vpop.permute.xlu0 %1915  ;;  %v1948_v43 = vpop.permute.xlu1 %1947 }
 0x578   : > { %v1977_v30 = vsel %vm1973_vm2, %v1916_v40, %v1948_v43  ;;  %v1993_v23 = vsel %vm1973_vm2, %v1948_v43, %v1916_v40  ;;  %2114 = vrot.lane.b32.xlu1 %v6547_v19, %s4387_s20  ;;  %2082 = vrot.lane.b32.xlu0 %v6544_v32, %s4387_s20 }
 0x579   : > { %v2020_v12 = vsel %vm6490_vm4, %v1977_v30, -inf  ;;  %v2021_v60 = vsel %vm6495_vm5, %v1993_v23, -inf }
 0x57a   : > { %v6562_v6 = vmax.f32 %v6191_v18, %v2020_v12  ;;  %v6565_v26 = vmax.f32 %v6194_v14, %v2021_v60 }
 0x57b   : > { %v1918_v37 = vpop.permute.xlu0 %1917  ;;  %v1950_v8 = vpop.permute.xlu1 %1949 }
 0x57c   : > { %v1978_v27 = vsel %vm1973_vm2, %v1918_v37, %v1950_v8  ;;  %v1994_v56 = vsel %vm1973_vm2, %v1950_v8, %v1918_v37  ;;  %2116 = vrot.lane.b32.xlu1 %v6565_v26, %s4387_s20  ;;  %2084 = vrot.lane.b32.xlu0 %v6562_v6, %s4387_s20 }
 0x57d   : > { %v2022_v18 = vsel %vm6490_vm4, %v1978_v27, -inf  ;;  %v2023_v14 = vsel %vm6495_vm5, %v1994_v56, -inf }
 0x57e   : > { %v6580_v59 = vmax.f32 %v6219_v33, %v2022_v18  ;;  %v6583_v25 = vmax.f32 %v6222_v21, %v2023_v14 }
 0x57f   : > { %v1920_v58 = vpop.permute.xlu0 %1919  ;;  %v1952_v51 = vpop.permute.xlu1 %1951 }
 0x580   : > { %v1979_v40 = vsel %vm1973_vm2, %v1920_v58, %v1952_v51  ;;  %v1995_v43 = vsel %vm1973_vm2, %v1952_v51, %v1920_v58  ;;  %2118 = vrot.lane.b32.xlu1 %v6583_v25, %s4387_s20  ;;  %2086 = vrot.lane.b32.xlu0 %v6580_v59, %s4387_s20 }
 0x581   : > { %v2024_v33 = vsel %vm6490_vm4, %v1979_v40, -inf  ;;  %v2025_v21 = vsel %vm6495_vm5, %v1995_v43, -inf }
 0x582   : > { %v6598_v30 = vmax.f32 %v6237_v13, %v2024_v33  ;;  %v6601_v23 = vmax.f32 %v6240_v49, %v2025_v21 }
 0x583   : > { %v1922_v12 = vpop.permute.xlu0 %1921  ;;  %v1954_v60 = vpop.permute.xlu1 %1953 }
 0x584   : > { %v1980_v37 = vsel %vm1973_vm2, %v1922_v12, %v1954_v60  ;;  %v1996_v8 = vsel %vm1973_vm2, %v1954_v60, %v1922_v12  ;;  %2120 = vrot.lane.b32.xlu1 %v6601_v23, %s4387_s20  ;;  %2088 = vrot.lane.b32.xlu0 %v6598_v30, %s4387_s20 }
 0x585   : > { %v2026_v13 = vsel %vm6490_vm4, %v1980_v37, -inf  ;;  %v2027_v49 = vsel %vm6495_vm5, %v1996_v8, -inf }
 0x586   : > { %v6616_v27 = vmax.f32 %v6261_v38, %v2026_v13  ;;  %v6619_v56 = vmax.f32 %v6264_v16, %v2027_v49 }
 0x587   : > { %v1924_v18 = vpop.permute.xlu0 %1923  ;;  %v1956_v14 = vpop.permute.xlu1 %1955 }
 0x588   : > { %v1981_v58 = vsel %vm1973_vm2, %v1924_v18, %v1956_v14  ;;  %v1997_v51 = vsel %vm1973_vm2, %v1956_v14, %v1924_v18  ;;  %2122 = vrot.lane.b32.xlu1 %v6619_v56, %s4387_s20  ;;  %2090 = vrot.lane.b32.xlu0 %v6616_v27, %s4387_s20 }
 0x589   : > { %v2028_v38 = vsel %vm6490_vm4, %v1981_v58, -inf  ;;  %v2029_v16 = vsel %vm6495_vm5, %v1997_v51, -inf }
 0x58a   : > { %v6634_v40 = vmax.f32 %v6281_v15, %v2028_v38  ;;  %v6637_v43 = vmax.f32 %v6284_v22, %v2029_v16 }
 0x58b   : > { %v1926_v33 = vpop.permute.xlu0 %1925  ;;  %v1958_v21 = vpop.permute.xlu1 %1957 }
 0x58c   : > { %v1982_v12 = vsel %vm1973_vm2, %v1926_v33, %v1958_v21  ;;  %v1998_v60 = vsel %vm1973_vm2, %v1958_v21, %v1926_v33  ;;  %2124 = vrot.lane.b32.xlu1 %v6637_v43, %s4387_s20  ;;  %2092 = vrot.lane.b32.xlu0 %v6634_v40, %s4387_s20 }
 0x58d   : > { %v2030_v15 = vsel %vm6490_vm4, %v1982_v12, -inf  ;;  %v2031_v22 = vsel %vm6495_vm5, %v1998_v60, -inf }
 0x58e   : > { %v6652_v37 = vmax.f32 %v6302_v46, %v2030_v15  ;;  %v6655_v8 = vmax.f32 %v6305_v35, %v2031_v22 }
 0x58f   : > { %v1928_v13 = vpop.permute.xlu0 %1927  ;;  %v1960_v49 = vpop.permute.xlu1 %1959 }
 0x590   : > { %v1983_v18 = vsel %vm1973_vm2, %v1928_v13, %v1960_v49  ;;  %v1999_v14 = vsel %vm1973_vm2, %v1960_v49, %v1928_v13  ;;  %2126 = vrot.lane.b32.xlu1 %v6655_v8, %s4387_s20  ;;  %2094 = vrot.lane.b32.xlu0 %v6652_v37, %s4387_s20 }
 0x591   : > { %v2032_v46 = vsel %vm6490_vm4, %v1983_v18, -inf  ;;  %v2033_v35 = vsel %vm6495_vm5, %v1999_v14, -inf }
 0x592   : > { %v6670_v58 = vmax.f32 %v6323_v7, %v2032_v46  ;;  %v6673_v51 = vmax.f32 %v6326_v62, %v2033_v35 }
 0x593   : > { %v1930_v38 = vpop.permute.xlu0 %1929  ;;  %v1962_v16 = vpop.permute.xlu1 %1961 }
 0x594   : > { %v1984_v33 = vsel %vm1973_vm2, %v1930_v38, %v1962_v16  ;;  %v2000_v21 = vsel %vm1973_vm2, %v1962_v16, %v1930_v38  ;;  %2128 = vrot.lane.b32.xlu1 %v6673_v51, %s4387_s20  ;;  %2096 = vrot.lane.b32.xlu0 %v6670_v58, %s4387_s20  ;;  %v2578_v38 = vadd.s32 1, %v4553_v29 }
 0x595   : > { %v2034_v7 = vsel %vm6490_vm4, %v1984_v33, -inf  ;;  %v2035_v62 = vsel %vm6495_vm5, %v2000_v21, -inf }
 0x596   : > { %v6688_v12 = vmax.f32 %v6344_v28, %v2034_v7  ;;  %v6691_v60 = vmax.f32 %v6347_v63, %v2035_v62  ;;  %v6731_v62 = vmul.u32 16, %v4553_v29 }
 0x597   : > { %v1932_v15 = vpop.permute.xlu0 %1931  ;;  %v1964_v22 = vpop.permute.xlu1 %1963 }
 0x598   : > { %v1985_v13 = vsel %vm1973_vm2, %v1932_v15, %v1964_v22  ;;  %v2001_v49 = vsel %vm1973_vm2, %v1964_v22, %v1932_v15  ;;  %2130 = vrot.lane.b32.xlu1 %v6691_v60, %s4387_s20  ;;  %2098 = vrot.lane.b32.xlu0 %v6688_v12, %s4387_s20  ;;  %vm2546_vm7 = vcmp.ge.s32.totalorder %v4637_v42, %v6731_v62 }
 0x599   : > { %v2036_v28 = vsel %vm6490_vm4, %v1985_v13, -inf  ;;  %v2037_v63 = vsel %vm6495_vm5, %v2001_v49, -inf  ;;  %v6733_v13 = vmul.u32 16, %v2578_v38  ;;  %vm2547_vm15 = vcmp.ge.s32.totalorder %v6106_v61, %v6731_v62 }
 0x59a   : > { %v6706_v18 = vmax.f32 %v6365_v36, %v2036_v28  ;;  %v6709_v14 = vmax.f32 %v6368_v4, %v2037_v63 }
 0x59b   : > { %v1934_v46 = vpop.permute.xlu0 %1933  ;;  %v1966_v35 = vpop.permute.xlu1 %1965  ;;  %vm2580_vm8 = vcmp.lt.s32.totalorder %v4637_v42, %v6733_v13  ;;  %vm2581_vm1 = vcmp.lt.s32.totalorder %v6106_v61, %v6733_v13  ;;  %v2523_v61 = vadd.s32 80, %v4637_v42 }
 0x59c   : > { %v1986_v16 = vsel %vm1973_vm2, %v1934_v46, %v1966_v35  ;;  %v2002_v33 = vsel %vm1973_vm2, %v1966_v35, %v1934_v46  ;;  %2132 = vrot.lane.b32.xlu1 %v6709_v14, %s4387_s20  ;;  %2100 = vrot.lane.b32.xlu0 %v6706_v18, %s4387_s20  ;;  %vm6785_vm13 = vmand %vm2546_vm7, %vm2580_vm8 }
 0x59d   : > { %v2038_v36 = vsel %vm6490_vm4, %v1986_v16, -inf  ;;  %v2039_v4 = vsel %vm6495_vm5, %v2002_v33, -inf  ;;  %v2529_v16 = vadd.s32 128, %v4637_v42  ;;  %v2530_v33 = vadd.s32 136, %v4637_v42 }
 0x59e   : > { %v6725_v21 = vmax.f32 %v6386_v20, %v2038_v36  ;;  %v6728_v7 = vmax.f32 %v6389_v17, %v2039_v4 }
 0x59f   : > { %v1936_v15 = vpop.permute.xlu0 %1935  ;;  %v1968_v22 = vpop.permute.xlu1 %1967  ;;  %vm2562_vm9 = vcmp.ge.s32.totalorder %v2529_v16, %v6731_v62  ;;  %vm2563_vm10 = vcmp.ge.s32.totalorder %v2530_v33, %v6731_v62  ;;  %vm2596_vm11 = vcmp.lt.s32.totalorder %v2529_v16, %v6733_v13  ;;  %vm2597_vm12 = vcmp.lt.s32.totalorder %v2530_v33, %v6733_v13 }
 0x5a0   : > { %v1987_v49 = vsel %vm1973_vm2, %v1936_v15, %v1968_v22  ;;  %v2003_v28 = vsel %vm1973_vm2, %v1968_v22, %v1936_v15  ;;  %2134 = vrot.lane.b32.xlu1 %v6728_v7, %s4387_s20  ;;  %2102 = vrot.lane.b32.xlu0 %v6725_v21, %s4387_s20  ;;  %vm6789_vm14 = vmand %vm2562_vm9, %vm2596_vm11  ;;  %v2516_v33 = vadd.s32 24, %v4637_v42 }
 0x5a1   : > { %v2040_v20 = vsel %vm6490_vm4, %v1987_v49, -inf  ;;  %v2041_v17 = vsel %vm6495_vm5, %v2003_v28, -inf  ;;  %vm6808_vm3 = vmand %vm2563_vm10, %vm2597_vm12  ;;  %v2535_v28 = vadd.s32 176, %v4637_v42 }
 0x5a2   : > { %v6748_v63 = vmax.f32 %v6407_v5, %v2040_v20  ;;  %v6751_v46 = vmax.f32 %v6410_v11, %v2041_v17  ;;  %v2531_v5 = vadd.s32 144, %v4637_v42 }
 0x5a3   : > { %v1938_v35 = vpop.permute.xlu0 %1937  ;;  %v1970_v38 = vpop.permute.xlu1 %1969 }
 0x5a4   : > { %v1988_v36 = vsel %vm1973_vm2, %v1938_v35, %v1970_v38  ;;  %v2004_v4 = vsel %vm1973_vm2, %v1970_v38, %v1938_v35  ;;  %2136 = vrot.lane.b32.xlu1 %v6751_v46, %s4387_s20  ;;  %2104 = vrot.lane.b32.xlu0 %v6748_v63, %s4387_s20  ;;  %vm2564_vm6 = vcmp.ge.s32.totalorder %v2531_v5, %v6731_v62  ;;  %v2536_v35 = vadd.s32 184, %v4637_v42 }
 0x5a5   : > { %v2042_v11 = vsel %vm6490_vm4, %v1988_v36, -inf  ;;  %v2043_v15 = vsel %vm6495_vm5, %v2004_v4, -inf  ;;  %v2515_v36 = vadd.s32 16, %v4637_v42  ;;  %vm2598_vm7 = vcmp.lt.s32.totalorder %v2531_v5, %v6733_v13 }
 0x5a6   : > { %v6775_v22 = vmax.f32 %v6429_v55, %v2042_v11  ;;  %v6778_v49 = vmax.f32 %v6432_v31, %v2043_v15  ;;  %v2532_v55 = vadd.s32 152, %v4637_v42  ;;  %vm6855_vm10 = vmand %vm2564_vm6, %vm2598_vm7  ;;  %v2518_v5 = vadd.s32 40, %v4637_v42 }
 0x5a7   : > { %v1940_v20 = vpop.permute.xlu0 %1939  ;;  %v1972_v17 = vpop.permute.xlu1 %1971  ;;  %vm2548_vm11 = vcmp.ge.s32.totalorder %v2515_v36, %v6731_v62  ;;  %vm2582_vm12 = vcmp.lt.s32.totalorder %v2515_v36, %v6733_v13  ;;  %v2538_v36 = vadd.s32 200, %v4637_v42 }
 0x5a8   : > { %v1989_v31 = vsel %vm1973_vm2, %v1940_v20, %v1972_v17  ;;  %v2005_v38 = vsel %vm1973_vm2, %v1972_v17, %v1940_v20  ;;  %2138 = vrot.lane.b32.xlu1 %v6778_v49, %s4387_s20  ;;  %2106 = vrot.lane.b32.xlu0 %v6775_v22, %s4387_s20  ;;  %vm4155_vm2 = vmpackc.low %vm6808_vm3, %vm6789_vm14  ;;  %vm2599_vm8 = vcmp.lt.s32.totalorder %v2532_v55, %v6733_v13  ;;  %v1060_v17 = vmul.f32 16.0, %v4564_v39 }
 0x5a9   : > { %v2044_v4 = vsel %vm6490_vm4, %v1989_v31, -inf  ;;  %v2045_v11 = vsel %vm6495_vm5, %v2005_v38, -inf  ;;  %4156 = vmatprep.subr.msk.bf16.mxu0 %vm4155_vm2, %v4389_v57  ;;  %vm6837_vm4 = vmand %vm2547_vm15, %vm2581_vm1  ;;  %vm2565_vm5 = vcmp.ge.s32.totalorder %v2532_v55, %v6731_v62  ;;  %4188 = vmatprep.subr.msk.bf16.mxu1 %vm4155_vm2, %v4389_v57  ;;  %vm2549_vm14 = vcmp.ge.s32.totalorder %v2516_v33, %v6731_v62 }
 0x5aa   : > { %v6825_v15 = vmax.f32 %v6450_v10, %v2044_v4  ;;  %v6828_v20 = vmax.f32 %v6453_v9, %v2045_v11  ;;  %vm4157_vm9 = vmpackc.low %vm6837_vm4, %vm6785_vm13  ;;  %v2533_v10 = vadd.s32 160, %v4637_v42  ;;  %v2534_v9 = vadd.s32 168, %v4637_v42 }
 0x5ab   : > { %4158 = vmatpush3.bf16.msk.msra.mxu0 %vm4157_vm9, %v4389_v57  ;;  %vm2631_vm13 = vmand %vm2565_vm5, %vm2599_vm8  ;;  %vm2583_vm15 = vcmp.lt.s32.totalorder %v2516_v33, %v6733_v13  ;;  %4190 = vmatpush3.bf16.msk.msra.mxu1 %vm4157_vm9, %v4389_v57  ;;  %v2519_v55 = vadd.s32 48, %v4637_v42  ;;  %v2520_v31 = vadd.s32 56, %v4637_v42  ;;  %v2537_v38 = vadd.s32 192, %v4637_v42 }
 0x5ac   : > { %2140 = vrot.lane.b32.xlu1 %v6828_v20, %s4387_s20  ;;  %2108 = vrot.lane.b32.xlu0 %v6825_v15, %s4387_s20  ;;  %vm4159_vm1 = vmpackc.low %vm2631_vm13, %vm6855_vm10  ;;  %vm2566_vm6 = vcmp.ge.s32.totalorder %v2533_v10, %v6731_v62  ;;  %vm2600_vm2 = vcmp.lt.s32.totalorder %v2533_v10, %v6733_v13  ;;  %vm2567_vm4 = vcmp.ge.s32.totalorder %v2534_v9, %v6731_v62  ;;  %v2521_v4 = vadd.s32 64, %v4637_v42 }
 0x5ad   : > { %4160 = vmatprep.subr.msk.bf16.mxu0 %vm4159_vm1, %v4389_v57  ;;  %vm2614_vm3 = vmand %vm2548_vm11, %vm2582_vm12  ;;  %4192 = vmatprep.subr.msk.bf16.mxu1 %vm4159_vm1, %v4389_v57  ;;  %vm2601_vm5 = vcmp.lt.s32.totalorder %v2534_v9, %v6733_v13  ;;  %vm2550_vm10 = vcmp.ge.s32.totalorder %v2517_v53, %v6731_v62  ;;  %vm2584_vm11 = vcmp.lt.s32.totalorder %v2517_v53, %v6733_v13  ;;  %v2522_v11 = vadd.s32 72, %v4637_v42 }
 0x5ae   : > { %vm2615_vm7 = vmand %vm2549_vm14, %vm2583_vm15  ;;  %vm2551_vm13 = vcmp.ge.s32.totalorder %v2518_v5, %v6731_v62  ;;  %vm2585_vm14 = vcmp.lt.s32.totalorder %v2518_v5, %v6733_v13  ;;  %v2539_v33 = vadd.s32 208, %v4637_v42  ;;  %v2540_v10 = vadd.s32 216, %v4637_v42 }
 0x5af   : > { %vm4161_vm8 = vmpackc.low %vm2615_vm7, %vm2614_vm3  ;;  %vm2568_vm3 = vcmp.ge.s32.totalorder %v2535_v28, %v6731_v62  ;;  %vm2569_vm7 = vcmp.ge.s32.totalorder %v2536_v35, %v6731_v62  ;;  %v2524_v9 = vadd.s32 88, %v4637_v42 }
 0x5b0   : > { %4162 = vmatpush3.bf16.msk.msra.mxu0 %vm4161_vm8, %v4389_v57  ;;  %vm6878_vm9 = vmand %vm2566_vm6, %vm2600_vm2  ;;  %4194 = vmatpush3.bf16.msk.msra.mxu1 %vm4161_vm8, %v4389_v57  ;;  %vm2602_vm6 = vcmp.lt.s32.totalorder %v2535_v28, %v6733_v13 }
 0x5b1   : > { %vm2633_vm12 = vmand %vm2567_vm4, %vm2601_vm5  ;;  %vm2603_vm4 = vcmp.lt.s32.totalorder %v2536_v35, %v6733_v13 }
 0x5b2   : > { %vm4163_vm15 = vmpackc.low %vm2633_vm12, %vm6878_vm9  ;;  %vm2552_vm9 = vcmp.ge.s32.totalorder %v2519_v55, %v6731_v62  ;;  %vm2553_vm12 = vcmp.ge.s32.totalorder %v2520_v31, %v6731_v62 }
 0x5b3   : > { %4164 = vmatprep.subr.msk.bf16.mxu0 %vm4163_vm15, %v4389_v57  ;;  %vm2616_vm1 = vmand %vm2550_vm10, %vm2584_vm11  ;;  %4196 = vmatprep.subr.msk.bf16.mxu1 %vm4163_vm15, %v4389_v57  ;;  %vm2586_vm10 = vcmp.lt.s32.totalorder %v2519_v55, %v6733_v13 }
 0x5b4   : > { %vm2617_vm2 = vmand %vm2551_vm13, %vm2585_vm14  ;;  %vm2587_vm13 = vcmp.lt.s32.totalorder %v2520_v31, %v6733_v13  ;;  %v2541_v31 = vadd.s32 224, %v4637_v42 }
 0x5b5   : > { %vm4165_vm5 = vmpackc.low %vm2617_vm2, %vm2616_vm1  ;;  %vm2570_vm1 = vcmp.ge.s32.totalorder %v2537_v38, %v6731_v62  ;;  %vm2571_vm2 = vcmp.ge.s32.totalorder %v2538_v36, %v6731_v62 }
 0x5b6   : > { %4166 = vmatpush3.bf16.msk.msra.mxu0 %vm4165_vm5, %v4389_v57  ;;  %vm6900_vm8 = vmand %vm2568_vm3, %vm2602_vm6  ;;  %4198 = vmatpush3.bf16.msk.msra.mxu1 %vm4165_vm5, %v4389_v57  ;;  %vm2604_vm3 = vcmp.lt.s32.totalorder %v2537_v38, %v6733_v13  ;;  %v2542_v38 = vadd.s32 232, %v4637_v42 }
 0x5b7   : > { %vm2635_vm11 = vmand %vm2569_vm7, %vm2603_vm4  ;;  %vm2605_vm7 = vcmp.lt.s32.totalorder %v2538_v36, %v6733_v13  ;;  %v2526_v36 = vadd.s32 104, %v4637_v42 }
 0x5b8   : > { %vm4167_vm14 = vmpackc.low %vm2635_vm11, %vm6900_vm8  ;;  %vm2554_vm8 = vcmp.ge.s32.totalorder %v2521_v4, %v6731_v62  ;;  %vm2555_vm11 = vcmp.ge.s32.totalorder %v2522_v11, %v6731_v62 }
 0x5b9   : > { %4168 = vmatprep.subr.msk.bf16.mxu0 %vm4167_vm14, %v4389_v57  ;;  %vm2618_vm15 = vmand %vm2552_vm9, %vm2586_vm10  ;;  %4200 = vmatprep.subr.msk.bf16.mxu1 %vm4167_vm14, %v4389_v57  ;;  %vm2588_vm9 = vcmp.lt.s32.totalorder %v2521_v4, %v6733_v13 }
 0x5ba   : > { %vm2619_vm6 = vmand %vm2553_vm12, %vm2587_vm13  ;;  %vm2589_vm12 = vcmp.lt.s32.totalorder %v2522_v11, %v6733_v13 }
 0x5bb   : > { %vm4169_vm4 = vmpackc.low %vm2619_vm6, %vm2618_vm15  ;;  %vm2572_vm15 = vcmp.ge.s32.totalorder %v2539_v33, %v6731_v62  ;;  %vm2573_vm6 = vcmp.ge.s32.totalorder %v2540_v10, %v6731_v62 }
 0x5bc   : > { %4170 = vmatpush3.bf16.msk.msra.mxu0 %vm4169_vm4, %v4389_v57  ;;  %vm6922_vm5 = vmand %vm2570_vm1, %vm2604_vm3  ;;  %4202 = vmatpush3.bf16.msk.msra.mxu1 %vm4169_vm4, %v4389_v57  ;;  %vm2606_vm1 = vcmp.lt.s32.totalorder %v2539_v33, %v6733_v13 }
 0x5bd   : > { %vm2637_vm10 = vmand %vm2571_vm2, %vm2605_vm7  ;;  %vm2607_vm2 = vcmp.lt.s32.totalorder %v2540_v10, %v6733_v13 }
 0x5be   : > { %vm4171_vm13 = vmpackc.low %vm2637_vm10, %vm6922_vm5  ;;  %vm2556_vm5 = vcmp.ge.s32.totalorder %v2523_v61, %v6731_v62  ;;  %vm2557_vm10 = vcmp.ge.s32.totalorder %v2524_v9, %v6731_v62 }
 0x5bf   : > { %4172 = vmatprep.subr.msk.bf16.mxu0 %vm4171_vm13, %v4389_v57  ;;  %vm2620_vm14 = vmand %vm2554_vm8, %vm2588_vm9  ;;  %4204 = vmatprep.subr.msk.bf16.mxu1 %vm4171_vm13, %v4389_v57  ;;  %vm2590_vm8 = vcmp.lt.s32.totalorder %v2523_v61, %v6733_v13  ;;  %vm2591_vm13 = vcmp.lt.s32.totalorder %v2524_v9, %v6733_v13 }
 0x5c0   : > { %vm2621_vm3 = vmand %vm2555_vm11, %vm2589_vm12 }
 0x5c1   : > { %vm4173_vm7 = vmpackc.low %vm2621_vm3, %vm2620_vm14 }
 0x5c2   : > { %4174 = vmatpush3.bf16.msk.msra.mxu0 %vm4173_vm7, %v4389_v57  ;;  %vm2638_vm4 = vmand %vm2572_vm15, %vm2606_vm1  ;;  %4206 = vmatpush3.bf16.msk.msra.mxu1 %vm4173_vm7, %v4389_v57  ;;  %vm2142_vm15 = vcmp.lt.s32.totalorder %v4553_v29, 8  ;;  %vm2575_vm7 = vcmp.ge.s32.totalorder %v2542_v38, %v6731_v62 }
 0x5c3   : > { %vm2639_vm9 = vmand %vm2573_vm6, %vm2607_vm2  ;;  %v2179_v53 = vsel %vm2142_vm15, %v4830_v47, %v4828_v44  ;;  %v2180_v5 = vsel %vm2142_vm15, %v4828_v44, %v4830_v47  ;;  %v2525_v47 = vadd.s32 96, %v4637_v42  ;;  %vm2574_vm2 = vcmp.ge.s32.totalorder %v2541_v31, %v6731_v62 }
 0x5c4   : > { %vm4175_vm11 = vmpackc.low %vm2639_vm9, %vm2638_vm4  ;;  %vm6962_vm1 = vcmp.eq.f32.partialorder %v2180_v5, %v4564_v39  ;;  %vm6967_vm6 = vcmp.eq.f32.partialorder %v2179_v53, %v4568_v41  ;;  %vm2608_vm4 = vcmp.lt.s32.totalorder %v2541_v31, %v6733_v13 }
 0x5c5   : > { %4176 = vmatprep.subr.msk.bf16.mxu0 %vm4175_vm11, %v4389_v57  ;;  %vm2622_vm12 = vmand %vm2556_vm5, %vm2590_vm8  ;;  %4208 = vmatprep.subr.msk.bf16.mxu1 %vm4175_vm11, %v4389_v57  ;;  %vm2609_vm5 = vcmp.lt.s32.totalorder %v2542_v38, %v6733_v13  ;;  %vm2558_vm9 = vcmp.ge.s32.totalorder %v2525_v47, %v6731_v62  ;;  %v2544_v38 = vadd.s32 248, %v4637_v42 }
 0x5c6   : > { %vm2623_vm14 = vmand %vm2557_vm10, %vm2591_vm13  ;;  %vm2559_vm10 = vcmp.ge.s32.totalorder %v2526_v36, %v6731_v62  ;;  %vm2592_vm13 = vcmp.lt.s32.totalorder %v2525_v47, %v6733_v13 }
 0x5c7   : > { %vm4177_vm3 = vmpackc.low %vm2623_vm14, %vm2622_vm12  ;;  %vm2593_vm12 = vcmp.lt.s32.totalorder %v2526_v36, %v6733_v13  ;;  %v2527_v36 = vadd.s32 112, %v4637_v42 }
 0x5c8   : > { %4178 = vmatpush3.bf16.msk.msra.mxu0 %vm4177_vm3, %v4389_v57  ;;  %4210 = vmatpush3.bf16.msk.msra.mxu1 %vm4177_vm3, %v4389_v57  ;;  %vm6993_vm8 = vmand %vm2574_vm2, %vm2608_vm4  ;;  %vm2577_vm4 = vcmp.ge.s32.totalorder %v2544_v38, %v6731_v62 }
 0x5c9   : > { %vm7010_vm11 = vmand %vm2575_vm7, %vm2609_vm5 }
 0x5ca   : > { %vm4179_vm14 = vmpackc.low %vm7010_vm11, %vm6993_vm8  ;;  %vm2611_vm8 = vcmp.lt.s32.totalorder %v2544_v38, %v6733_v13  ;;  %vm2560_vm11 = vcmp.ge.s32.totalorder %v2527_v36, %v6731_v62 }
 0x5cb   : > { %4180 = vmatprep.subr.msk.bf16.mxu0 %vm4179_vm14, %v4389_v57  ;;  %vm7040_vm3 = vmand %vm2558_vm9, %vm2592_vm13  ;;  %4212 = vmatprep.subr.msk.bf16.mxu1 %vm4179_vm14, %v4389_v57 }
 0x5cc   : > { %vm7049_vm7 = vmand %vm2559_vm10, %vm2593_vm12 }
 0x5cd   : > { %vm4181_vm9 = vmpackc.low %vm7049_vm7, %vm7040_vm3  ;;  %vm2594_vm3 = vcmp.lt.s32.totalorder %v2527_v36, %v6733_v13 }
 0x5ce   : > { %4182 = vmatpush3.bf16.msk.msra.mxu0 %vm4181_vm9, %v4389_v57  ;;  %4214 = vmatpush3.bf16.msk.msra.mxu1 %vm4181_vm9, %v4389_v57  ;;  %vm7097_vm13 = vmand %vm2577_vm4, %vm2611_vm8 }
 0x5cf   : > { %vm2626_vm7 = vmand %vm2560_vm11, %vm2594_vm3 }
 0x5e1   : > { %v7015_v5 = vpop.f32.mrb[16].mxu1 }
 0x5e2   : > { %v2079_v35 = vpop.permute.xlu0 %2078  ;;  %v2111_v55 = vpop.permute.xlu1 %2110 }
 0x5e3   : > { %v2143_v16 = vsel %vm2142_vm15, %v2079_v35, %v2111_v55  ;;  %v2159_v44 = vsel %vm2142_vm15, %v2111_v55, %v2079_v35  ;;  %v2543_v35 = vadd.s32 240, %v4637_v42 }
 0x5e4   : > { %v2183_v4 = vsel %vm6962_vm1, %v2159_v44, -inf  ;;  %v2184_v11 = vsel %vm6967_vm6, %v2143_v16, -inf  ;;  %v7027_v16 = vpop.f32.mrb[17].mxu1 }
 0x5e5   : > { %v6986_v33 = vmax.f32 %v6508_v2, %v2183_v4  ;;  %v6989_v45 = vmax.f32 %v6511_v52, %v2184_v11  ;;  %vm2576_vm2 = vcmp.ge.s32.totalorder %v2543_v35, %v6731_v62  ;;  %vm2610_vm5 = vcmp.lt.s32.totalorder %v2543_v35, %v6733_v13  ;;  %v7070_v9 = vpop.f32.mrb[18].mxu1 }
 0x5e6   : > { %v2081_v10 = vpop.permute.xlu0 %2080  ;;  %v2113_v61 = vpop.permute.xlu1 %2112  ;;  %vm7079_vm10 = vmand %vm2576_vm2, %vm2610_vm5 }
 0x5e7   : > { %v2144_v2 = vsel %vm2142_vm15, %v2081_v10, %v2113_v61  ;;  %v2160_v52 = vsel %vm2142_vm15, %v2113_v61, %v2081_v10  ;;  %2247 = vrot.lane.b32.xlu0 %v6986_v33, %s4388_s21  ;;  %2279 = vrot.lane.b32.xlu1 %v6989_v45, %s4388_s21  ;;  %vm4183_vm12 = vmpackc.low %vm7097_vm13, %vm7079_vm10 }
 0x5e8   : > { %v2185_v55 = vsel %vm6962_vm1, %v2160_v52, -inf  ;;  %v2186_v31 = vsel %vm6967_vm6, %v2144_v2, -inf  ;;  %4184 = vmatprep.subr.msk.bf16.mxu0 %vm4183_vm12, %v4389_v57  ;;  %4216 = vmatprep.subr.msk.bf16.mxu1 %vm4183_vm12, %v4389_v57 }
 0x5e9   : > { %v7030_v44 = vmax.f32 %v6526_v0, %v2185_v55  ;;  %v7033_v4 = vmax.f32 %v6529_v24, %v2186_v31  ;;  %v2528_v55 = vadd.s32 120, %v4637_v42  ;;  %v7085_v31 = vpop.f32.mrb[19].mxu1 }
 0x5ea   : > { %v2083_v10 = vpop.permute.xlu0 %2082  ;;  %v2115_v61 = vpop.permute.xlu1 %2114 }
 0x5eb   : > { %v2145_v24 = vsel %vm2142_vm15, %v2083_v10, %v2115_v61  ;;  %v2161_v47 = vsel %vm2142_vm15, %v2115_v61, %v2083_v10  ;;  %2249 = vrot.lane.b32.xlu0 %v7030_v44, %s4388_s21  ;;  %2281 = vrot.lane.b32.xlu1 %v7033_v4, %s4388_s21  ;;  %vm2561_vm14 = vcmp.ge.s32.totalorder %v2528_v55, %v6731_v62  ;;  %v7117_v38 = vpop.f32.mrb[20].mxu1 }
 0x5ec   : > { %v2187_v2 = vsel %vm6962_vm1, %v2161_v47, -inf  ;;  %v2188_v52 = vsel %vm6967_vm6, %v2145_v24, -inf  ;;  %vm2595_vm2 = vcmp.lt.s32.totalorder %v2528_v55, %v6733_v13  ;;  %v7125_v0 = vpop.f32.mrb[21].mxu1 }
 0x5ed   : > { %v7088_v11 = vmax.f32 %v6544_v32, %v2187_v2  ;;  %v7091_v10 = vmax.f32 %v6547_v19, %v2188_v52  ;;  %vm2627_vm4 = vmand %vm2561_vm14, %vm2595_vm2 }
 0x5ee   : > { %v2085_v42 = vpop.permute.xlu0 %2084  ;;  %v2117_v61 = vpop.permute.xlu1 %2116  ;;  %vm4185_vm5 = vmpackc.low %vm2627_vm4, %vm2626_vm7 }
 0x5ef   : > { %v2146_v32 = vsel %vm2142_vm15, %v2085_v42, %v2117_v61  ;;  %v2162_v19 = vsel %vm2142_vm15, %v2117_v61, %v2085_v42  ;;  %2251 = vrot.lane.b32.xlu0 %v7088_v11, %s4388_s21  ;;  %2283 = vrot.lane.b32.xlu1 %v7091_v10, %s4388_s21 }
 0x5f0   : > { %v2189_v62 = vsel %vm6962_vm1, %v2162_v19, -inf  ;;  %v2190_v13 = vsel %vm6967_vm6, %v2146_v32, -inf  ;;  %4186 = vmatpush3.bf16.msk.msra.mxu0 %vm4185_vm5, %v4389_v57  ;;  %4218 = vmatpush3.bf16.msk.msra.mxu1 %vm4185_vm5, %v4389_v57 }
 0x5f1   : > { %v7128_v24 = vmax.f32 %v6562_v6, %v2189_v62  ;;  %v7131_v47 = vmax.f32 %v6565_v26, %v2190_v13  ;;  %v7143_v6 = vpop.f32.mrb[22].mxu1 }
 0x5f2   : > { %v2087_v36 = vpop.permute.xlu0 %2086  ;;  %v2119_v2 = vpop.permute.xlu1 %2118 }
 0x5f3   : > { %v2147_v52 = vsel %vm2142_vm15, %v2087_v36, %v2119_v2  ;;  %v2163_v53 = vsel %vm2142_vm15, %v2119_v2, %v2087_v36  ;;  %2253 = vrot.lane.b32.xlu0 %v7128_v24, %s4388_s21  ;;  %2285 = vrot.lane.b32.xlu1 %v7131_v47, %s4388_s21  ;;  %v7149_v55 = vpop.f32.mrb[23].mxu1 }
 0x5f4   : > { %v2191_v26 = vsel %vm6962_vm1, %v2163_v53, -inf  ;;  %v2192_v57 = vsel %vm6967_vm6, %v2147_v52, -inf  ;;  %v7165_v13 = vpop.f32.mrb[24].mxu1 }
 0x5f5   : > { %v7152_v35 = vmax.f32 %v6580_v59, %v2191_v26  ;;  %v7155_v42 = vmax.f32 %v6583_v25, %v2192_v57  ;;  %v7171_v36 = vpop.f32.mrb[25].mxu1 }
 0x5f6   : > { %v2089_v61 = vpop.permute.xlu0 %2088  ;;  %v2121_v32 = vpop.permute.xlu1 %2120 }
 0x5f7   : > { %v2148_v19 = vsel %vm2142_vm15, %v2089_v61, %v2121_v32  ;;  %v2164_v62 = vsel %vm2142_vm15, %v2121_v32, %v2089_v61  ;;  %2255 = vrot.lane.b32.xlu0 %v7152_v35, %s4388_s21  ;;  %2287 = vrot.lane.b32.xlu1 %v7155_v42, %s4388_s21  ;;  %v7187_v32 = vpop.f32.mrb[26].mxu1 }
 0x5f8   : > { %v2193_v59 = vsel %vm6962_vm1, %v2164_v62, -inf  ;;  %v2194_v25 = vsel %vm6967_vm6, %v2148_v19, -inf  ;;  %v7193_v19 = vpop.f32.mrb[27].mxu1 }
 0x5f9   : > { %v7174_v2 = vmax.f32 %v6598_v30, %v2193_v59  ;;  %v7177_v52 = vmax.f32 %v6601_v23, %v2194_v25 }
 0x5fa   : > { %v2091_v53 = vpop.permute.xlu0 %2090  ;;  %v2123_v26 = vpop.permute.xlu1 %2122 }
 0x5fb   : > { %v2149_v57 = vsel %vm2142_vm15, %v2091_v53, %v2123_v26  ;;  %v2165_v61 = vsel %vm2142_vm15, %v2123_v26, %v2091_v53  ;;  %2257 = vrot.lane.b32.xlu0 %v7174_v2, %s4388_s21  ;;  %2289 = vrot.lane.b32.xlu1 %v7177_v52, %s4388_s21 }
 0x5fc   : > { %v2195_v30 = vsel %vm6962_vm1, %v2165_v61, -inf  ;;  %v2196_v23 = vsel %vm6967_vm6, %v2149_v57, -inf  ;;  %v7209_v57 = vpop.f32.mrb[28].mxu1 }
 0x5fd   : > { %v7196_v62 = vmax.f32 %v6616_v27, %v2195_v30  ;;  %v7199_v59 = vmax.f32 %v6619_v56, %v2196_v23  ;;  %v7215_v61 = vpop.f32.mrb[29].mxu1 }
 0x5fe   : > { %v2093_v25 = vpop.permute.xlu0 %2092  ;;  %v2125_v53 = vpop.permute.xlu1 %2124 }
 0x5ff   : > { %v2150_v26 = vsel %vm2142_vm15, %v2093_v25, %v2125_v53  ;;  %v2166_v48 = vsel %vm2142_vm15, %v2125_v53, %v2093_v25  ;;  %2259 = vrot.lane.b32.xlu0 %v7196_v62, %s4388_s21  ;;  %2291 = vrot.lane.b32.xlu1 %v7199_v59, %s4388_s21 }
 0x600   : > { %v2197_v27 = vsel %vm6962_vm1, %v2166_v48, -inf  ;;  %v2198_v56 = vsel %vm6967_vm6, %v2150_v26, -inf  ;;  %v7231_v48 = vpop.f32.mrb[30].mxu1 }
 0x601   : > { %v7218_v30 = vmax.f32 %v6634_v40, %v2197_v27  ;;  %v7221_v23 = vmax.f32 %v6637_v43, %v2198_v56  ;;  %v7237_v26 = vpop.f32.mrb[31].mxu1 }
 0x602   : > { %v2095_v25 = vpop.permute.xlu0 %2094  ;;  %v2127_v53 = vpop.permute.xlu1 %2126 }
 0x603   : > { %8060 = vst [vmem:[#allocation34_spill] sm:$0xff] %v7218_v30  ;;  %8061 = vst [vmem:[#allocation35_spill] sm:$0xff] %v7221_v23  ;;  %v2151_v3 = vsel %vm2142_vm15, %v2095_v25, %v2127_v53  ;;  %v2167_v54 = vsel %vm2142_vm15, %v2127_v53, %v2095_v25  ;;  %2261 = vrot.lane.b32.xlu0 %v7218_v30, %s4388_s21  ;;  %2293 = vrot.lane.b32.xlu1 %v7221_v23, %s4388_s21 }
 0x604   : > { %v2199_v40 = vsel %vm6962_vm1, %v2167_v54, -inf  ;;  %v2200_v43 = vsel %vm6967_vm6, %v2151_v3, -inf  ;;  %v7253_v54 = vpop.f32.mrb[32].mxu1 }
 0x605   : > { %v7240_v27 = vmax.f32 %v6652_v37, %v2199_v40  ;;  %v7243_v56 = vmax.f32 %v6655_v8, %v2200_v43  ;;  %v7259_v8 = vpop.f32.mrb[33].mxu1 }
 0x606   : > { %v2097_v25 = vpop.permute.xlu0 %2096  ;;  %v2129_v53 = vpop.permute.xlu1 %2128 }
 0x607   : > { %8062 = vst [vmem:[#allocation36_spill] sm:$0xff] %v7240_v27  ;;  %8063 = vst [vmem:[#allocation37_spill] sm:$0xff] %v7243_v56  ;;  %v2152_v23 = vsel %vm2142_vm15, %v2097_v25, %v2129_v53  ;;  %v2168_v30 = vsel %vm2142_vm15, %v2129_v53, %v2097_v25  ;;  %2263 = vrot.lane.b32.xlu0 %v7240_v27, %s4388_s21  ;;  %2295 = vrot.lane.b32.xlu1 %v7243_v56, %s4388_s21 }
 0x608   : > { %v2201_v3 = vsel %vm6962_vm1, %v2168_v30, -inf  ;;  %v2202_v37 = vsel %vm6967_vm6, %v2152_v23, -inf  ;;  %v7275_v30 = vpop.f32.mrb[34].mxu1 }
 0x609   : > { %v7262_v40 = vmax.f32 %v6670_v58, %v2201_v3  ;;  %v7265_v43 = vmax.f32 %v6673_v51, %v2202_v37  ;;  %v7281_v23 = vpop.f32.mrb[35].mxu1 }
 0x60a   : > { %v2099_v25 = vpop.permute.xlu0 %2098  ;;  %v2131_v53 = vpop.permute.xlu1 %2130 }
 0x60b   : > { %8064 = vst [vmem:[#allocation38_spill] sm:$0xff] %v7262_v40  ;;  %8065 = vst [vmem:[#allocation39_spill] sm:$0xff] %v7265_v43  ;;  %v2153_v56 = vsel %vm2142_vm15, %v2099_v25, %v2131_v53  ;;  %v2169_v27 = vsel %vm2142_vm15, %v2131_v53, %v2099_v25  ;;  %2265 = vrot.lane.b32.xlu0 %v7262_v40, %s4388_s21  ;;  %2297 = vrot.lane.b32.xlu1 %v7265_v43, %s4388_s21 }
 0x60c   : > { %v2203_v58 = vsel %vm6962_vm1, %v2169_v27, -inf  ;;  %v2204_v51 = vsel %vm6967_vm6, %v2153_v56, -inf  ;;  %v7297_v27 = vpop.f32.mrb[36].mxu1 }
 0x60d   : > { %v7284_v3 = vmax.f32 %v6688_v12, %v2203_v58  ;;  %v7287_v37 = vmax.f32 %v6691_v60, %v2204_v51  ;;  %v7303_v56 = vpop.f32.mrb[37].mxu1 }
 0x60e   : > { %v2101_v25 = vpop.permute.xlu0 %2100  ;;  %v2133_v53 = vpop.permute.xlu1 %2132 }
 0x60f   : > { %8066 = vst [vmem:[#allocation40_spill] sm:$0xff] %v7284_v3  ;;  %8067 = vst [vmem:[#allocation41_spill] sm:$0xff] %v7287_v37  ;;  %v2154_v43 = vsel %vm2142_vm15, %v2101_v25, %v2133_v53  ;;  %v2170_v40 = vsel %vm2142_vm15, %v2133_v53, %v2101_v25  ;;  %2267 = vrot.lane.b32.xlu0 %v7284_v3, %s4388_s21  ;;  %2299 = vrot.lane.b32.xlu1 %v7287_v37, %s4388_s21 }
 0x610   : > { %v2205_v12 = vsel %vm6962_vm1, %v2170_v40, -inf  ;;  %v2206_v60 = vsel %vm6967_vm6, %v2154_v43, -inf  ;;  %v7319_v40 = vpop.f32.mrb[38].mxu1 }
 0x611   : > { %v7306_v58 = vmax.f32 %v6706_v18, %v2205_v12  ;;  %v7309_v51 = vmax.f32 %v6709_v14, %v2206_v60  ;;  %v7325_v43 = vpop.f32.mrb[39].mxu1 }
 0x612   : > { %v2103_v25 = vpop.permute.xlu0 %2102  ;;  %v2135_v53 = vpop.permute.xlu1 %2134 }
 0x613   : > { %8068 = vst [vmem:[#allocation42_spill] sm:$0xff] %v7306_v58  ;;  %8069 = vst [vmem:[#allocation43_spill] sm:$0xff] %v7309_v51  ;;  %v2155_v37 = vsel %vm2142_vm15, %v2103_v25, %v2135_v53  ;;  %v2171_v3 = vsel %vm2142_vm15, %v2135_v53, %v2103_v25  ;;  %2269 = vrot.lane.b32.xlu0 %v7306_v58, %s4388_s21  ;;  %2301 = vrot.lane.b32.xlu1 %v7309_v51, %s4388_s21 }
 0x614   : > { %v2207_v18 = vsel %vm6962_vm1, %v2171_v3, -inf  ;;  %v2208_v14 = vsel %vm6967_vm6, %v2155_v37, -inf  ;;  %v7341_v3 = vpop.f32.mrb[40].mxu1 }
 0x615   : > { %v7328_v12 = vmax.f32 %v6725_v21, %v2207_v18  ;;  %v7331_v60 = vmax.f32 %v6728_v7, %v2208_v14  ;;  %v7347_v37 = vpop.f32.mrb[41].mxu1 }
 0x616   : > { %v2105_v25 = vpop.permute.xlu0 %2104  ;;  %v2137_v53 = vpop.permute.xlu1 %2136 }
 0x617   : > { %8070 = vst [vmem:[#allocation44_spill] sm:$0xff] %v7328_v12  ;;  %8071 = vst [vmem:[#allocation45_spill] sm:$0xff] %v7331_v60  ;;  %v2156_v51 = vsel %vm2142_vm15, %v2105_v25, %v2137_v53  ;;  %v2172_v58 = vsel %vm2142_vm15, %v2137_v53, %v2105_v25  ;;  %2271 = vrot.lane.b32.xlu0 %v7328_v12, %s4388_s21  ;;  %2303 = vrot.lane.b32.xlu1 %v7331_v60, %s4388_s21 }
 0x618   : > { %v2209_v21 = vsel %vm6962_vm1, %v2172_v58, -inf  ;;  %v2210_v7 = vsel %vm6967_vm6, %v2156_v51, -inf  ;;  %v7363_v58 = vpop.f32.mrb[42].mxu1 }
 0x619   : > { %v7350_v18 = vmax.f32 %v6748_v63, %v2209_v21  ;;  %v7353_v14 = vmax.f32 %v6751_v46, %v2210_v7  ;;  %v7369_v51 = vpop.f32.mrb[43].mxu1 }
 0x61a   : > { %v2107_v25 = vpop.permute.xlu0 %2106  ;;  %v2139_v53 = vpop.permute.xlu1 %2138 }
 0x61b   : > { %8072 = vst [vmem:[#allocation46_spill] sm:$0xff] %v7350_v18  ;;  %8073 = vst [vmem:[#allocation47_spill] sm:$0xff] %v7353_v14  ;;  %v2157_v60 = vsel %vm2142_vm15, %v2107_v25, %v2139_v53  ;;  %v2173_v12 = vsel %vm2142_vm15, %v2139_v53, %v2107_v25  ;;  %2273 = vrot.lane.b32.xlu0 %v7350_v18, %s4388_s21  ;;  %2305 = vrot.lane.b32.xlu1 %v7353_v14, %s4388_s21 }
 0x61c   : > { %v2211_v63 = vsel %vm6962_vm1, %v2173_v12, -inf  ;;  %v2212_v46 = vsel %vm6967_vm6, %v2157_v60, -inf  ;;  %v7385_v12 = vpop.f32.mrb[44].mxu1 }
 0x61d   : > { %v7372_v21 = vmax.f32 %v6775_v22, %v2211_v63  ;;  %v7375_v7 = vmax.f32 %v6778_v49, %v2212_v46  ;;  %8074 = vst [vmem:[#allocation48_spill] sm:$0xff] %v7385_v12  ;;  %v7391_v60 = vpop.f32.mrb[45].mxu1 }
 0x61e   : > { %v2109_v25 = vpop.permute.xlu0 %2108  ;;  %v2141_v53 = vpop.permute.xlu1 %2140  ;;  %8075 = vst [vmem:[#allocation49_spill] sm:$0xff] %v7391_v60 }
 0x61f   : > { %v2158_v14 = vsel %vm2142_vm15, %v2109_v25, %v2141_v53  ;;  %v2174_v18 = vsel %vm2142_vm15, %v2141_v53, %v2109_v25  ;;  %2275 = vrot.lane.b32.xlu0 %v7372_v21, %s4388_s21  ;;  %2307 = vrot.lane.b32.xlu1 %v7375_v7, %s4388_s21  ;;  %v7399_v25 = vpop.f32.mrb[46].mxu1  ;;  %vm2311_vm15 = vcmp.lt.s32.totalorder %v4553_v29, 120 }
 0x620   : > { %v2213_v22 = vsel %vm6962_vm1, %v2174_v18, -inf  ;;  %v2214_v49 = vsel %vm6967_vm6, %v2158_v14, -inf  ;;  %8078 = vst [vmem:[#allocation52_spill] sm:$0xff] %v7399_v25  ;;  %v7405_v28 = vpop.f32.mrb[47].mxu1  ;;  %v1061_v18 = vmul.f32 16.0, %v4568_v41 }
 0x621   : > { %v7394_v63 = vmax.f32 %v6825_v15, %v2213_v22  ;;  %v7397_v46 = vmax.f32 %v6828_v20, %v2214_v49  ;;  %8079 = vst [vmem:[#allocation53_spill] sm:$0xff] %v7405_v28  ;;  %v8080_v15 = vcvt.s32.f32 %v4553_v29  ;;  %v8081_v20 = vcvt.s32.f32 %v4557_v34 }
 0x623   : > { %8076 = vst [vmem:[#allocation50_spill] sm:$0xff] %v7394_v63  ;;  %8077 = vst [vmem:[#allocation51_spill] sm:$0xff] %v7397_v46  ;;  %2277 = vrot.lane.b32.xlu0 %v7394_v63, %s4388_s21  ;;  %2309 = vrot.lane.b32.xlu1 %v7397_v46, %s4388_s21  ;;  %v7411_v14 = vsub.f32 %v8080_v15, %v1060_v17  ;;  %v7415_v53 = vsub.f32 %v8081_v20, %v1061_v18 }
 0x625   : > { %v2959_v22 = vsub.f32 %v7411_v14, %v7015_v5  ;;  %v2960_v49 = vsub.f32 %v7415_v53, %v7027_v16  ;;  %v2961_v46 = vsub.f32 %v7411_v14, %v7070_v9  ;;  %v2962_v17 = vsub.f32 %v7415_v53, %v7085_v31  ;;  %v8082_v9 = vld [vmem:[#allocation33_spill] sm:$0xff] }
 0x626   : > { %v2963_v34 = vsub.f32 %v7411_v14, %v7117_v38  ;;  %v2964_v18 = vsub.f32 %v7415_v53, %v7125_v0  ;;  %v2965_v5 = vsub.f32 %v7411_v14, %v7143_v6  ;;  %v2966_v16 = vsub.f32 %v7415_v53, %v7149_v55 }
 0x627   : > { %v2991_v28 = vand.u32 2147483647, %v2959_v22  ;;  %v2992_v25 = vand.u32 2147483647, %v2960_v49  ;;  %v2967_v15 = vsub.f32 %v7411_v14, %v7165_v13  ;;  %v2348_v31 = vsel %vm2311_vm15, %v8082_v9, %v4832_v50 }
 0x628   : > { %v2349_v38 = vsel %vm2311_vm15, %v4832_v50, %v8082_v9  ;;  %v2993_v0 = vand.u32 2147483647, %v2961_v46  ;;  %v2994_v6 = vand.u32 2147483647, %v2962_v17  ;;  %v2995_v20 = vand.u32 2147483647, %v2963_v34 }
 0x629   : > { %vm3023_vm1 = vcmp.lt.f32.partialorder %v2991_v28, 0.5  ;;  %vm3024_vm6 = vcmp.lt.f32.partialorder %v2992_v25, 0.5  ;;  %v2996_v22 = vand.u32 2147483647, %v2964_v18  ;;  %v2997_v55 = vand.u32 2147483647, %v2965_v5 }
 0x62a   : > { %v2968_v13 = vsub.f32 %v7415_v53, %v7171_v36  ;;  %v2998_v49 = vand.u32 2147483647, %v2966_v16  ;;  %v2999_v60 = vand.u32 2147483647, %v2967_v15  ;;  %v2969_v63 = vsub.f32 %v7411_v14, %v7187_v32 }
 0x62b   : > { %v2970_v12 = vsub.f32 %v7415_v53, %v7193_v19  ;;  %v2971_v50 = vsub.f32 %v7411_v14, %v7209_v57  ;;  %v2972_v46 = vsub.f32 %v7415_v53, %v7215_v61  ;;  %v8083_v25 = vmov 0.0  }
 0x62c   : > { %v7455_v28 = vsel %vm3023_vm1, 1.0, %v8083_v25  ;;  %v7458_v17 = vsel %vm3024_vm6, 1.0, %v8083_v25  ;;  %vm3025_vm8 = vcmp.lt.f32.partialorder %v2993_v0, 0.5  ;;  %vm3026_vm9 = vcmp.lt.f32.partialorder %v2994_v6, 0.5 }
 0x62d   : > { %vm7461_vm10 = vcmp.eq.f32.partialorder %v2348_v31, %v4564_v39  ;;  %vm7466_vm13 = vcmp.eq.f32.partialorder %v2349_v38, %v4568_v41  ;;  %vm3027_vm11 = vcmp.lt.f32.partialorder %v2995_v20, 0.5  ;;  %vm3028_vm12 = vcmp.lt.f32.partialorder %v2996_v22, 0.5 }
 0x62e   : > { %vm3029_vm14 = vcmp.lt.f32.partialorder %v2997_v55, 0.5  ;;  %v3000_v19 = vand.u32 2147483647, %v2968_v13  ;;  %vm3030_vm3 = vcmp.lt.f32.partialorder %v2998_v49, 0.5  ;;  %vm3031_vm2 = vcmp.lt.f32.partialorder %v2999_v60, 0.5 }
 0x62f   : > { %v3001_v57 = vand.u32 2147483647, %v2969_v63  ;;  %v3002_v61 = vand.u32 2147483647, %v2970_v12  ;;  %v3003_v34 = vand.u32 2147483647, %v2971_v50  ;;  %v2973_v39 = vsub.f32 %v7411_v14, %v7231_v48 }
 0x630   : > { %v3004_v18 = vand.u32 2147483647, %v2972_v46  ;;  %v2974_v5 = vsub.f32 %v7415_v53, %v7237_v26  ;;  %v7476_v41 = vsel %vm3025_vm8, 1.0, %v8083_v25  ;;  %v7480_v16 = vsel %vm3026_vm9, 1.0, %v8083_v25 }
 0x631   : > { %v2975_v63 = vsub.f32 %v7411_v14, %v7253_v54  ;;  %v2976_v12 = vsub.f32 %v7415_v53, %v7259_v8  ;;  %v7488_v48 = vsel %vm3027_vm11, 1.0, %v8083_v25  ;;  %v7492_v26 = vsel %vm3028_vm12, 1.0, %v8083_v25 }
 0x632   : > { %v7496_v15 = vsel %vm3029_vm14, 1.0, %v8083_v25  ;;  %vm3032_vm7 = vcmp.lt.f32.partialorder %v3000_v19, 0.5  ;;  %v7500_v9 = vsel %vm3030_vm3, 1.0, %v8083_v25  ;;  %v7504_v54 = vsel %vm3031_vm2, 1.0, %v8083_v25 }
 0x633   : > { %vm3033_vm4 = vcmp.lt.f32.partialorder %v3001_v57, 0.5  ;;  %vm3034_vm5 = vcmp.lt.f32.partialorder %v3002_v61, 0.5  ;;  %vm3035_vm1 = vcmp.lt.f32.partialorder %v3003_v34, 0.5  ;;  %vm3036_vm6 = vcmp.lt.f32.partialorder %v3004_v18, 0.5 }
 0x634   : > { %v3005_v8 = vand.u32 2147483647, %v2973_v39  ;;  %v3006_v31 = vand.u32 2147483647, %v2974_v5  ;;  %v7507_v6 = vsel %vm3032_vm7, 1.0, %v8083_v25  ;;  %v2977_v55 = vsub.f32 %v7411_v14, %v7275_v30 }
 0x635   : > { %v3007_v20 = vand.u32 2147483647, %v2975_v63  ;;  %v3008_v22 = vand.u32 2147483647, %v2976_v12  ;;  %v7516_v49 = vsel %vm3033_vm4, 1.0, %v8083_v25  ;;  %v7519_v50 = vsel %vm3034_vm5, 1.0, %v8083_v25 }
 0x636   : > { %v7527_v30 = vsel %vm3035_vm1, 1.0, %v8083_v25  ;;  %v7531_v57 = vsel %vm3036_vm6, 1.0, %v8083_v25  ;;  %vm3037_vm8 = vcmp.lt.f32.partialorder %v3005_v8, 0.5  ;;  %vm3038_vm9 = vcmp.lt.f32.partialorder %v3006_v31, 0.5 }
 0x637   : > { %vm3039_vm11 = vcmp.lt.f32.partialorder %v3007_v20, 0.5  ;;  %vm3040_vm12 = vcmp.lt.f32.partialorder %v3008_v22, 0.5  ;;  %v3009_v12 = vand.u32 2147483647, %v2977_v55  ;;  %v2978_v34 = vsub.f32 %v7415_v53, %v7281_v23 }
 0x638   : > { %v7548_v31 = vsel %vm3037_vm8, 1.0, %v8083_v25  ;;  %v7551_v23 = vsel %vm3038_vm9, 1.0, %v8083_v25  ;;  %v2979_v22 = vsub.f32 %v7411_v14, %v7297_v27  ;;  %v8091_v27 = vld [vmem:[#allocation5_spill] sm:$0xff] }
 0x639   : > { %vm3041_vm14 = vcmp.lt.f32.partialorder %v3009_v12, 0.5 }
 0x659   : > { %v2248_v38 = vpop.permute.xlu0 %2247  ;;  %v2280_v0 = vpop.permute.xlu1 %2279 }
 0x65a   : > { %v2312_v60 = vsel %vm2311_vm15, %v2248_v38, %v2280_v0  ;;  %v2328_v13 = vsel %vm2311_vm15, %v2280_v0, %v2248_v38  ;;  %v8088_v0 = vld [vmem:[#allocation3_spill] sm:$0xff] }
 0x65b   : > { %v2352_v46 = vsel %vm7461_vm10, %v2312_v60, -inf  ;;  %v2353_v19 = vsel %vm7466_vm13, %v2328_v13, -inf }
 0x65c   : > { %v2384_v61 = vmax.f32 %v6986_v33, %v2352_v46  ;;  %v2385_v39 = vmax.f32 %v6989_v45, %v2353_v19 }
 0x65d   : > { %v2250_v5 = vpop.permute.xlu0 %2249  ;;  %v2282_v63 = vpop.permute.xlu1 %2281 }
 0x65e   : > { %v2416_v38 = vsub.f32 %v4647_v1, %v2384_v61  ;;  %v2417_v18 = vsub.f32 %v8088_v0, %v2385_v39  ;;  %v2313_v60 = vsel %vm2311_vm15, %v2250_v5, %v2282_v63  ;;  %v2329_v33 = vsel %vm2311_vm15, %v2282_v63, %v2250_v5  ;;  %v8089_v0 = vld [vmem:[#allocation2_spill] sm:$0xff] }
 0x65f   : > { %v2354_v45 = vsel %vm7461_vm10, %v2313_v60, -inf  ;;  %v2355_v8 = vsel %vm7466_vm13, %v2329_v33, -inf  ;;  %v7557_v39 = vsel %vm3039_vm11, 1.0, %v8083_v25  ;;  %v7561_v5 = vsel %vm3040_vm12, 1.0, %v8083_v25 }
 0x660   : > { %v2448_v1 = vmul.f32 1.442695, %v2416_v38  ;;  %v2450_v55 = vmul.f32 1.442695, %v2417_v18  ;;  %v2386_v13 = vmax.f32 %v7030_v44, %v2354_v45  ;;  %v2387_v46 = vmax.f32 %v7033_v4, %v2355_v8  ;;  %v8090_v18 = vld [vmem:[#allocation4_spill] sm:$0xff] }
 0x661   : > { %v2252_v19 = vpop.permute.xlu0 %2251  ;;  %v2284_v61 = vpop.permute.xlu1 %2283  ;;  %v3010_v63 = vand.u32 2147483647, %v2978_v34  ;;  %vm3585_vm12 = vcmask 7168  }
 0x662   : > { %4244 = vpow2.f32 %v2448_v1  ;;  %v2418_v38 = vsub.f32 %v8089_v0, %v2386_v13  ;;  %v2419_v60 = vsub.f32 %v8090_v18, %v2387_v46  ;;  %v2314_v44 = vsel %vm2311_vm15, %v2252_v19, %v2284_v61 }
 0x663   : > { %4246 = vpow2.f32 %v2450_v55  ;;  %v2330_v4 = vsel %vm2311_vm15, %v2284_v61, %v2252_v19  ;;  %v2356_v20 = vsel %vm7461_vm10, %v2314_v44, -inf  ;;  %v7579_v46 = vsel %vm3041_vm14, 1.0, %v8083_v25 }
 0x664   : > { %v2452_v33 = vmul.f32 1.442695, %v2418_v38  ;;  %v2454_v34 = vmul.f32 1.442695, %v2419_v60  ;;  %v2357_v45 = vsel %vm7466_vm13, %v2330_v4, -inf  ;;  %v2388_v8 = vmax.f32 %v7088_v11, %v2356_v20 }
 0x665   : > { %v2389_v1 = vmax.f32 %v7091_v10, %v2357_v45  ;;  %v2254_v13 = vpop.permute.xlu0 %2253  ;;  %v2286_v55 = vpop.permute.xlu1 %2285  ;;  %vm3042_vm3 = vcmp.lt.f32.partialorder %v3010_v63, 0.5  ;;  %v2980_v19 = vsub.f32 %v7415_v53, %v7303_v56  ;;  %v8092_v10 = vld [vmem:[#allocation6_spill] sm:$0xff] }
 0x666   : > { %4248 = vpow2.f32 %v2452_v33  ;;  %v2420_v61 = vsub.f32 %v8091_v27, %v2388_v8  ;;  %v2315_v0 = vsel %vm2311_vm15, %v2254_v13, %v2286_v55  ;;  %v2331_v11 = vsel %vm2311_vm15, %v2286_v55, %v2254_v13  ;;  %v8094_v55 = vld [vmem:[#allocation8_spill] sm:$0xff] }
 0x667   : > { %4250 = vpow2.f32 %v2454_v34  ;;  %v2421_v38 = vsub.f32 %v8092_v10, %v2389_v1  ;;  %v2358_v12 = vsel %vm7461_vm10, %v2315_v0, -inf  ;;  %v2359_v63 = vsel %vm7466_vm13, %v2331_v11, -inf  ;;  %v8093_v1 = vld [vmem:[#allocation7_spill] sm:$0xff] }
 0x668   : > { %v2456_v18 = vmul.f32 1.442695, %v2420_v61  ;;  %v2390_v56 = vmax.f32 %v7128_v24, %v2358_v12  ;;  %v2391_v60 = vmax.f32 %v7131_v47, %v2359_v63  ;;  %v7596_v44 = vsel %vm3042_vm3, 1.0, %v8083_v25 }
 0x669   : > { %v2458_v4 = vmul.f32 1.442695, %v2421_v38  ;;  %v2256_v20 = vpop.permute.xlu0 %2255  ;;  %v2288_v33 = vpop.permute.xlu1 %2287  ;;  %v3011_v34 = vand.u32 2147483647, %v2979_v22  ;;  %v3012_v45 = vand.u32 2147483647, %v2980_v19  ;;  %v2981_v8 = vsub.f32 %v7411_v14, %v7319_v40 }
 0x66a   : > { %4252 = vpow2.f32 %v2456_v18  ;;  %v2422_v13 = vsub.f32 %v8093_v1, %v2390_v56  ;;  %v2423_v27 = vsub.f32 %v8094_v55, %v2391_v60  ;;  %v2316_v24 = vsel %vm2311_vm15, %v2256_v20, %v2288_v33  ;;  %v8095_v60 = vld [vmem:[#allocation9_spill] sm:$0xff] }
 0x66b   : > { %4254 = vpow2.f32 %v2458_v4  ;;  %v2332_v47 = vsel %vm2311_vm15, %v2288_v33, %v2256_v20  ;;  %v2360_v61 = vsel %vm7461_vm10, %v2316_v24, -inf  ;;  %v2982_v22 = vsub.f32 %v7415_v53, %v7325_v43 }
 0x66c   : > { %v4245_v19 = vpop.eup %4244  ;;  %v2460_v40 = vmul.f32 1.442695, %v2422_v13  ;;  %v2462_v0 = vmul.f32 1.442695, %v2423_v27  ;;  %v2361_v11 = vsel %vm7466_vm13, %v2332_v47, -inf  ;;  %v2392_v10 = vmax.f32 %v7152_v35, %v2360_v61  ;;  %v8096_v35 = vld [vmem:[#allocation10_spill] sm:$0xff] }
 0x66d   : > { %v4247_v38 = vpop.eup %4246  ;;  %v3264_v12 = vmul.f32 %v4245_v19, %v7455_v28  ;;  %v2393_v63 = vmax.f32 %v7155_v42, %v2361_v11  ;;  %v2258_v18 = vpop.permute.xlu0 %2257  ;;  %vm3043_vm2 = vcmp.lt.f32.partialorder %v3011_v34, 0.5  ;;  %vm3044_vm7 = vcmp.lt.f32.partialorder %v3012_v45, 0.5 }
 0x66e   : > { %v2290_v56 = vpop.permute.xlu1 %2289  ;;  %4256 = vpow2.f32 %v2460_v40  ;;  %v3265_v43 = vmul.f32 %v4247_v38, %v7458_v17  ;;  %v2424_v4 = vsub.f32 %v8095_v60, %v2392_v10  ;;  %3183 = vmatprep.mubr.f32.mxu0 %v4247_v38  ;;  %v7629_v27 = vsel %vm3043_vm2, 1.0, %v8083_v25  ;;  %v8097_v10 = vld [vmem:[#allocation11_spill] sm:$0xff] }
 0x66f   : > { %v2317_v20 = vsel %vm2311_vm15, %v2258_v18, %v2290_v56  ;;  %4258 = vpow2.f32 %v2462_v0  ;;  %v2425_v33 = vsub.f32 %v8096_v35, %v2393_v63  ;;  %v2333_v28 = vsel %vm2311_vm15, %v2290_v56, %v2258_v18  ;;  %3184 = vmatmul.mubr.f32.vlgmr.msra.gmra.mrb[48].mxu0 %v4245_v19 }
 0x670   : > { %v2362_v42 = vsel %vm7461_vm10, %v2317_v20, -inf  ;;  %v4249_v1 = vpop.eup %4248  ;;  %v2464_v13 = vmul.f32 1.442695, %v2424_v4  ;;  %v2363_v17 = vsel %vm7466_vm13, %v2333_v28, -inf  ;;  %3360 = vmatprep.mubr.f32.mxu1 %v3265_v43  ;;  %v7635_v11 = vsel %vm3044_vm7, 1.0, %v8083_v25 }
 0x671   : > { %v2394_v55 = vmax.f32 %v7174_v2, %v2362_v42  ;;  %v4251_v24 = vpop.eup %4250  ;;  %v3266_v47 = vmul.f32 %v4249_v1, %v7476_v41  ;;  %v2466_v61 = vmul.f32 1.442695, %v2425_v33  ;;  %v2395_v40 = vmax.f32 %v7177_v52, %v2363_v17  ;;  %3361 = vmatmul.mubr.f32.vlgmr.msra.gmra.mrb[48].mxu1 %v3264_v12  ;;  %v2260_v19 = vpop.permute.xlu0 %2259  ;;  %v8098_v41 = vld [vmem:[#allocation12_spill] sm:$0xff] }
 0x672   : > { %v2292_v0 = vpop.permute.xlu1 %2291  ;;  %4260 = vpow2.f32 %v2464_v13  ;;  %v3267_v2 = vmul.f32 %v4251_v24, %v7480_v16  ;;  %3188 = vmatprep.mubr.f32.mxu0 %v4251_v24  ;;  %v7649_v43 = vand.u32 2147483647, %v2981_v8  ;;  %v7653_v42 = vand.u32 2147483647, %v2982_v22  ;;  %v8099_v13 = vld [vmem:[#allocation13_spill] sm:$0xff]  ;;  %v8100_v8 = vld [vmem:[#allocation14_spill] sm:$0xff] }
 0x673   : > { %v2426_v34 = vsub.f32 %v8097_v10, %v2394_v55  ;;  %v2318_v38 = vsel %vm2311_vm15, %v2260_v19, %v2292_v0  ;;  %4262 = vpow2.f32 %v2466_v61  ;;  %v2427_v63 = vsub.f32 %v8098_v41, %v2395_v40  ;;  %3189 = vmatmul.mubr.f32.gmra.mrb[50].mxu0 %v4249_v1  ;;  %v8102_v10 = vld [vmem:[#allocation35_spill] sm:$0xff] }
 0x674   : > { %v2334_v52 = vsel %vm2311_vm15, %v2292_v0, %v2260_v19  ;;  %v2364_v45 = vsel %vm7461_vm10, %v2318_v38, -inf  ;;  %v4253_v12 = vpop.eup %4252  ;;  %3365 = vmatprep.mubr.f32.mxu1 %v3267_v2  ;;  %v2983_v40 = vsub.f32 %v7411_v14, %v7341_v3  ;;  %vm3045_vm4 = vcmp.lt.f32.partialorder %v7649_v43, 0.5  ;;  %v8111_v43 = vld [vmem:[#allocation19_spill] sm:$0xff] }
 0x675   : > { %v2468_v18 = vmul.f32 1.442695, %v2426_v34  ;;  %v2365_v16 = vsel %vm7466_vm13, %v2334_v52, -inf  ;;  %v2396_v56 = vmax.f32 %v7196_v62, %v2364_v45  ;;  %v4255_v60 = vpop.eup %4254  ;;  %v3268_v4 = vmul.f32 %v4253_v12, %v7488_v48  ;;  %3366 = vmatmul.mubr.f32.gmra.mrb[50].mxu1 %v3266_v47  ;;  %v2262_v33 = vpop.permute.xlu0 %2261  ;;  %v8101_v47 = vld [vmem:[#allocation34_spill] sm:$0xff]  ;;  %v8103_v45 = vld [vmem:[#allocation15_spill] sm:$0xff] }
 0x676   : > { %v2470_v20 = vmul.f32 1.442695, %v2427_v63  ;;  %v2397_v35 = vmax.f32 %v7199_v59, %v2365_v16  ;;  %v2294_v28 = vpop.permute.xlu1 %2293  ;;  %v3269_v1 = vmul.f32 %v4255_v60, %v7492_v26  ;;  %3193 = vmatprep.mubr.f32.mxu0 %v4255_v60  ;;  %v2984_v63 = vsub.f32 %v7415_v53, %v7347_v37 }
 0x677   : > { %4264 = vpow2.f32 %v2468_v18  ;;  %v2428_v17 = vsub.f32 %v8099_v13, %v2396_v56  ;;  %v2319_v62 = vsel %vm2311_vm15, %v2262_v33, %v2294_v28  ;;  %v2335_v59 = vsel %vm2311_vm15, %v2294_v28, %v2262_v33  ;;  %3194 = vmatmul.mubr.f32.gmra.mrb[52].mxu0 %v4253_v12 }
 0x678   : > { %4266 = vpow2.f32 %v2470_v20  ;;  %v2429_v48 = vsub.f32 %v8100_v8, %v2397_v35  ;;  %v2366_v55 = vsel %vm7461_vm10, %v2319_v62, -inf  ;;  %v4257_v22 = vpop.eup %4256  ;;  %v2367_v26 = vsel %vm7466_vm13, %v2335_v59, -inf  ;;  %3370 = vmatprep.mubr.f32.mxu1 %v3269_v1  ;;  %v8105_v35 = vld [vmem:[#allocation36_spill] sm:$0xff] }
 0x679   : > { %v2472_v24 = vmul.f32 1.442695, %v2428_v17  ;;  %v2398_v61 = vmax.f32 %v8101_v47, %v2366_v55  ;;  %v4259_v19 = vpop.eup %4258  ;;  %v3270_v0 = vmul.f32 %v4257_v22, %v7496_v15  ;;  %v2399_v34 = vmax.f32 %v8102_v10, %v2367_v26  ;;  %3371 = vmatmul.mubr.f32.gmra.mrb[52].mxu1 %v3268_v4  ;;  %v2264_v38 = vpop.permute.xlu0 %2263  ;;  %v8104_v15 = vld [vmem:[#allocation16_spill] sm:$0xff]  ;;  %v8106_v17 = vld [vmem:[#allocation37_spill] sm:$0xff]  ;;  %v8108_v26 = vld [vmem:[#allocation18_spill] sm:$0xff] }
 0x67a   : > { %v2474_v2 = vmul.f32 1.442695, %v2429_v48  ;;  %v2296_v41 = vpop.permute.xlu1 %2295  ;;  %v3271_v52 = vmul.f32 %v4259_v19, %v7500_v9  ;;  %3198 = vmatprep.mubr.f32.mxu0 %v4259_v19  ;;  %vm3046_vm5 = vcmp.lt.f32.partialorder %v7653_v42, 0.5  ;;  %v8107_v55 = vld [vmem:[#allocation17_spill] sm:$0xff] }
 0x67b   : > { %4268 = vpow2.f32 %v2472_v24  ;;  %v2430_v12 = vsub.f32 %v8103_v45, %v2398_v61  ;;  %v2320_v18 = vsel %vm2311_vm15, %v2264_v38, %v2296_v41  ;;  %v2431_v16 = vsub.f32 %v8104_v15, %v2399_v34  ;;  %3199 = vmatmul.mubr.f32.gmra.mrb[54].mxu0 %v4257_v22  ;;  %v8110_v45 = vld [vmem:[#allocation39_spill] sm:$0xff] }
 0x67c   : > { %4270 = vpow2.f32 %v2474_v2  ;;  %v2336_v56 = vsel %vm2311_vm15, %v2296_v41, %v2264_v38  ;;  %v2368_v60 = vsel %vm7461_vm10, %v2320_v18, -inf  ;;  %v4261_v4 = vpop.eup %4260  ;;  %3375 = vmatprep.mubr.f32.mxu1 %v3271_v52  ;;  %v8109_v2 = vld [vmem:[#allocation38_spill] sm:$0xff]  ;;  %v7704_v34 = vsel %vm3045_vm4, 1.0, %v8083_v25 }
 0x67d   : > { %v2476_v20 = vmul.f32 1.442695, %v2430_v12  ;;  %v2369_v9 = vsel %vm7466_vm13, %v2336_v56, -inf  ;;  %v2400_v33 = vmax.f32 %v8105_v35, %v2368_v60  ;;  %v4263_v28 = vpop.eup %4262  ;;  %v3272_v1 = vmul.f32 %v4261_v4, %v7504_v54  ;;  %3376 = vmatmul.mubr.f32.gmra.mrb[54].mxu1 %v3270_v0  ;;  %v2266_v8 = vpop.permute.xlu0 %2265 }
 0x67e   : > { %v2478_v13 = vmul.f32 1.442695, %v2431_v16  ;;  %v2401_v62 = vmax.f32 %v8106_v17, %v2369_v9  ;;  %v2298_v48 = vpop.permute.xlu1 %2297  ;;  %v3273_v59 = vmul.f32 %v4263_v28, %v7507_v6  ;;  %3203 = vmatprep.mubr.f32.mxu0 %v4263_v28  ;;  %v7711_v16 = vsel %vm3046_vm5, 1.0, %v8083_v25  ;;  %v8113_v28 = vld [vmem:[#allocation40_spill] sm:$0xff] }
 0x67f   : > { %4272 = vpow2.f32 %v2476_v20  ;;  %v2432_v22 = vsub.f32 %v8107_v55, %v2400_v33  ;;  %v2321_v24 = vsel %vm2311_vm15, %v2266_v8, %v2298_v48  ;;  %v2337_v47 = vsel %vm2311_vm15, %v2298_v48, %v2266_v8  ;;  %3204 = vmatmul.mubr.f32.gmra.mrb[56].mxu0 %v4261_v4  ;;  %v8112_v4 = vld [vmem:[#allocation20_spill] sm:$0xff]  ;;  %v8114_v48 = vld [vmem:[#allocation41_spill] sm:$0xff] }
 0x680   : > { %4274 = vpow2.f32 %v2478_v13  ;;  %v2433_v54 = vsub.f32 %v8108_v26, %v2401_v62  ;;  %v2370_v61 = vsel %vm7461_vm10, %v2321_v24, -inf  ;;  %v2371_v6 = vsel %vm7466_vm13, %v2337_v47, -inf  ;;  %3380 = vmatprep.mubr.f32.mxu1 %v3273_v59 }
 0x681   : > { %v4265_v19 = vpop.eup %4264  ;;  %v2480_v0 = vmul.f32 1.442695, %v2432_v22  ;;  %v2402_v10 = vmax.f32 %v8109_v2, %v2370_v61  ;;  %v2403_v12 = vmax.f32 %v8110_v45, %v2371_v6  ;;  %3381 = vmatmul.mubr.f32.gmra.mrb[56].mxu1 %v3272_v1  ;;  %v2268_v18 = vpop.permute.xlu0 %2267  ;;  %v3015_v13 = vand.u32 2147483647, %v2983_v40  ;;  %v8116_v40 = vld [vmem:[#allocation22_spill] sm:$0xff] }
 0x682   : > { %v4267_v38 = vpop.eup %4266  ;;  %v3274_v41 = vmul.f32 %v4265_v19, %v7516_v49  ;;  %v2482_v52 = vmul.f32 1.442695, %v2433_v54  ;;  %v2300_v15 = vpop.permute.xlu1 %2299  ;;  %v7733_v24 = vand.u32 2147483647, %v2984_v63  ;;  %v8115_v54 = vld [vmem:[#allocation21_spill] sm:$0xff]  ;;  %v2985_v2 = vsub.f32 %v7411_v14, %v7363_v58  ;;  %v8120_v58 = vld [vmem:[#allocation24_spill] sm:$0xff] }
 0x683   : > { %4276 = vpow2.f32 %v2480_v0  ;;  %v3275_v56 = vmul.f32 %v4267_v38, %v7519_v50  ;;  %v2434_v60 = vsub.f32 %v8111_v43, %v2402_v10  ;;  %3208 = vmatprep.mubr.f32.mxu0 %v4267_v38  ;;  %v2322_v49 = vsel %vm2311_vm15, %v2268_v18, %v2300_v15  ;;  %v8117_v0 = vld [vmem:[#allocation42_spill] sm:$0xff] }
 0x684   : > { %4278 = vpow2.f32 %v2482_v52  ;;  %v2435_v20 = vsub.f32 %v8112_v4, %v2403_v12  ;;  %v2338_v9 = vsel %vm2311_vm15, %v2300_v15, %v2268_v18  ;;  %v2372_v42 = vsel %vm7461_vm10, %v2322_v49, -inf  ;;  %3209 = vmatmul.mubr.f32.gmra.mrb[58].mxu0 %v4265_v19  ;;  %v8118_v52 = vld [vmem:[#allocation43_spill] sm:$0xff] }
 0x685   : > { %v4269_v35 = vpop.eup %4268  ;;  %v2484_v33 = vmul.f32 1.442695, %v2434_v60  ;;  %v2373_v50 = vsel %vm7466_vm13, %v2338_v9, -inf  ;;  %v2404_v1 = vmax.f32 %v8113_v28, %v2372_v42  ;;  %3385 = vmatprep.mubr.f32.mxu1 %v3275_v56  ;;  %v2270_v55 = vpop.permute.xlu0 %2269  ;;  %vm3047_vm1 = vcmp.lt.f32.partialorder %v3015_v13, 0.5  ;;  %v8119_v56 = vld [vmem:[#allocation23_spill] sm:$0xff]  ;;  %v8121_v42 = vld [vmem:[#allocation44_spill] sm:$0xff] }
 0x686   : > { %v4271_v17 = vpop.eup %4270  ;;  %v3276_v62 = vmul.f32 %v4269_v35, %v7527_v30  ;;  %v2486_v8 = vmul.f32 1.442695, %v2435_v20  ;;  %v2405_v59 = vmax.f32 %v8114_v48, %v2373_v50  ;;  %3386 = vmatmul.mubr.f32.gmra.mrb[58].mxu1 %v3274_v41  ;;  %v2302_v22 = vpop.permute.xlu1 %2301  ;;  %vm3048_vm6 = vcmp.lt.f32.partialorder %v7733_v24, 0.5 }
 0x687   : > { %4280 = vpow2.f32 %v2484_v33  ;;  %v3277_v26 = vmul.f32 %v4271_v17, %v7531_v57  ;;  %v2436_v3 = vsub.f32 %v8115_v54, %v2404_v1  ;;  %3213 = vmatprep.mubr.f32.mxu0 %v4271_v17  ;;  %v2323_v30 = vsel %vm2311_vm15, %v2270_v55, %v2302_v22  ;;  %v8122_v17 = vld [vmem:[#allocation45_spill] sm:$0xff] }
 0x688   : > { %4282 = vpow2.f32 %v2486_v8  ;;  %v2437_v47 = vsub.f32 %v8116_v40, %v2405_v59  ;;  %v2339_v61 = vsel %vm2311_vm15, %v2302_v22, %v2270_v55  ;;  %v2374_v37 = vsel %vm7461_vm10, %v2323_v30, -inf  ;;  %3214 = vmatmul.mubr.f32.gmra.mrb[60].mxu0 %v4269_v35  ;;  %v8123_v22 = vld [vmem:[#allocation25_spill] sm:$0xff] }
 0x689   : > { %v4273_v63 = vpop.eup %4272  ;;  %v2488_v19 = vmul.f32 1.442695, %v2436_v3  ;;  %v2375_v57 = vsel %vm7466_vm13, %v2339_v61, -inf  ;;  %v2406_v6 = vmax.f32 %v8117_v0, %v2374_v37  ;;  %3390 = vmatprep.mubr.f32.mxu1 %v3277_v26  ;;  %v2272_v12 = vpop.permute.xlu0 %2271  ;;  %v2986_v33 = vsub.f32 %v7415_v53, %v7369_v51 }
 0x68a   : > { %v4275_v10 = vpop.eup %4274  ;;  %v3278_v38 = vmul.f32 %v4273_v63, %v7548_v31  ;;  %v2490_v41 = vmul.f32 1.442695, %v2437_v47  ;;  %v2407_v45 = vmax.f32 %v8118_v52, %v2375_v57  ;;  %3391 = vmatmul.mubr.f32.gmra.mrb[60].mxu1 %v3276_v62  ;;  %v2304_v18 = vpop.permute.xlu1 %2303  ;;  %v7769_v59 = vsel %vm3047_vm1, 1.0, %v8083_v25  ;;  %v8125_v47 = vld [vmem:[#allocation46_spill] sm:$0xff]  ;;  %v8126_v57 = vld [vmem:[#allocation47_spill] sm:$0xff] }
 0x68b   : > { %4284 = vpow2.f32 %v2488_v19  ;;  %v3279_v15 = vmul.f32 %v4275_v10, %v7551_v23  ;;  %v2438_v43 = vsub.f32 %v8119_v56, %v2406_v6  ;;  %3218 = vmatprep.mubr.f32.mxu0 %v4275_v10  ;;  %v2324_v60 = vsel %vm2311_vm15, %v2272_v12, %v2304_v18  ;;  %v8127_v52 = vld [vmem:[#allocation27_spill] sm:$0xff] }
 0x68c   : > { %4286 = vpow2.f32 %v2490_v41  ;;  %v2439_v49 = vsub.f32 %v8120_v58, %v2407_v45  ;;  %v2340_v31 = vsel %vm2311_vm15, %v2304_v18, %v2272_v12  ;;  %v2376_v4 = vsel %vm7461_vm10, %v2324_v60, -inf  ;;  %3219 = vmatmul.mubr.f32.gmra.mrb[62].mxu0 %v4273_v63  ;;  %v8128_v18 = vld [vmem:[#allocation28_spill] sm:$0xff] }
 0x68d   : > { %v4277_v20 = vpop.eup %4276  ;;  %v2492_v9 = vmul.f32 1.442695, %v2438_v43  ;;  %v2377_v23 = vsel %vm7466_vm13, %v2340_v31, -inf  ;;  %v2408_v35 = vmax.f32 %v8121_v42, %v2376_v4  ;;  %3395 = vmatprep.mubr.f32.mxu1 %v3279_v15  ;;  %v2274_v8 = vpop.permute.xlu0 %2273  ;;  %v3018_v58 = vand.u32 2147483647, %v2986_v33  ;;  %v8129_v42 = vld [vmem:[#allocation48_spill] sm:$0xff] }
 0x68e   : > { %v4279_v50 = vpop.eup %4278  ;;  %v3280_v28 = vmul.f32 %v4277_v20, %v7557_v39  ;;  %v2494_v1 = vmul.f32 1.442695, %v2439_v49  ;;  %v2409_v62 = vmax.f32 %v8122_v17, %v2377_v23  ;;  %3396 = vmatmul.mubr.f32.gmra.mrb[62].mxu1 %v3278_v38  ;;  %v2306_v48 = vpop.permute.xlu1 %2305  ;;  %v8124_v39 = vld [vmem:[#allocation26_spill] sm:$0xff]  ;;  %v7786_v38 = vand.u32 2147483647, %v2985_v2 }
 0x68f   : > { %4288 = vpow2.f32 %v2492_v9  ;;  %v3281_v55 = vmul.f32 %v4279_v50, %v7561_v5  ;;  %v2440_v26 = vsub.f32 %v8123_v22, %v2408_v35  ;;  %3223 = vmatprep.mubr.f32.mxu0 %v4279_v50  ;;  %v2325_v51 = vsel %vm2311_vm15, %v2274_v8, %v2306_v48  ;;  %v8133_v22 = vld [vmem:[#allocation49_spill] sm:$0xff] }
 0x690   : > { %4290 = vpow2.f32 %v2494_v1  ;;  %v2441_v54 = vsub.f32 %v8124_v39, %v2409_v62  ;;  %v2341_v3 = vsel %vm2311_vm15, %v2306_v48, %v2274_v8  ;;  %v2378_v13 = vsel %vm7461_vm10, %v2325_v51, -inf  ;;  %3224 = vmatmul.mubr.f32.gmra.mrb[64].mxu0 %v4277_v20  ;;  %v8132_v48 = vld [vmem:[#allocation50_spill] sm:$0xff] }
 0x691   : > { %v4281_v30 = vpop.eup %4280  ;;  %v2496_v40 = vmul.f32 1.442695, %v2440_v26  ;;  %v2379_v5 = vsel %vm7466_vm13, %v2341_v3, -inf  ;;  %v2410_v61 = vmax.f32 %v8125_v47, %v2378_v13  ;;  %3400 = vmatprep.mubr.f32.mxu1 %v3281_v55  ;;  %v2276_v6 = vpop.permute.xlu0 %2275  ;;  %v2987_v35 = vsub.f32 %v7411_v14, %v8129_v42  ;;  %v8135_v13 = vld [vmem:[#allocation31_spill] sm:$0xff]  ;;  %v8137_v47 = vld [vmem:[#allocation52_spill] sm:$0xff] }
 0x692   : > { %v4283_v37 = vpop.eup %4282  ;;  %v3282_v63 = vmul.f32 %v4281_v30, %v7579_v46  ;;  %v2498_v19 = vmul.f32 1.442695, %v2441_v54  ;;  %v2411_v0 = vmax.f32 %v8126_v57, %v2379_v5  ;;  %3401 = vmatmul.mubr.f32.gmra.mrb[64].mxu1 %v3280_v28  ;;  %v2308_v10 = vpop.permute.xlu1 %2307  ;;  %v8130_v28 = vld [vmem:[#allocation29_spill] sm:$0xff]  ;;  %v2988_v26 = vsub.f32 %v7415_v53, %v8133_v22  ;;  %v8134_v54 = vld [vmem:[#allocation51_spill] sm:$0xff] }
 0x693   : > { %4292 = vpow2.f32 %v2496_v40  ;;  %v3283_v41 = vmul.f32 %v4283_v37, %v7596_v44  ;;  %v2442_v45 = vsub.f32 %v8127_v52, %v2410_v61  ;;  %3228 = vmatprep.mubr.f32.mxu0 %v4283_v37  ;;  %v2326_v12 = vsel %vm2311_vm15, %v2276_v6, %v2308_v10  ;;  %v8136_v40 = vld [vmem:[#allocation32_spill] sm:$0xff] }
 0x694   : > { %4294 = vpow2.f32 %v2498_v19  ;;  %v2443_v46 = vsub.f32 %v8128_v18, %v2411_v0  ;;  %v2342_v15 = vsel %vm2311_vm15, %v2308_v10, %v2276_v6  ;;  %v2380_v56 = vsel %vm7461_vm10, %v2326_v12, -inf  ;;  %3229 = vmatmul.mubr.f32.gmra.mrb[66].mxu0 %v4281_v30  ;;  %v8138_v19 = vld [vmem:[#allocation53_spill] sm:$0xff] }
 0x695   : > { %v4285_v2 = vpop.eup %4284  ;;  %v2500_v43 = vmul.f32 1.442695, %v2442_v45  ;;  %v2381_v44 = vsel %vm7466_vm13, %v2342_v15, -inf  ;;  %v2412_v60 = vmax.f32 %v7372_v21, %v2380_v56  ;;  %3405 = vmatprep.mubr.f32.mxu1 %v3283_v41  ;;  %v2278_v9 = vpop.permute.xlu0 %2277  ;;  %v3808_v36 = vsel %vm3048_vm6, 1.0, %v8083_v25 }
 0x696   : > { %v4287_v49 = vpop.eup %4286  ;;  %v3284_v31 = vmul.f32 %v4285_v2, %v7629_v27  ;;  %v2502_v4 = vmul.f32 1.442695, %v2443_v46  ;;  %v2413_v20 = vmax.f32 %v7375_v7, %v2381_v44  ;;  %3406 = vmatmul.mubr.f32.gmra.mrb[66].mxu1 %v3282_v63  ;;  %v2310_v23 = vpop.permute.xlu1 %2309  ;;  %v8131_v27 = vld [vmem:[#allocation30_spill] sm:$0xff]  ;;  %v2989_v61 = vsub.f32 %v7411_v14, %v8137_v47 }
 0x697   : > { %4296 = vpow2.f32 %v2500_v43  ;;  %v3285_v50 = vmul.f32 %v4287_v49, %v7635_v11  ;;  %v2444_v1 = vsub.f32 %v8130_v28, %v2412_v60  ;;  %3233 = vmatprep.mubr.f32.mxu0 %v4287_v49  ;;  %v2327_v21 = vsel %vm2311_vm15, %v2278_v9, %v2310_v23 }
 0x698   : > { %4298 = vpow2.f32 %v2502_v4  ;;  %v2445_v33 = vsub.f32 %v8131_v27, %v2413_v20  ;;  %v2343_v7 = vsel %vm2311_vm15, %v2310_v23, %v2278_v9  ;;  %v2382_v17 = vsel %vm7461_vm10, %v2327_v21, -inf  ;;  %3234 = vmatmul.mubr.f32.gmra.mrb[68].mxu0 %v4285_v2 }
 0x699   : > { %v4289_v62 = vpop.eup %4288  ;;  %v2504_v8 = vmul.f32 1.442695, %v2444_v1  ;;  %v2383_v11 = vsel %vm7466_vm13, %v2343_v7, -inf  ;;  %v2414_v55 = vmax.f32 %v8132_v48, %v2382_v17  ;;  %3410 = vmatprep.mubr.f32.mxu1 %v3285_v50  ;;  %vm3049_vm15 = vcmp.lt.f32.partialorder %v7786_v38, 0.5 }
 0x69a   : > { %v4291_v51 = vpop.eup %4290  ;;  %v3286_v39 = vmul.f32 %v4289_v62, %v7704_v34  ;;  %v2506_v29 = vmul.f32 1.442695, %v2445_v33  ;;  %v2415_v3 = vmax.f32 %v8134_v54, %v2383_v11  ;;  %3411 = vmatmul.mubr.f32.gmra.mrb[68].mxu1 %v3284_v31  ;;  %v3019_v34 = vand.u32 2147483647, %v2987_v35 }
 0x69b   : > { %4300 = vpow2.f32 %v2504_v8  ;;  %v3287_v32 = vmul.f32 %v4291_v51, %v7711_v16  ;;  %v2446_v30 = vsub.f32 %v8135_v13, %v2414_v55  ;;  %3238 = vmatprep.mubr.f32.mxu0 %v4291_v51  ;;  %vm3050_vm10 = vcmp.lt.f32.partialorder %v3018_v58, 0.5 }
 0x69c   : > { %4302 = vpow2.f32 %v2506_v29  ;;  %v2447_v5 = vsub.f32 %v8136_v40, %v2415_v3  ;;  %3239 = vmatmul.mubr.f32.gmra.mrb[70].mxu0 %v4289_v62  ;;  %v3020_v63 = vand.u32 2147483647, %v2988_v26  ;;  %v2990_v16 = vsub.f32 %v7415_v53, %v8138_v19 }
 0x69d   : > { %v4293_v37 = vpop.eup %4292  ;;  %v2508_v24 = vmul.f32 1.442695, %v2446_v30  ;;  %3415 = vmatprep.mubr.f32.mxu1 %v3287_v32  ;;  %v3809_v41 = vsel %vm3049_vm15, 1.0, %v8083_v25  ;;  %v3810_v14 = vsel %vm3050_vm10, 1.0, %v8083_v25  ;;  %vm3051_vm13 = vcmp.lt.f32.partialorder %v3019_v34, 0.5 }
 0x69e   : > { %v4295_v57 = vpop.eup %4294  ;;  %v3288_v0 = vmul.f32 %v4293_v37, %v7769_v59  ;;  %v2510_v6 = vmul.f32 1.442695, %v2447_v5  ;;  %3416 = vmatmul.mubr.f32.gmra.mrb[70].mxu1 %v3286_v39  ;;  %v3021_v52 = vand.u32 2147483647, %v2989_v61  ;;  %vm3052_vm8 = vcmp.lt.f32.partialorder %v3020_v63, 0.5 }
 0x69f   : > { %4304 = vpow2.f32 %v2508_v24  ;;  %v3289_v10 = vmul.f32 %v4295_v57, %v3808_v36  ;;  %3243 = vmatprep.mubr.f32.mxu0 %v4295_v57  ;;  %v3022_v53 = vand.u32 2147483647, %v2990_v16  ;;  %v3811_v46 = vsel %vm3051_vm13, 1.0, %v8083_v25 }
 0x6a0   : > { %4306 = vpow2.f32 %v2510_v6  ;;  %3244 = vmatmul.mubr.f32.gmra.mrb[72].mxu0 %v4293_v37  ;;  %v3812_v38 = vsel %vm3052_vm8, 1.0, %v8083_v25  ;;  %vm3053_vm9 = vcmp.lt.f32.partialorder %v3021_v52, 0.5 }
 0x6a1   : > { %v4297_v45 = vpop.eup %4296  ;;  %3420 = vmatprep.mubr.f32.mxu1 %v3289_v10  ;;  %vm3054_vm11 = vcmp.lt.f32.partialorder %v3022_v53, 0.5  ;;  %v3813_v44 = vsel %vm3053_vm9, 1.0, %v8083_v25 }
 0x6a2   : > { %v4299_v59 = vpop.eup %4298  ;;  %v3290_v12 = vmul.f32 %v4297_v45, %v3809_v41  ;;  %3421 = vmatmul.mubr.f32.gmra.mrb[72].mxu1 %v3288_v0  ;;  %v3814_v60 = vsel %vm3054_vm11, 1.0, %v8083_v25 }
 0x6a3   : > { %v3291_v18 = vmul.f32 %v4299_v59, %v3810_v14  ;;  %3248 = vmatprep.mubr.f32.mxu0 %v4299_v59 }
 0x6a4   : > { %3249 = vmatmul.mubr.f32.gmra.mrb[74].mxu0 %v4297_v45 }
 0x6a5   : > { %v4301_v15 = vpop.eup %4300  ;;  %3425 = vmatprep.mubr.f32.mxu1 %v3291_v18 }
 0x6a6   : > { %v4303_v56 = vpop.eup %4302  ;;  %v3292_v2 = vmul.f32 %v4301_v15, %v3811_v46  ;;  %3426 = vmatmul.mubr.f32.gmra.mrb[74].mxu1 %v3290_v12 }
 0x6a7   : > { %v3293_v43 = vmul.f32 %v4303_v56, %v3812_v38  ;;  %3253 = vmatprep.mubr.f32.mxu0 %v4303_v56 }
 0x6a8   : > { %3254 = vmatmul.mubr.f32.gmra.mrb[76].mxu0 %v4301_v15 }
 0x6a9   : > { %v4305_v58 = vpop.eup %4304  ;;  %3430 = vmatprep.mubr.f32.mxu1 %v3293_v43 }
 0x6aa   : > { %v4307_v49 = vpop.eup %4306  ;;  %v3294_v31 = vmul.f32 %v4305_v58, %v3813_v44  ;;  %3431 = vmatmul.mubr.f32.gmra.mrb[76].mxu1 %v3292_v2 }
 0x6ab   : > { %v3295_v4 = vmul.f32 %v4307_v49, %v3814_v60  ;;  %3258 = vmatprep.mubr.f32.mxu0 %v4307_v49 }
 0x6ac   : > { %3259 = vmatmul.mubr.f32.gmra.mrb[78].mxu0 %v4305_v58 }
 0x6ad   : > { %3435 = vmatprep.mubr.f32.mxu1 %v3295_v4 }
 0x6ae   : > { %3436 = vmatmul.mubr.f32.gmra.mrb[78].mxu1 %v3294_v31 }
 0x742   : > { %v3951_v20 = vpop.f32.mrb[48].mxu0 }
 0x743   : > { %v3952_v9 = vpop.f32.mrb[49].mxu0 }
 0x744   : > { %v3953_v23 = vadd.f32 %v3952_v9, %v3951_v20  ;;  %v4031_v42 = vpop.f32.mrb[48].mxu1 }
 0x745   : > { %v4032_v35 = vpop.f32.mrb[49].mxu1 }
 0x746   : > { %4308 = vrcp.f32 %v3953_v23  ;;  %v4033_v50 = vadd.f32 %v4032_v35, %v4031_v42  ;;  %v3954_v28 = vpop.f32.mrb[50].mxu0 }
 0x747   : > { %v3955_v25 = vpop.f32.mrb[51].mxu0 }
 0x748   : > { %v3956_v1 = vadd.f32 %v3955_v25, %v3954_v28  ;;  %v4034_v21 = vpop.f32.mrb[50].mxu1 }
 0x749   : > { %v4035_v27 = vpop.f32.mrb[51].mxu1 }
 0x74a   : > { %4310 = vrcp.f32 %v3956_v1  ;;  %v4036_v33 = vadd.f32 %v4035_v27, %v4034_v21  ;;  %v3957_v7 = vpop.f32.mrb[52].mxu0 }
 0x74b   : > { %v3958_v17 = vpop.f32.mrb[53].mxu0 }
 0x74c   : > { %v3959_v62 = vadd.f32 %v3958_v17, %v3957_v7  ;;  %v4037_v8 = vpop.f32.mrb[52].mxu1 }
 0x74d   : > { %v4038_v11 = vpop.f32.mrb[53].mxu1 }
 0x74e   : > { %4312 = vrcp.f32 %v3959_v62  ;;  %v4039_v48 = vadd.f32 %v4038_v11, %v4037_v8  ;;  %v3960_v55 = vpop.f32.mrb[54].mxu0 }
 0x74f   : > { %v3961_v22 = vpop.f32.mrb[55].mxu0 }
 0x750   : > { %v4309_v26 = vpop.eup %4308  ;;  %v3962_v51 = vadd.f32 %v3961_v22, %v3960_v55  ;;  %v4040_v39 = vpop.f32.mrb[54].mxu1 }
 0x751   : > { %v3442_v29 = vmul.f32 %v4309_v26, %v4033_v50  ;;  %v4041_v54 = vpop.f32.mrb[55].mxu1 }
 0x752   : > { %4314 = vrcp.f32 %v3962_v51  ;;  %v4042_v3 = vadd.f32 %v4041_v54, %v4040_v39  ;;  %v3963_v36 = vpop.f32.mrb[56].mxu0 }
 0x753   : > { %v3473_v32 = vmax.f32 %v3442_v29, 1e-05  ;;  %v3964_v13 = vpop.f32.mrb[57].mxu0 }
 0x754   : > { %v4311_v30 = vpop.eup %4310  ;;  %v3965_v40 = vadd.f32 %v3964_v13, %v3963_v36  ;;  %v4043_v5 = vpop.f32.mrb[56].mxu1 }
 0x755   : > { %v3489_v34 = vmin.f32 %v3473_v32, 0.99999  ;;  %v3444_v47 = vmul.f32 %v4311_v30, %v4036_v33  ;;  %v4044_v61 = vpop.f32.mrb[57].mxu1 }
 0x756   : > { %4316 = vrcp.f32 %v3965_v40  ;;  %v4045_v37 = vadd.f32 %v4044_v61, %v4043_v5 }
 0x757   : > { %v3966_v24 = vpop.f32.mrb[58].mxu0  ;;  %4318 = vlog2.f32 %v3489_v34  ;;  %v3474_v63 = vmax.f32 %v3444_v47, 1e-05 }
 0x758   : > { %v3967_v19 = vpop.f32.mrb[59].mxu0  ;;  %v4313_v16 = vpop.eup %4312 }
 0x759   : > { %v3968_v57 = vadd.f32 %v3967_v19, %v3966_v24  ;;  %v4046_v0 = vpop.f32.mrb[58].mxu1  ;;  %v3490_v6 = vmin.f32 %v3474_v63, 0.99999  ;;  %v3446_v10 = vmul.f32 %v4313_v16, %v4039_v48 }
 0x75a   : > { %v4047_v41 = vpop.f32.mrb[59].mxu1 }
 0x75b   : > { %4320 = vrcp.f32 %v3968_v57  ;;  %v4048_v14 = vadd.f32 %v4047_v41, %v4046_v0  ;;  %v3969_v52 = vpop.f32.mrb[60].mxu0  ;;  %v3475_v45 = vmax.f32 %v3446_v10, 1e-05 }
 0x75c   : > { %4322 = vlog2.f32 %v3490_v6  ;;  %v3970_v53 = vpop.f32.mrb[61].mxu0  ;;  %v4315_v59 = vpop.eup %4314 }
 0x75d   : > { %v3971_v12 = vadd.f32 %v3970_v53, %v3969_v52  ;;  %v4049_v18 = vpop.f32.mrb[60].mxu1  ;;  %v3491_v46 = vmin.f32 %v3475_v45, 0.99999  ;;  %v3448_v38 = vmul.f32 %v4315_v59, %v4042_v3 }
 0x75e   : > { %v4050_v15 = vpop.f32.mrb[61].mxu1 }
 0x75f   : > { %4324 = vrcp.f32 %v3971_v12  ;;  %v4051_v56 = vadd.f32 %v4050_v15, %v4049_v18  ;;  %v3972_v2 = vpop.f32.mrb[62].mxu0  ;;  %v3476_v43 = vmax.f32 %v3448_v38, 1e-05 }
 0x760   : > { %4326 = vlog2.f32 %v3491_v46  ;;  %v3973_v44 = vpop.f32.mrb[63].mxu0  ;;  %v4317_v60 = vpop.eup %4316 }
 0x761   : > { %v3974_v58 = vadd.f32 %v3973_v44, %v3972_v2  ;;  %v4052_v49 = vpop.f32.mrb[62].mxu1  ;;  %v4319_v31 = vpop.eup %4318  ;;  %v3492_v4 = vmin.f32 %v3476_v43, 0.99999  ;;  %v3450_v20 = vmul.f32 %v4317_v60, %v4045_v37 }
 0x762   : > { %v4053_v9 = vpop.f32.mrb[63].mxu1  ;;  %v3506_v35 = vmul.f32 0.6931472, %v4319_v31 }
 0x763   : > { %4328 = vrcp.f32 %v3974_v58  ;;  %v4054_v23 = vadd.f32 %v4053_v9, %v4052_v49  ;;  %v3975_v42 = vpop.f32.mrb[64].mxu0  ;;  %v3477_v50 = vmax.f32 %v3450_v20, 1e-05 }
 0x764   : > { %4330 = vlog2.f32 %v3492_v4  ;;  %v3976_v28 = vpop.f32.mrb[65].mxu0  ;;  %v3537_v27 = vsel %vm357_vm0, %v3506_v35, 0.0 }
 0x765   : > { %v4321_v25 = vpop.eup %4320  ;;  %v3977_v1 = vadd.f32 %v3976_v28, %v3975_v42  ;;  %v4055_v21 = vpop.f32.mrb[64].mxu1  ;;  %v3493_v7 = vmin.f32 %v3477_v50, 0.99999  ;;  %3538 = vadd.xlane.f32.xlu0 %v3537_v27 }
 0x766   : > { %v4323_v33 = vpop.eup %4322  ;;  %v3452_v17 = vmul.f32 %v4321_v25, %v4048_v14  ;;  %v4056_v62 = vpop.f32.mrb[65].mxu1 }
 0x767   : > { %4332 = vrcp.f32 %v3977_v1  ;;  %v4057_v8 = vadd.f32 %v4056_v62, %v4055_v21  ;;  %v3978_v11 = vpop.f32.mrb[66].mxu0  ;;  %v3508_v48 = vmul.f32 0.6931472, %v4323_v33 }
 0x768   : > { %4334 = vlog2.f32 %v3493_v7  ;;  %v3478_v55 = vmax.f32 %v3452_v17, 1e-05  ;;  %v3979_v22 = vpop.f32.mrb[67].mxu0 }
 0x769   : > { %v4325_v26 = vpop.eup %4324  ;;  %v3980_v51 = vadd.f32 %v3979_v22, %v3978_v11  ;;  %v4058_v39 = vpop.f32.mrb[66].mxu1  ;;  %v3540_v29 = vsel %vm357_vm0, %v3508_v48, 0.0 }
 0x76a   : > { %v4327_v54 = vpop.eup %4326  ;;  %v3494_v3 = vmin.f32 %v3478_v55, 0.99999  ;;  %v3454_v36 = vmul.f32 %v4325_v26, %v4051_v56  ;;  %3541 = vadd.xlane.f32.xlu1 %v3540_v29  ;;  %v4059_v32 = vpop.f32.mrb[67].mxu1 }
 0x76b   : > { %4336 = vrcp.f32 %v3980_v51  ;;  %v4060_v13 = vadd.f32 %v4059_v32, %v4058_v39  ;;  %v3981_v30 = vpop.f32.mrb[68].mxu0  ;;  %v3510_v40 = vmul.f32 0.6931472, %v4327_v54 }
 0x76c   : > { %4338 = vlog2.f32 %v3494_v3  ;;  %v3479_v5 = vmax.f32 %v3454_v36, 1e-05  ;;  %v3982_v34 = vpop.f32.mrb[69].mxu0 }
 0x76d   : > { %v4329_v47 = vpop.eup %4328  ;;  %v3983_v61 = vadd.f32 %v3982_v34, %v3981_v30  ;;  %v4061_v37 = vpop.f32.mrb[68].mxu1  ;;  %v3543_v24 = vsel %vm357_vm0, %v3510_v40, 0.0 }
 0x76e   : > { %v4331_v63 = vpop.eup %4330  ;;  %v3495_v19 = vmin.f32 %v3479_v5, 0.99999  ;;  %v3456_v16 = vmul.f32 %v4329_v47, %v4054_v23  ;;  %3544 = vadd.xlane.f32.xlu0 %v3543_v24  ;;  %v4062_v57 = vpop.f32.mrb[69].mxu1 }
 0x76f   : > { %4340 = vrcp.f32 %v3983_v61  ;;  %v4063_v0 = vadd.f32 %v4062_v57, %v4061_v37  ;;  %v3984_v6 = vpop.f32.mrb[70].mxu0  ;;  %v3512_v10 = vmul.f32 0.6931472, %v4331_v63 }
 0x770   : > { %4342 = vlog2.f32 %v3495_v19  ;;  %v3480_v41 = vmax.f32 %v3456_v16, 1e-05  ;;  %v3985_v14 = vpop.f32.mrb[71].mxu0 }
 0x771   : > { %v4333_v52 = vpop.eup %4332  ;;  %v3986_v45 = vadd.f32 %v3985_v14, %v3984_v6  ;;  %v4064_v53 = vpop.f32.mrb[70].mxu1  ;;  %v3546_v59 = vsel %vm357_vm0, %v3512_v10, 0.0 }
 0x772   : > { %v4335_v12 = vpop.eup %4334  ;;  %v3496_v18 = vmin.f32 %v3480_v41, 0.99999  ;;  %v3458_v46 = vmul.f32 %v4333_v52, %v4057_v8  ;;  %3547 = vadd.xlane.f32.xlu0 %v3546_v59  ;;  %v4065_v38 = vpop.f32.mrb[71].mxu1 }
 0x773   : > { %4344 = vrcp.f32 %v3986_v45  ;;  %v4066_v15 = vadd.f32 %v4065_v38, %v4064_v53  ;;  %v3987_v56 = vpop.f32.mrb[72].mxu0  ;;  %v3514_v2 = vmul.f32 0.6931472, %v4335_v12 }
 0x774   : > { %4346 = vlog2.f32 %v3496_v18  ;;  %v3481_v43 = vmax.f32 %v3458_v46, 1e-05  ;;  %v3988_v44 = vpop.f32.mrb[73].mxu0 }
 0x775   : > { %v4337_v60 = vpop.eup %4336  ;;  %v3989_v58 = vadd.f32 %v3988_v44, %v3987_v56  ;;  %v4067_v49 = vpop.f32.mrb[72].mxu1  ;;  %v3549_v31 = vsel %vm357_vm0, %v3514_v2, 0.0 }
 0x776   : > { %v4339_v4 = vpop.eup %4338  ;;  %v3497_v20 = vmin.f32 %v3481_v43, 0.99999  ;;  %v3460_v9 = vmul.f32 %v4337_v60, %v4060_v13  ;;  %3550 = vadd.xlane.f32.xlu1 %v3549_v31  ;;  %v4068_v23 = vpop.f32.mrb[73].mxu1 }
 0x777   : > { %4348 = vrcp.f32 %v3989_v58  ;;  %v4069_v42 = vadd.f32 %v4068_v23, %v4067_v49  ;;  %v3990_v35 = vpop.f32.mrb[74].mxu0  ;;  %v3516_v50 = vmul.f32 0.6931472, %v4339_v4 }
 0x778   : > { %4350 = vlog2.f32 %v3497_v20  ;;  %v3482_v28 = vmax.f32 %v3460_v9, 1e-05  ;;  %v3991_v25 = vpop.f32.mrb[75].mxu0 }
 0x779   : > { %v4341_v1 = vpop.eup %4340  ;;  %v3992_v21 = vadd.f32 %v3991_v25, %v3990_v35  ;;  %v4070_v27 = vpop.f32.mrb[74].mxu1  ;;  %v3552_v33 = vsel %vm357_vm0, %v3516_v50, 0.0 }
 0x77a   : > { %v4343_v7 = vpop.eup %4342  ;;  %v3498_v17 = vmin.f32 %v3482_v28, 0.99999  ;;  %v3462_v62 = vmul.f32 %v4341_v1, %v4063_v0  ;;  %3553 = vadd.xlane.f32.xlu0 %v3552_v33  ;;  %v4071_v8 = vpop.f32.mrb[75].mxu1 }
 0x77b   : > { %4352 = vrcp.f32 %v3992_v21  ;;  %v4072_v11 = vadd.f32 %v4071_v8, %v4070_v27  ;;  %v3993_v48 = vpop.f32.mrb[76].mxu0  ;;  %v3518_v55 = vmul.f32 0.6931472, %v4343_v7 }
 0x77c   : > { %4354 = vlog2.f32 %v3498_v17  ;;  %v3483_v22 = vmax.f32 %v3462_v62, 1e-05  ;;  %v3994_v26 = vpop.f32.mrb[77].mxu0 }
 0x77d   : > { %v4345_v51 = vpop.eup %4344  ;;  %v3995_v39 = vadd.f32 %v3994_v26, %v3993_v48  ;;  %v4073_v29 = vpop.f32.mrb[76].mxu1  ;;  %v3555_v54 = vsel %vm357_vm0, %v3518_v55, 0.0 }
 0x77e   : > { %v4347_v3 = vpop.eup %4346  ;;  %v3499_v36 = vmin.f32 %v3483_v22, 0.99999  ;;  %v3464_v32 = vmul.f32 %v4345_v51, %v4066_v15  ;;  %3556 = vadd.xlane.f32.xlu1 %v3555_v54  ;;  %v4074_v13 = vpop.f32.mrb[77].mxu1 }
 0x77f   : > { %4356 = vrcp.f32 %v3995_v39  ;;  %v4075_v30 = vadd.f32 %v4074_v13, %v4073_v29  ;;  %v3996_v40 = vpop.f32.mrb[78].mxu0  ;;  %v3520_v5 = vmul.f32 0.6931472, %v4347_v3 }
 0x780   : > { %4358 = vlog2.f32 %v3499_v36  ;;  %v3484_v34 = vmax.f32 %v3464_v32, 1e-05  ;;  %v3997_v47 = vpop.f32.mrb[79].mxu0 }
 0x781   : > { %v4349_v61 = vpop.eup %4348  ;;  %v3998_v37 = vadd.f32 %v3997_v47, %v3996_v40  ;;  %v4076_v24 = vpop.f32.mrb[78].mxu1  ;;  %v3558_v63 = vsel %vm357_vm0, %v3520_v5, 0.0 }
 0x782   : > { %v4351_v19 = vpop.eup %4350  ;;  %v3500_v16 = vmin.f32 %v3484_v34, 0.99999  ;;  %v3466_v57 = vmul.f32 %v4349_v61, %v4069_v42  ;;  %3559 = vadd.xlane.f32.xlu0 %v3558_v63  ;;  %v4077_v0 = vpop.f32.mrb[79].mxu1 }
 0x783   : > { %4360 = vrcp.f32 %v3998_v37  ;;  %v4078_v6 = vadd.f32 %v4077_v0, %v4076_v24  ;;  %v3522_v10 = vmul.f32 0.6931472, %v4351_v19 }
 0x784   : > { %4362 = vlog2.f32 %v3500_v16  ;;  %v3485_v41 = vmax.f32 %v3466_v57, 1e-05 }
 0x785   : > { %v4353_v14 = vpop.eup %4352  ;;  %v3561_v52 = vsel %vm357_vm0, %v3522_v10, 0.0 }
 0x786   : > { %v4355_v45 = vpop.eup %4354  ;;  %v3501_v53 = vmin.f32 %v3485_v41, 0.99999  ;;  %v3468_v59 = vmul.f32 %v4353_v14, %v4072_v11  ;;  %3562 = vadd.xlane.f32.xlu1 %v3561_v52 }
 0x787   : > { %v3524_v12 = vmul.f32 0.6931472, %v4355_v45 }
 0x788   : > { %4364 = vlog2.f32 %v3501_v53  ;;  %v3486_v18 = vmax.f32 %v3468_v59, 1e-05 }
 0x789   : > { %v4357_v46 = vpop.eup %4356  ;;  %v3564_v38 = vsel %vm357_vm0, %v3524_v12, 0.0 }
 0x78a   : > { %v4359_v15 = vpop.eup %4358  ;;  %v3502_v56 = vmin.f32 %v3486_v18, 0.99999  ;;  %v3470_v2 = vmul.f32 %v4357_v46, %v4075_v30  ;;  %3565 = vadd.xlane.f32.xlu0 %v3564_v38 }
 0x78b   : > { %v3526_v43 = vmul.f32 0.6931472, %v4359_v15 }
 0x78c   : > { %4366 = vlog2.f32 %v3502_v56  ;;  %v3487_v44 = vmax.f32 %v3470_v2, 1e-05 }
 0x78d   : > { %v4361_v60 = vpop.eup %4360  ;;  %v3567_v58 = vsel %vm357_vm0, %v3526_v43, 0.0 }
 0x78e   : > { %v4363_v49 = vpop.eup %4362  ;;  %v3503_v31 = vmin.f32 %v3487_v44, 0.99999  ;;  %v3472_v4 = vmul.f32 %v4361_v60, %v4078_v6  ;;  %3568 = vadd.xlane.f32.xlu1 %v3567_v58 }
 0x78f   : > { %v3528_v20 = vmul.f32 0.6931472, %v4363_v49 }
 0x790   : > { %4368 = vlog2.f32 %v3503_v31  ;;  %v3488_v9 = vmax.f32 %v3472_v4, 1e-05 }
 0x791   : > { %v3570_v23 = vsel %vm357_vm0, %v3528_v20, 0.0 }
 0x792   : > { %v4365_v42 = vpop.eup %4364  ;;  %v3504_v35 = vmin.f32 %v3488_v9, 0.99999  ;;  %3571 = vadd.xlane.f32.xlu0 %v3570_v23 }
 0x793   : > { %v3530_v50 = vmul.f32 0.6931472, %v4365_v42 }
 0x794   : > { %4370 = vlog2.f32 %v3504_v35 }
 0x795   : > { %v3573_v28 = vsel %vm357_vm0, %v3530_v50, 0.0 }
 0x796   : > { %v4367_v25 = vpop.eup %4366  ;;  %3574 = vadd.xlane.f32.xlu1 %v3573_v28 }
 0x797   : > { %v3532_v1 = vmul.f32 0.6931472, %v4367_v25 }
 0x799   : > { %v3576_v21 = vsel %vm357_vm0, %v3532_v1, 0.0 }
 0x79a   : > { %v4369_v27 = vpop.eup %4368  ;;  %3577 = vadd.xlane.f32.xlu0 %v3576_v21 }
 0x79b   : > { %v3534_v33 = vmul.f32 0.6931472, %v4369_v27 }
 0x79d   : > { %v3579_v7 = vsel %vm357_vm0, %v3534_v33, 0.0 }
 0x79e   : > { %v4371_v17 = vpop.eup %4370  ;;  %3580 = vadd.xlane.f32.xlu1 %v3579_v7 }
 0x79f   : > { %v3536_v62 = vmul.f32 0.6931472, %v4371_v17 }
 0x7a1   : > { %v3582_v8 = vsel %vm357_vm0, %v3536_v62, 0.0 }
 0x7a2   : > { %3583 = vadd.xlane.f32.xlu0 %v3582_v8 }
 0x7f2   : > { %v3539_v11 = vpop.xlane.xlu0 %3538 }
 0x7f3   : > { %3586 = vst.msk [vmem:[%s7860_s10] sm:$0xff] %vm3585_vm12, %v3539_v11 }
 0x7f7   : > { %v3542_v48 = vpop.xlane.xlu1 %3541 }
 0x7f8   : > { %3587 = vst.msk [vmem:[%s7860_s10 + $0x8] sm:$0xff] %vm3585_vm12, %v3542_v48 }
 0x7fb   : > { %v3545_v55 = vpop.xlane.xlu0 %3544 }
 0x7fc   : > { %3588 = vst.msk [vmem:[%s7860_s10 + $0x10] sm:$0xff] %vm3585_vm12, %v3545_v55 }
 0x7ff   : > { %v3548_v22 = vpop.xlane.xlu0 %3547 }
 0x800   : > { %3589 = vst.msk [vmem:[%s7860_s10 + $0x18] sm:$0xff] %vm3585_vm12, %v3548_v22 }
 0x803   : > { %v3551_v26 = vpop.xlane.xlu1 %3550 }
 0x804   : > { %3590 = vst.msk [vmem:[%s7860_s10 + $0x20] sm:$0xff] %vm3585_vm12, %v3551_v26 }
 0x807   : > { %v3554_v51 = vpop.xlane.xlu0 %3553 }
 0x808   : > { %3591 = vst.msk [vmem:[%s7860_s10 + $0x28] sm:$0xff] %vm3585_vm12, %v3554_v51 }
 0x80b   : > { %v3557_v39 = vpop.xlane.xlu1 %3556 }
 0x80c   : > { %3592 = vst.msk [vmem:[%s7860_s10 + $0x30] sm:$0xff] %vm3585_vm12, %v3557_v39 }
 0x80f   : > { %v3560_v29 = vpop.xlane.xlu0 %3559 }
 0x810   : > { %3593 = vst.msk [vmem:[%s7860_s10 + $0x38] sm:$0xff] %vm3585_vm12, %v3560_v29 }
 0x813   : > { %v3563_v54 = vpop.xlane.xlu1 %3562 }
 0x814   : > { %3594 = vst.msk [vmem:[%s7860_s10 + $0x40] sm:$0xff] %vm3585_vm12, %v3563_v54 }
 0x817   : > { %v3566_v3 = vpop.xlane.xlu0 %3565 }
 0x818   : > { %3595 = vst.msk [vmem:[%s7860_s10 + $0x48] sm:$0xff] %vm3585_vm12, %v3566_v3 }
 0x81b   : > { %v3569_v36 = vpop.xlane.xlu1 %3568 }
 0x81c   : > { %3596 = vst.msk [vmem:[%s7860_s10 + $0x50] sm:$0xff] %vm3585_vm12, %v3569_v36 }
 0x81f   : > { %v3572_v32 = vpop.xlane.xlu0 %3571 }
 0x820   : > { %3597 = vst.msk [vmem:[%s7860_s10 + $0x58] sm:$0xff] %vm3585_vm12, %v3572_v32 }
 0x823   : > { %v3575_v13 = vpop.xlane.xlu1 %3574 }
 0x824   : > { %3598 = vst.msk [vmem:[%s7860_s10 + $0x60] sm:$0xff] %vm3585_vm12, %v3575_v13 }
 0x827   : > { %v3578_v30 = vpop.xlane.xlu0 %3577 }
 0x828   : > { %3599 = vst.msk [vmem:[%s7860_s10 + $0x68] sm:$0xff] %vm3585_vm12, %v3578_v30 }
 0x82b   : > { %v3581_v40 = vpop.xlane.xlu1 %3580 }
 0x82c   : > { %3600 = vst.msk [vmem:[%s7860_s10 + $0x70] sm:$0xff] %vm3585_vm12, %v3581_v40 }
 0x82f   : > { %v3584_v5 = vpop.xlane.xlu0 %3583 }
 0x830   : > { %3601 = vst.msk [vmem:[%s7860_s10 + $0x78] sm:$0xff] %vm3585_vm12, %v3584_v5 }
 0x831 PF: > { %s18_s27 = sadd.s32 1, %s4378_s27  }
 0x832   : > { %p15_p4 = scmp.ge.s32.totalorder %s18_s27, 4  }
 0x834   :  { %17 = sbr.rel (!%p15_p4) target bundleno = 1 (0x1), region = 85 }

</bundles_post_ra>
